<compile_context>
chip_gen: v7x
topology: tpu7x:2x2x1
jax: 0.10.0
libtpu: 0.0.40
codegen_flags: <defaults>
</compile_context>

<pallas_src>
import functools

import jax
import jax.numpy as jnp
from jax.experimental import pallas as pl
from jax.experimental.pallas import tpu as pltpu

NEG_SLOPE = 1.9572
COUT_PAD = 128          # Cout=48 padded to a full lane width
TM = 128                # im2col rows per grid step (M tile)


def _matmul_bias_leaky_kernel(lhs_ref, w_ref, b_ref, o_ref):
    # lhs_ref: (TM, KKC_pad)       im2col patch tile
    # w_ref:   (KKC_pad, 128)      flipped / reshaped / zero-padded weight panel
    # b_ref:   (1, 128)            padded bias
    # o_ref:   (TM, 128)           lane-dense output tile
    acc = jnp.dot(lhs_ref[...], w_ref[...],
                  preferred_element_type=jnp.float32,
                  precision=jax.lax.Precision.HIGHEST)
    acc = acc + b_ref[...]
    o_ref[...] = jnp.where(acc > 0, acc, acc * NEG_SLOPE).astype(o_ref.dtype)


def prepare_weights(w_pt, bias):
    """One-time fold of PyTorch ConvTranspose2d params into a matmul panel.

    w_pt: (Cin, Cout, K, K); bias: (Cout,).
    Returns ((KKC_pad, 128) weight panel, (1, 128) bias).  KKC is padded up to
    a multiple of 128 (560 -> 640) and Cout to 128 so both the lhs loads and
    the output stores in the kernel are unmasked / lane-dense.
    """
    Cin, Cout, K, _ = w_pt.shape
    KKC = K * K * Cin
    KKC_pad = pl.cdiv(KKC, 128) * 128
    # spatial flip so transposed conv becomes plain correlation on padded input
    w_hwio = jnp.transpose(w_pt[:, :, ::-1, ::-1], (2, 3, 0, 1))   # (K,K,Cin,Cout)
    w2d = w_hwio.reshape(KKC, Cout)
    w_pad = jnp.pad(w2d, ((0, KKC_pad - KKC), (0, COUT_PAD - Cout)))
    b_pad = jnp.pad(bias, (0, COUT_PAD - Cout)).reshape(1, COUT_PAD)
    return w_pad, b_pad


@functools.partial(jax.jit, static_argnums=(3, 4))
def conv_transpose_leaky(x_nchw, w_pad, b_pad, K, Cout):
    """x_nchw: (N, Cin, H, W) f32.  w_pad/b_pad from prepare_weights."""
    N, Cin, H, W = x_nchw.shape
    OH, OW = H + K - 1, W + K - 1
    M = N * OH * OW
    KKC = K * K * Cin
    KKC_pad = w_pad.shape[0]
    M_pad = pl.cdiv(M, TM) * TM

    # NCHW -> NHWC, zero-pad spatially by (K-1), im2col to (M_pad, KKC_pad).
    # All of this fuses into the surrounding jit (one XLA fusion of slices +
    # concat + pad); the kernel then does pipelined lane-dense MXU matmuls.
    x_nhwc = jnp.transpose(x_nchw, (0, 2, 3, 1))
    x_sp = jnp.pad(x_nhwc, ((0, 0), (K - 1, K - 1), (K - 1, K - 1), (0, 0)))
    taps = [x_sp[:, kh:kh + OH, kw:kw + OW, :]
            for kh in range(K) for kw in range(K)]
    lhs = jnp.concatenate(taps, axis=-1).reshape(M, KKC)
    lhs = jnp.pad(lhs, ((0, M_pad - M), (0, KKC_pad - KKC)))

    out2d = pl.pallas_call(
        _matmul_bias_leaky_kernel,
        out_shape=jax.ShapeDtypeStruct((M_pad, COUT_PAD), x_nchw.dtype),
        grid_spec=pltpu.PrefetchScalarGridSpec(
            num_scalar_prefetch=0,
            grid=(M_pad // TM,),
            in_specs=[
                pl.BlockSpec((TM, KKC_pad), lambda i: (i, 0)),      # lhs tile
                pl.BlockSpec((KKC_pad, COUT_PAD), lambda i: (0, 0)),  # resident W
                pl.BlockSpec((1, COUT_PAD), lambda i: (0, 0)),        # resident b
            ],
            out_specs=pl.BlockSpec((TM, COUT_PAD), lambda i: (i, 0)),
        ),
        compiler_params=pltpu.CompilerParams(
            dimension_semantics=("parallel",)),   # v7x: shard M tiles over 2 TCs
    )(lhs, w_pad, b_pad)

    # Slice away row/lane padding, back to NCHW to match the PyTorch module.
    out_nhwc = out2d[:M, :Cout].reshape(N, OH, OW, Cout)
    return jnp.transpose(out_nhwc, (0, 3, 1, 2))


def _reference(x_nchw, w_pt, bias):
    """Pure-JAX reference: transposed conv (stride 1, pad 0) + leaky select."""
    N, Cin, H, W = x_nchw.shape
    _, Cout, K, _ = w_pt.shape
    x_nhwc = jnp.transpose(x_nchw, (0, 2, 3, 1))
    w_hwio = jnp.transpose(w_pt[:, :, ::-1, ::-1], (2, 3, 0, 1))
    y = jax.lax.conv_general_dilated(
        x_nhwc, w_hwio, window_strides=(1, 1),
        padding=[(K - 1, K - 1), (K - 1, K - 1)],
        dimension_numbers=("NHWC", "HWIO", "NHWC"),
        precision=jax.lax.Precision.HIGHEST)
    y = y + bias.reshape(1, 1, 1, Cout)
    y = jnp.where(y > 0, y, y * NEG_SLOPE)
    return jnp.transpose(y, (0, 3, 1, 2))


if __name__ == "__main__":
    key = jax.random.PRNGKey(0)
    kx, kw, kb = jax.random.split(key, 3)

    # Small shapes consistent with the module: Cin=35, Cout=48, K=4.
    N, Cin, H, W = 2, 35, 8, 6
    Cout, K = 48, 4

    x = jax.random.normal(kx, (N, Cin, H, W), dtype=jnp.float32)
    # Deterministic parameter init (PyTorch-style uniform bound).
    bound = 1.0 / (Cin * K * K) ** 0.5
    w_pt = jax.random.uniform(kw, (Cin, Cout, K, K), jnp.float32, -bound, bound)
    bias = jax.random.uniform(kb, (Cout,), jnp.float32, -bound, bound)

    w_pad, b_pad = prepare_weights(w_pt, bias)        # one-time param fold
    out = jax.block_until_ready(conv_transpose_leaky(x, w_pad, b_pad, K, Cout))
    ref = jax.block_until_ready(_reference(x, w_pt, bias))

    assert out.shape == (N, Cout, H + K - 1, W + K - 1), out.shape
    max_err = float(jnp.max(jnp.abs(out - ref)))
    assert jnp.allclose(out, ref, atol=1e-4, rtol=1e-4), max_err
    print("KERNEL_OK")
</pallas_src>

<mosaic_0001>
module attributes {stable_mosaic.version = 11 : i64} {
  func.func @_matmul_bias_leaky_kernel(%arg0: i32, %arg1: memref<128x640xf32, #tpu.memory_space<vmem>>, %arg2: memref<640x128xf32, #tpu.memory_space<vmem>>, %arg3: memref<1x128xf32, #tpu.memory_space<vmem>>, %arg4: memref<128x128xf32, #tpu.memory_space<vmem>>) attributes {dimension_semantics = [#tpu.dimension_semantics<parallel>], iteration_bounds = array<i64: 2>, scalar_prefetch = 0 : i64, scratch_operands = 0 : i64, tpu.core_type = #tpu.core_type<tc>, window_params = [{transform_indices = @transform_0, window_bounds = array<i64: 128, 640>}, {pipeline_mode = #tpu.pipeline_mode<synchronous>, transform_indices = @transform_1, window_bounds = array<i64: 640, 128>}, {pipeline_mode = #tpu.pipeline_mode<synchronous>, transform_indices = @transform_2, window_bounds = array<i64: 1, 128>}, {transform_indices = @transform_3, window_bounds = array<i64: 128, 128>}]} {
    %c0 = arith.constant 0 : index
    %c0_0 = arith.constant 0 : index
    %0 = vector.load %arg1[%c0, %c0_0] : memref<128x640xf32, #tpu.memory_space<vmem>>, vector<128x640xf32>
    %c0_1 = arith.constant 0 : index
    %c0_2 = arith.constant 0 : index
    %1 = vector.load %arg2[%c0_1, %c0_2] : memref<640x128xf32, #tpu.memory_space<vmem>>, vector<640x128xf32>
    %cst = arith.constant dense<0.000000e+00> : vector<128x128xf32>
    %2 = tpu.matmul %0, %1, %cst {dimension_numbers = #tpu.dot_dimension_numbers<[1], [0], [0], [1], [0, 0, 1, 1], [], []>, precision = #tpu.contract_precision<fp32>} : vector<128x640xf32>, vector<640x128xf32>, vector<128x128xf32> -> vector<128x128xf32>
    %c0_3 = arith.constant 0 : index
    %c0_4 = arith.constant 0 : index
    %3 = vector.load %arg3[%c0_3, %c0_4] : memref<1x128xf32, #tpu.memory_space<vmem>>, vector<1x128xf32>
    %4 = vector.broadcast %3 : vector<1x128xf32> to vector<128x128xf32>
    %5 = arith.addf %2, %4 : vector<128x128xf32>
    %cst_5 = arith.constant 0.000000e+00 : f32
    %6 = vector.broadcast %cst_5 : f32 to vector<128x128xf32>
    %7 = arith.cmpf ogt, %5, %6 : vector<128x128xf32>
    %cst_6 = arith.constant 1.957200e+00 : f32
    %8 = vector.broadcast %cst_6 : f32 to vector<128x128xf32>
    %9 = arith.mulf %5, %8 : vector<128x128xf32>
    %10 = arith.select %7, %5, %9 : vector<128x128xi1>, vector<128x128xf32>
    %c0_7 = arith.constant 0 : index
    %c0_8 = arith.constant 0 : index
    %11 = vector.load %arg4[%c0_7, %c0_8] : memref<128x128xf32, #tpu.memory_space<vmem>>, vector<128x128xf32>
    tpu.vector_store %arg4[%c0_7, %c0_8], %10 {strides = array<i32>} : memref<128x128xf32, #tpu.memory_space<vmem>>, vector<128x128xf32>,
    return
  }
  func.func @transform_0(%arg0: i32) -> (i32, i32) {
    %c0_i32 = arith.constant 0 : i32
    %c0_i32_0 = arith.constant 0 : i32
    return %arg0, %c0_i32 : i32, i32
  }
  func.func @transform_1(%arg0: i32) -> (i32, i32) {
    %c0_i32 = arith.constant 0 : i32
    %c0_i32_0 = arith.constant 0 : i32
    %c0_i32_1 = arith.constant 0 : i32
    return %c0_i32, %c0_i32_0 : i32, i32
  }
  func.func @transform_2(%arg0: i32) -> (i32, i32) {
    %c0_i32 = arith.constant 0 : i32
    %c0_i32_0 = arith.constant 0 : i32
    %c0_i32_1 = arith.constant 0 : i32
    return %c0_i32, %c0_i32_0 : i32, i32
  }
  func.func @transform_3(%arg0: i32) -> (i32, i32) {
    %c0_i32 = arith.constant 0 : i32
    %c0_i32_0 = arith.constant 0 : i32
    return %arg0, %c0_i32 : i32, i32
  }
}

</mosaic_0001>

<bundles_post_ra>
// kernel: conv_transpose_leaky.1
= control target key start
LH: loop header
LB: loop body
LE: loop exit
PB: predicated region body
PF: predicated region fallthrough
CT: control target
= control target key end

     0   :  { %s7379_s12 = smov 0   ;;  %s11050_s0 = inlined_call_operand.vmem [shape: f32[256,640], index: 0, kind: input, shape index: {}]   ;;  %s11051_s1 = inlined_call_operand.vmem [shape: f32[640,128], index: 1, kind: input, shape index: {}]   ;;  %s11052_s2 = inlined_call_operand.vmem [shape: f32[1,128], index: 2, kind: input, shape index: {}]   ;;  %s11053_s3 = inlined_call_operand.vmem [shape: f32[256,128], index: 3, kind: output, shape index: {}]  }
   0x1 LB: > { %s5154_s13 = sadd.s32 4294967295, %s7357_s12   ;;  %p5158_p0 = scmp.ge.s32.totalorder %s7357_s12, 1  ;;  %s7357_s12 = sphi %s7379_s12, %s13_s12  }
   0x2   : > { %p139_p1 = scmp.lt.s32.totalorder %s7357_s12, 3 }
   0x4   : > { %p140_p2 = pnand %p5158_p0, %p139_p1 }
   0x6   : > { %143 = sbr.rel (%p140_p2) target bundleno = 784 (0x310), region = 32 }
   0xd   : > { %v273_v0 = vld [vmem:[%s11051_s1 + $0x80] sm:$0xff]  ;;  %v274_v1 = vld [vmem:[%s11051_s1 + $0x88] sm:$0xff]  ;;  %v275_v7 = vld [vmem:[%s11051_s1 + $0x90] sm:$0xff]  ;;  %s7422_s5 = sshll.u32 %s5154_s13, 4 }
   0xe   : > { %v257_v2 = vld [vmem:[%s11051_s1] sm:$0xff]  ;;  %v393_v3 = vand.u32 4294901760, %v273_v0  ;;  %v396_v4 = vand.u32 4294901760, %v274_v1  ;;  %v258_v5 = vld [vmem:[%s11051_s1 + $0x8] sm:$0xff]  ;;  %v276_v8 = vld [vmem:[%s11051_s1 + $0x98] sm:$0xff]  ;;  %v399_v10 = vand.u32 4294901760, %v275_v7 }
   0xf   : > { %v345_v6 = vand.u32 4294901760, %v257_v2  ;;  %v348_v9 = vand.u32 4294901760, %v258_v5  ;;  %v402_v11 = vand.u32 4294901760, %v276_v8  ;;  %v259_v12 = vld [vmem:[%s11051_s1 + $0x10] sm:$0xff]  ;;  %v260_v17 = vld [vmem:[%s11051_s1 + $0x18] sm:$0xff]  ;;  %v277_v18 = vld [vmem:[%s11051_s1 + $0xa0] sm:$0xff] }
  0x10   : > { %v7408_v13 = vpack.c.bf16 %v396_v4, %v393_v3  ;;  %v7410_v14 = vsub.f32 %v273_v0, %v393_v3  ;;  %v7412_v15 = vsub.f32 %v274_v1, %v396_v4  ;;  %v7430_v22 = vsub.f32 %v275_v7, %v399_v10  ;;  %v278_v23 = vld [vmem:[%s11051_s1 + $0xa8] sm:$0xff]  ;;  %v261_v24 = vld [vmem:[%s11051_s1 + $0x20] sm:$0xff]  ;;  %v279_v34 = vld [vmem:[%s11051_s1 + $0xb0] sm:$0xff]  ;;  %p165_p3 = scmp.lt.s32.totalorder %s7422_s5, 31 }
  0x11   : > { %v7414_v16 = vsub.f32 %v257_v2, %v345_v6  ;;  %v7424_v19 = vpack.c.bf16 %v348_v9, %v345_v6  ;;  %v7426_v20 = vsub.f32 %v258_v5, %v348_v9  ;;  %v7428_v21 = vpack.c.bf16 %v402_v11, %v399_v10  ;;  %v262_v29 = vld [vmem:[%s11051_s1 + $0x28] sm:$0xff]  ;;  %v280_v39 = vld [vmem:[%s11051_s1 + $0xb8] sm:$0xff]  ;;  %v263_v44 = vld [vmem:[%s11051_s1 + $0x30] sm:$0xff] }
  0x12   : > { %11538 = vst [vmem:[#allocation2_spill] sm:$0xff] %v7408_v13  ;;  %6655 = vmatprep.subr.bf16.mxu1 %v7408_v13  ;;  %v7441_v25 = vpack.c.bf16 %v7412_v15, %v7410_v14  ;;  %v7444_v27 = vsub.f32 %v276_v8, %v402_v11  ;;  %v351_v28 = vand.u32 4294901760, %v259_v12  ;;  %v354_v32 = vand.u32 4294901760, %v260_v17  ;;  %v264_v45 = vld [vmem:[%s11051_s1 + $0x38] sm:$0xff]  ;;  %v281_v50 = vld [vmem:[%s11051_s1 + $0xc0] sm:$0xff]  ;;  %v282_v55 = vld [vmem:[%s11051_s1 + $0xc8] sm:$0xff] }
  0x13   : > { %11539 = vst [vmem:[#allocation3_spill] sm:$0xff] %v7424_v19  ;;  %11540 = vst [vmem:[#allocation4_spill] sm:$0xff] %v7428_v21  ;;  %6657 = vmatpush3.bf16.msra.mxu1 %v7424_v19  ;;  %v7453_v31 = vpack.c.bf16 %v7426_v20, %v7414_v16  ;;  %v405_v33 = vand.u32 4294901760, %v277_v18  ;;  %v408_v37 = vand.u32 4294901760, %v278_v23  ;;  %v357_v38 = vand.u32 4294901760, %v261_v24  ;;  %s12589_s5 = smov (!%p165_p3, %s7422_s5), 31 }
  0x14   : > { %6719 = vmatprep.subr.bf16.mxu0 %v7441_v25  ;;  %6659 = vmatprep.subr.bf16.mxu1 %v7428_v21  ;;  %v7461_v35 = vsub.f32 %v259_v12, %v351_v28  ;;  %v7465_v36 = vpack.c.bf16 %v7444_v27, %v7430_v22  ;;  %v7471_v40 = vpack.c.bf16 %v354_v32, %v351_v28  ;;  %v360_v43 = vand.u32 4294901760, %v262_v29  ;;  %v265_v60 = vld [vmem:[%s11051_s1 + $0x40] sm:$0xff]  ;;  %v266_v61 = vld [vmem:[%s11051_s1 + $0x48] sm:$0xff]  ;;  %v283_v2 = vld [vmem:[%s11051_s1 + $0xd0] sm:$0xff]  ;;  %s7342_s11 = smul.u32 40, %s12589_s5 }
  0x15   : > { %6721 = vmatpush3.bf16.msra.mxu0 %v7453_v31  ;;  %v7473_v41 = vsub.f32 %v260_v17, %v354_v32  ;;  %v7475_v42 = vsub.f32 %v277_v18, %v405_v33  ;;  %v7484_v46 = vpack.c.bf16 %v408_v37, %v405_v33  ;;  %v7486_v47 = vsub.f32 %v278_v23, %v408_v37  ;;  %v284_v7 = vld [vmem:[%s11051_s1 + $0xd8] sm:$0xff]  ;;  %v267_v12 = vld [vmem:[%s11051_s1 + $0x50] sm:$0xff] }
  0x16   : > { %11541 = vst [vmem:[#allocation5_spill] sm:$0xff] %v7471_v40  ;;  %6723 = vmatprep.subr.bf16.mxu0 %v7465_v36  ;;  %v7488_v48 = vsub.f32 %v261_v24, %v357_v38  ;;  %v411_v49 = vand.u32 4294901760, %v279_v34  ;;  %v7498_v52 = vpack.c.bf16 %v360_v43, %v357_v38  ;;  %v7500_v53 = vsub.f32 %v262_v29, %v360_v43  ;;  %v268_v17 = vld [vmem:[%s11051_s1 + $0x58] sm:$0xff]  ;;  %v285_v29 = vld [vmem:[%s11051_s1 + $0xe0] sm:$0xff]  ;;  %v286_v38 = vld [vmem:[%s11051_s1 + $0xe8] sm:$0xff]  ;;  %s7609_s25 = scalar_lea.vmem %s11050_s0, %s7342_s11 }
  0x17   : > { %11542 = vst [vmem:[#allocation6_spill] sm:$0xff] %v7484_v46  ;;  %6661 = vmatpush3.bf16.msra.mxu1 %v7471_v40  ;;  %v7496_v51 = vpack.c.bf16 %v7473_v41, %v7461_v35  ;;  %v414_v54 = vand.u32 4294901760, %v280_v39  ;;  %v7513_v56 = vpack.c.bf16 %v7486_v47, %v7475_v42  ;;  %v363_v58 = vand.u32 4294901760, %v263_v44  ;;  %v178_v26 = vld [vmem:[%s7609_s25 + $0x8] sm:$0xff] }
  0x18   : > { %11543 = vst [vmem:[#allocation7_spill] sm:$0xff] %v7498_v52  ;;  %6663 = vmatprep.subr.bf16.mxu1 %v7484_v46  ;;  %v7515_v57 = vsub.f32 %v279_v34, %v411_v49  ;;  %v366_v59 = vand.u32 4294901760, %v264_v45  ;;  %v7526_v62 = vpack.c.bf16 %v7500_v53, %v7488_v48  ;;  %v417_v1 = vand.u32 4294901760, %v281_v50  ;;  %v177_v46 = vld [vmem:[%s7609_s25] sm:$0xff] }
  0x19   : > { %11544 = vst [vmem:[#allocation8_spill] sm:$0xff] %v7513_v56  ;;  %6725 = vmatpush3.bf16.msra.mxu0 %v7496_v51  ;;  %v7528_v63 = vpack.c.bf16 %v414_v54, %v411_v49  ;;  %v7530_v0 = vsub.f32 %v280_v39, %v414_v54  ;;  %v7538_v4 = vsub.f32 %v263_v44, %v363_v58  ;;  %v420_v6 = vand.u32 4294901760, %v282_v55  ;;  %v269_v49 = vld [vmem:[%s11051_s1 + $0x60] sm:$0xff] }
  0x1a   : > { %11545 = vst [vmem:[#allocation9_spill] sm:$0xff] %v7526_v62  ;;  %6727 = vmatprep.subr.bf16.mxu0 %v7513_v56  ;;  %v7536_v3 = vpack.c.bf16 %v366_v59, %v363_v58  ;;  %v7540_v5 = vsub.f32 %v264_v45, %v366_v59  ;;  %v7550_v9 = vsub.f32 %v281_v50, %v417_v1  ;;  %v369_v10 = vand.u32 4294901760, %v265_v60  ;;  %v270_v50 = vld [vmem:[%s11051_s1 + $0x68] sm:$0xff] }
  0x1b   : > { %11546 = vst [vmem:[#allocation10_spill] sm:$0xff] %v7528_v63  ;;  %6665 = vmatpush3.bf16.msra.mxu1 %v7498_v52  ;;  %v7548_v8 = vpack.c.bf16 %v7530_v0, %v7515_v57  ;;  %v372_v11 = vand.u32 4294901760, %v266_v61  ;;  %v7564_v23 = vpack.c.bf16 %v420_v6, %v417_v1  ;;  %v7566_v24 = vsub.f32 %v282_v55, %v420_v6 }
  0x1c   : > { %11547 = vst [vmem:[#allocation11_spill] sm:$0xff] %v7536_v3  ;;  %6667 = vmatprep.subr.bf16.mxu1 %v7528_v63  ;;  %v7562_v18 = vpack.c.bf16 %v7540_v5, %v7538_v4  ;;  %v423_v28 = vand.u32 4294901760, %v283_v2  ;;  %v7574_v33 = vsub.f32 %v265_v60, %v369_v10  ;;  %v426_v37 = vand.u32 4294901760, %v284_v7  ;;  %v287_v60 = vld [vmem:[%s11051_s1 + $0xf0] sm:$0xff] }
  0x1d   : > { %11548 = vst [vmem:[#allocation12_spill] sm:$0xff] %v7548_v8  ;;  %11550 = vst [vmem:[#allocation14_spill] sm:$0xff] %v7564_v23  ;;  %6729 = vmatpush3.bf16.msra.mxu0 %v7526_v62  ;;  %v7572_v32 = vpack.c.bf16 %v372_v11, %v369_v10  ;;  %v7576_v34 = vsub.f32 %v266_v61, %v372_v11  ;;  %v7584_v39 = vpack.c.bf16 %v7566_v24, %v7550_v9  ;;  %v188_v62 = vld [vmem:[%s7609_s25 + $0x58] sm:$0xff] }
  0x1e   : > { %11549 = vst [vmem:[#allocation13_spill] sm:$0xff] %v7562_v18  ;;  %6731 = vmatprep.subr.bf16.mxu0 %v7548_v8  ;;  %v7586_v43 = vsub.f32 %v283_v2, %v423_v28  ;;  %v375_v44 = vand.u32 4294901760, %v267_v12  ;;  %v378_v45 = vand.u32 4294901760, %v268_v17  ;;  %v7599_v55 = vpack.c.bf16 %v426_v37, %v423_v28 }
  0x1f   : > { %11551 = vst [vmem:[#allocation15_spill] sm:$0xff] %v7572_v32  ;;  %11552 = vst [vmem:[#allocation16_spill] sm:$0xff] %v7584_v39  ;;  %6669 = vmatpush3.bf16.msra.mxu1 %v7536_v3  ;;  %v7597_v54 = vpack.c.bf16 %v7576_v34, %v7574_v33  ;;  %v7601_v58 = vsub.f32 %v284_v7, %v426_v37  ;;  %v429_v59 = vand.u32 4294901760, %v285_v29  ;;  %v432_v6 = vand.u32 4294901760, %v286_v38  ;;  %v288_v7 = vld [vmem:[%s11051_s1 + $0xf8] sm:$0xff] }
  0x20   : > { %11554 = vst [vmem:[#allocation18_spill] sm:$0xff] %v7599_v55  ;;  %6671 = vmatprep.subr.bf16.mxu1 %v7564_v23  ;;  %v7612_v61 = vpack.c.bf16 %v378_v45, %v375_v44  ;;  %v7614_v1 = vsub.f32 %v267_v12, %v375_v44  ;;  %v7616_v2 = vsub.f32 %v268_v17, %v378_v45  ;;  %v381_v28 = vand.u32 4294901760, %v269_v49  ;;  %v271_v17 = vld [vmem:[%s11051_s1 + $0x70] sm:$0xff]  ;;  %v272_v37 = vld [vmem:[%s11051_s1 + $0x78] sm:$0xff] }
  0x21   : > { %11553 = vst [vmem:[#allocation17_spill] sm:$0xff] %v7597_v54  ;;  %6733 = vmatpush3.bf16.msra.mxu0 %v7562_v18  ;;  %v7624_v10 = vpack.c.bf16 %v7601_v58, %v7586_v43  ;;  %v7626_v11 = vsub.f32 %v285_v29, %v429_v59  ;;  %v384_v12 = vand.u32 4294901760, %v270_v50  ;;  %v7639_v45 = vpack.c.bf16 %v432_v6, %v429_v59 }
  0x22   : > { %11555 = vst [vmem:[#allocation19_spill] sm:$0xff] %v7612_v61  ;;  %6735 = vmatprep.subr.bf16.mxu0 %v7584_v39  ;;  %v7637_v44 = vpack.c.bf16 %v7616_v2, %v7614_v1  ;;  %v7641_v29 = vsub.f32 %v286_v38, %v432_v6  ;;  %v435_v30 = vand.u32 4294901760, %v287_v60  ;;  %v7647_v3 = vsub.f32 %v269_v49, %v381_v28  ;;  %v182_v39 = vld [vmem:[%s7609_s25 + $0x28] sm:$0xff] }
  0x23   : > { %11556 = vst [vmem:[#allocation20_spill] sm:$0xff] %v7624_v10  ;;  %11558 = vst [vmem:[#allocation22_spill] sm:$0xff] %v7639_v45  ;;  %6673 = vmatpush3.bf16.msra.mxu1 %v7572_v32  ;;  %v7645_v23 = vpack.c.bf16 %v384_v12, %v381_v28  ;;  %v7649_v63 = vsub.f32 %v270_v50, %v384_v12  ;;  %v438_v52 = vand.u32 4294901760, %v288_v7  ;;  %v387_v6 = vand.u32 4294901760, %v271_v17 }
  0x24   : > { %11557 = vst [vmem:[#allocation21_spill] sm:$0xff] %v7637_v44  ;;  %6675 = vmatprep.subr.bf16.mxu1 %v7599_v55  ;;  %v7655_v59 = vpack.c.bf16 %v7641_v29, %v7626_v11  ;;  %v7657_v38 = vsub.f32 %v287_v60, %v435_v30  ;;  %v390_v40 = vand.u32 4294901760, %v272_v37  ;;  %v7668_v12 = vand.u32 4294901760, %v178_v26 }
  0x25   : > { %11559 = vst [vmem:[#allocation23_spill] sm:$0xff] %v7645_v23  ;;  %6737 = vmatpush3.bf16.msra.mxu0 %v7597_v54  ;;  %v7662_v49 = vpack.c.bf16 %v7649_v63, %v7647_v3  ;;  %v7664_v50 = vpack.c.bf16 %v438_v52, %v435_v30  ;;  %v7666_v28 = vsub.f32 %v288_v7, %v438_v52  ;;  %v7677_v21 = vand.u32 4294901760, %v177_v46 }
  0x26   : > { %11560 = vst [vmem:[#allocation24_spill] sm:$0xff] %v7655_v59  ;;  %11563 = vst [vmem:[#allocation27_spill] sm:$0xff] %v7668_v12  ;;  %6739 = vmatprep.subr.bf16.mxu0 %v7624_v10  ;;  %v7671_v55 = vpack.c.bf16 %v390_v40, %v387_v6  ;;  %v7673_v60 = vsub.f32 %v271_v17, %v387_v6  ;;  %v7675_v32 = vsub.f32 %v272_v37, %v390_v40  ;;  %v183_v17 = vld [vmem:[%s7609_s25 + $0x30] sm:$0xff] }
  0x27   : > { %11561 = vst [vmem:[#allocation25_spill] sm:$0xff] %v7662_v49  ;;  %11562 = vst [vmem:[#allocation26_spill] sm:$0xff] %v7664_v50  ;;  %6677 = vmatpush3.bf16.msra.mxu1 %v7612_v61  ;;  %v7682_v30 = vpack.c.bf16 %v7666_v28, %v7657_v38  ;;  %v7685_v52 = vsub.f32 %v178_v26, %v7668_v12  ;;  %v796_v7 = vand.u32 4294901760, %v7410_v14  ;;  %v803_v19 = vand.u32 4294901760, %v7412_v15 }
  0x28   : > { %11564 = vst [vmem:[#allocation28_spill] sm:$0xff] %v7671_v55  ;;  %11565 = vst [vmem:[#allocation29_spill] sm:$0xff] %v7677_v21  ;;  %6679 = vmatprep.subr.bf16.mxu1 %v7639_v45  ;;  %v7693_v40 = vpack.c.bf16 %v7675_v32, %v7673_v60  ;;  %v7696_v37 = vsub.f32 %v177_v46, %v7677_v21  ;;  %v11570_v6 = vand.u32 4294901760, %v7414_v16  ;;  %v11571_v26 = vand.u32 4294901760, %v7426_v20 }
  0x29   : > { %11566 = vst [vmem:[#allocation30_spill] sm:$0xff] %v7682_v30  ;;  %11567 = vst [vmem:[#allocation31_spill] sm:$0xff] %v7685_v52  ;;  %6741 = vmatpush3.bf16.msra.mxu0 %v7637_v44  ;;  %v11092_v10 = vand.u32 4294901760, %v7685_v52  ;;  %v797_v45 = vsub.f32 %v7410_v14, %v796_v7  ;;  %v804_v54 = vsub.f32 %v7412_v15, %v803_v19  ;;  %1148 = vmatprep.mubr.f32.mxu0 %v7685_v52 }
  0x2a   : > { %11568 = vst [vmem:[#allocation32_spill] sm:$0xff] %v7693_v40  ;;  %11569 = vst [vmem:[#allocation33_spill] sm:$0xff] %v7696_v37  ;;  %v685_v61 = vsub.f32 %v7414_v16, %v11570_v6  ;;  %v692_v13 = vsub.f32 %v7426_v20, %v11571_v26  ;;  %v6782_v46 = vpack.c.bf16 %v803_v19, %v796_v7  ;;  %6743 = vmatprep.subr.bf16.mxu0 %v7655_v59 }
  0x2b   : > { %v11091_v6 = vand.u32 4294901760, %v7696_v37  ;;  %v7712_v8 = vand.u32 4294901760, %v183_v17  ;;  %6681 = vmatpush3.bf16.msra.mxu1 %v7645_v23  ;;  %v443_v14 = vsub.f32 %v7685_v52, %v11092_v10  ;;  %v798_v15 = vand.u32 4294901760, %v797_v45  ;;  %v187_v45 = vld [vmem:[%s7609_s25 + $0x50] sm:$0xff] }
  0x2c   : > { %v686_v18 = vand.u32 4294901760, %v685_v61  ;;  %v693_v26 = vand.u32 4294901760, %v692_v13  ;;  %v805_v44 = vand.u32 4294901760, %v804_v54  ;;  %v11573_v19 = vand.u32 4294901760, %v7414_v16  ;;  %6683 = vmatprep.subr.bf16.mxu1 %v7664_v50 }
  0x2d   : > { %11572 = vst [vmem:[#allocation34_spill] sm:$0xff] %v7712_v8  ;;  %v11574_v7 = vand.u32 4294901760, %v7426_v20  ;;  %v449_v13 = vsub.f32 %v7696_v37, %v11091_v6  ;;  %v7728_v23 = vsub.f32 %v183_v17, %v7712_v8  ;;  %v7730_v56 = vand.u32 4294901760, %v182_v39  ;;  %6745 = vmatpush3.bf16.msra.mxu0 %v7662_v49 }
  0x2e   : > { %v6688_v61 = vpack.c.bf16 %v693_v26, %v686_v18  ;;  %v444_v16 = vand.u32 4294901760, %v443_v14  ;;  %v6686_v54 = vpack.c.bf16 %v805_v44, %v798_v15  ;;  %v810_v20 = vand.u32 4294901760, %v7430_v22  ;;  %6747 = vmatprep.subr.bf16.mxu0 %v7682_v30 }
  0x2f   : > { %v6784_v59 = vpack.c.bf16 %v11574_v7, %v11573_v19  ;;  %11575 = vst [vmem:[#allocation35_spill] sm:$0xff] %v7728_v23  ;;  %11576 = vst [vmem:[#allocation36_spill] sm:$0xff] %v7730_v56  ;;  %v817_v19 = vand.u32 4294901760, %v7444_v27  ;;  %v450_v7 = vand.u32 4294901760, %v449_v13  ;;  %v11098_v6 = vand.u32 4294901760, %v7728_v23  ;;  %6685 = vmatpush3.bf16.msra.mxu1 %v7671_v55 }
  0x30   : > { %v7739_v18 = vsub.f32 %v182_v39, %v7730_v56  ;;  %v7741_v17 = vand.u32 4294901760, %v188_v62  ;;  %445 = vmatprep.mubr.f32.mxu1 %v444_v16  ;;  %v698_v44 = vand.u32 4294901760, %v7461_v35  ;;  %v705_v14 = vand.u32 4294901760, %v7473_v41  ;;  %6687 = vmatprep.subr.bf16.mxu1 %v6686_v54 }
  0x31   : > { %v6786_v26 = vpack.c.bf16 %v817_v19, %v810_v20  ;;  %v7746_v15 = vand.u32 4294901760, %v187_v45  ;;  %v458_v13 = vsub.f32 %v7728_v23, %v11098_v6  ;;  %v811_v16 = vsub.f32 %v7430_v22, %v810_v20  ;;  %6749 = vmatpush3.bf16.msra.mxu0 %v7693_v40  ;;  %v193_v40 = vld [vmem:[%s7609_s25 + $0x80] sm:$0xff] }
  0x32   : > { %11577 = vst [vmem:[#allocation37_spill] sm:$0xff] %v7739_v18  ;;  %11578 = vst [vmem:[#allocation38_spill] sm:$0xff] %v7741_v17  ;;  %v11102_v39 = vand.u32 4294901760, %v7739_v18  ;;  %v7753_v10 = vsub.f32 %v188_v62, %v7741_v17  ;;  %v6788_v52 = vpack.c.bf16 %v705_v14, %v698_v44  ;;  %v818_v54 = vsub.f32 %v7444_v27, %v817_v19 }
  0x33   : > { %11579 = vst [vmem:[#allocation39_spill] sm:$0xff] %v7746_v15  ;;  %v7758_v55 = vsub.f32 %v187_v45, %v7746_v15  ;;  %v699_v50 = vsub.f32 %v7461_v35, %v698_v44  ;;  %451 = vmatmul.mubr.f32.vlgmr.msra.gmra.mrb[0].mxu1 %v450_v7  ;;  %6783 = vmatprep.subr.bf16.mxu0 %v6782_v46  ;;  %v459_v6 = vand.u32 4294901760, %v458_v13  ;;  %v812_v20 = vand.u32 4294901760, %v811_v16  ;;  %v198_v13 = vld [vmem:[%s7609_s25 + $0xa8] sm:$0xff] }
  0x34   : > { %11580 = vst [vmem:[#allocation40_spill] sm:$0xff] %v7753_v10  ;;  %v464_v62 = vsub.f32 %v7739_v18, %v11102_v39  ;;  %v11101_v22 = vand.u32 4294901760, %v7753_v10  ;;  %6689 = vmatpush3.bf16.msra.mxu1 %v6688_v61  ;;  %v819_v30 = vand.u32 4294901760, %v818_v54  ;;  %v706_v35 = vsub.f32 %v7473_v41, %v705_v14  ;;  %1151 = vmatmul.mubr.f32.vlgmr.msra.gmra.mrb[0].mxu0 %v7696_v37  ;;  %v192_v61 = vld [vmem:[%s7609_s25 + $0x78] sm:$0xff] }
  0x35   : > { %11581 = vst [vmem:[#allocation41_spill] sm:$0xff] %v7758_v55  ;;  %v11104_v45 = vand.u32 4294901760, %v7758_v55  ;;  %v700_v27 = vand.u32 4294901760, %v699_v50  ;;  %460 = vmatprep.mubr.f32.mxu1 %v459_v6  ;;  %v824_v7 = vand.u32 4294901760, %v7475_v42  ;;  %v831_v44 = vand.u32 4294901760, %v7486_v47  ;;  %6785 = vmatpush3.bf16.msra.mxu0 %v6784_v59 }
  0x36   : > { %v465_v46 = vand.u32 4294901760, %v464_v62  ;;  %v473_v19 = vsub.f32 %v7753_v10, %v11101_v22  ;;  %1157 = vmatprep.mubr.f32.mxu0 %v7728_v23  ;;  %v6690_v50 = vpack.c.bf16 %v819_v30, %v812_v20  ;;  %v707_v6 = vand.u32 4294901760, %v706_v35  ;;  %6787 = vmatprep.subr.bf16.mxu0 %v6786_v26  ;;  %v197_v30 = vld [vmem:[%s7609_s25 + $0xa0] sm:$0xff] }
  0x37   : > { %v479_v41 = vsub.f32 %v7758_v55, %v11104_v45  ;;  %v7780_v14 = vand.u32 4294901760, %v193_v40  ;;  %v6790_v54 = vpack.c.bf16 %v831_v44, %v824_v7  ;;  %v712_v62 = vand.u32 4294901760, %v7488_v48 }
  0x38   : > { %466 = vmatmul.mubr.f32.gmra.mrb[2].mxu1 %v465_v46  ;;  %v474_v16 = vand.u32 4294901760, %v473_v19  ;;  %v719_v59 = vand.u32 4294901760, %v7500_v53  ;;  %6691 = vmatprep.subr.bf16.mxu1 %v6690_v50  ;;  %v6692_v39 = vpack.c.bf16 %v707_v6, %v700_v27  ;;  %v7788_v45 = vand.u32 4294901760, %v192_v61 }
  0x39   : > { %11582 = vst [vmem:[#allocation42_spill] sm:$0xff] %v7780_v14  ;;  %v480_v22 = vand.u32 4294901760, %v479_v41  ;;  %v7786_v23 = vsub.f32 %v193_v40, %v7780_v14  ;;  %1160 = vmatmul.mubr.f32.gmra.mrb[2].mxu0 %v7739_v18  ;;  %v11107_v26 = vand.u32 4294901760, %v7515_v57  ;;  %v11105_v35 = vand.u32 4294901760, %v7530_v0 }
  0x3a   : > { %11584 = vst [vmem:[#allocation44_spill] sm:$0xff] %v7788_v45  ;;  %475 = vmatprep.mubr.f32.mxu1 %v474_v16  ;;  %v6792_v20 = vpack.c.bf16 %v719_v59, %v712_v62  ;;  %v7794_v46 = vand.u32 4294901760, %v198_v13  ;;  %6789 = vmatpush3.bf16.msra.mxu0 %v6788_v52  ;;  %v7798_v40 = vsub.f32 %v192_v61, %v7788_v45  ;;  %v11111_v19 = vand.u32 4294901760, %v7538_v4 }
  0x3b   : > { %11583 = vst [vmem:[#allocation43_spill] sm:$0xff] %v7786_v23  ;;  %6693 = vmatpush3.bf16.msra.mxu1 %v6692_v39  ;;  %v11106_v27 = vand.u32 4294901760, %v7786_v23  ;;  %v11108_v41 = vand.u32 4294901760, %v7540_v5  ;;  %1166 = vmatprep.mubr.f32.mxu0 %v7753_v10  ;;  %v6794_v50 = vpack.c.bf16 %v11105_v35, %v11107_v26  ;;  %v7810_v39 = vand.u32 4294901760, %v197_v30 }
  0x3c   : > { %11585 = vst [vmem:[#allocation45_spill] sm:$0xff] %v7794_v46  ;;  %11586 = vst [vmem:[#allocation46_spill] sm:$0xff] %v7798_v40  ;;  %481 = vmatmul.mubr.f32.gmra.mrb[4].mxu1 %v480_v22  ;;  %v7808_v52 = vsub.f32 %v198_v13, %v7794_v46  ;;  %v825_v61 = vsub.f32 %v7475_v42, %v824_v7  ;;  %6791 = vmatprep.subr.bf16.mxu0 %v6790_v54  ;;  %v11109_v6 = vand.u32 4294901760, %v7798_v40 }
  0x3d   : > { %11588 = vst [vmem:[#allocation48_spill] sm:$0xff] %v7810_v39  ;;  %v488_v22 = vsub.f32 %v7786_v23, %v11106_v27  ;;  %v6796_v16 = vpack.c.bf16 %v11108_v41, %v11111_v19  ;;  %v832_v13 = vsub.f32 %v7486_v47, %v831_v44  ;;  %1169 = vmatmul.mubr.f32.gmra.mrb[4].mxu0 %v7758_v55  ;;  %v203_v41 = vld [vmem:[%s7609_s25 + $0xd0] sm:$0xff]  ;;  %v208_v19 = vld [vmem:[%s7609_s25 + $0xf8] sm:$0xff]  ;;  %v11631_v10 = vand.u32 4294901760, %v7616_v2 }
  0x3e   : > { %11587 = vst [vmem:[#allocation47_spill] sm:$0xff] %v7808_v52  ;;  %v11110_v35 = vand.u32 4294901760, %v7808_v52  ;;  %v7825_v42 = vsub.f32 %v197_v30, %v7810_v39  ;;  %v826_v7 = vand.u32 4294901760, %v825_v61  ;;  %v713_v54 = vsub.f32 %v7488_v48, %v712_v62  ;;  %6793 = vmatpush3.bf16.msra.mxu0 %v6792_v20  ;;  %1175 = vmatprep.mubr.f32.mxu0 %v7786_v23  ;;  %v202_v61 = vld [vmem:[%s7609_s25 + $0xc8] sm:$0xff] }
  0x3f   : > { %v489_v27 = vand.u32 4294901760, %v488_v22  ;;  %v494_v26 = vsub.f32 %v7798_v40, %v11109_v6  ;;  %v833_v47 = vand.u32 4294901760, %v832_v13  ;;  %v720_v44 = vsub.f32 %v7500_v53, %v719_v59  ;;  %6795 = vmatprep.subr.bf16.mxu0 %v6794_v50 }
  0x40   : > { %11589 = vst [vmem:[#allocation49_spill] sm:$0xff] %v7825_v42  ;;  %v503_v30 = vsub.f32 %v7808_v52, %v11110_v35  ;;  %v11112_v48 = vand.u32 4294901760, %v7825_v42  ;;  %v714_v62 = vand.u32 4294901760, %v713_v54  ;;  %v11116_v20 = vand.u32 4294901760, %v7550_v9 }
  0x41   : > { %490 = vmatprep.mubr.f32.mxu1 %v489_v27  ;;  %v495_v22 = vand.u32 4294901760, %v494_v26  ;;  %v6694_v6 = vpack.c.bf16 %v833_v47, %v826_v7  ;;  %v721_v13 = vand.u32 4294901760, %v720_v44  ;;  %v11115_v53 = vand.u32 4294901760, %v7566_v24  ;;  %1178 = vmatmul.mubr.f32.gmra.mrb[6].mxu0 %v7798_v40  ;;  %v207_v44 = vld [vmem:[%s7609_s25 + $0xf0] sm:$0xff] }
  0x42   : > { %v504_v59 = vand.u32 4294901760, %v503_v30  ;;  %v509_v50 = vsub.f32 %v7825_v42, %v11112_v48  ;;  %v7845_v35 = vand.u32 4294901760, %v203_v41  ;;  %v11114_v54 = vand.u32 4294901760, %v7574_v33  ;;  %6797 = vmatpush3.bf16.msra.mxu0 %v6796_v16  ;;  %1184 = vmatprep.mubr.f32.mxu0 %v7808_v52 }
  0x43   : > { %496 = vmatmul.mubr.f32.gmra.mrb[6].mxu1 %v495_v22  ;;  %v6696_v26 = vpack.c.bf16 %v721_v13, %v714_v62  ;;  %v6798_v27 = vpack.c.bf16 %v11115_v53, %v11116_v20  ;;  %v11113_v7 = vand.u32 4294901760, %v7576_v34  ;;  %v7854_v47 = vand.u32 4294901760, %v202_v61  ;;  %6695 = vmatprep.subr.bf16.mxu1 %v6694_v6 }
  0x44   : > { %11590 = vst [vmem:[#allocation50_spill] sm:$0xff] %v7845_v35  ;;  %505 = vmatprep.mubr.f32.mxu1 %v504_v59  ;;  %v510_v30 = vand.u32 4294901760, %v509_v50  ;;  %v7858_v48 = vsub.f32 %v203_v41, %v7845_v35  ;;  %v11118_v22 = vand.u32 4294901760, %v7586_v43  ;;  %v11117_v16 = vand.u32 4294901760, %v7601_v58 }
  0x45   : > { %11591 = vst [vmem:[#allocation51_spill] sm:$0xff] %v7854_v47  ;;  %6697 = vmatpush3.bf16.msra.mxu1 %v6696_v26  ;;  %v6800_v62 = vpack.c.bf16 %v11113_v7, %v11114_v54  ;;  %v7868_v13 = vsub.f32 %v202_v61, %v7854_v47  ;;  %v7870_v59 = vand.u32 4294901760, %v208_v19  ;;  %v11121_v41 = vand.u32 4294901760, %v7614_v1  ;;  %1187 = vmatmul.mubr.f32.gmra.mrb[8].mxu0 %v7825_v42 }
  0x46   : > { %11592 = vst [vmem:[#allocation52_spill] sm:$0xff] %v7858_v48  ;;  %6799 = vmatprep.subr.bf16.mxu0 %v6798_v27  ;;  %v11119_v6 = vand.u32 4294901760, %v7858_v48  ;;  %v6802_v50 = vpack.c.bf16 %v11117_v16, %v11118_v22  ;;  %v11120_v26 = vand.u32 4294901760, %v7616_v2  ;;  %v7880_v7 = vand.u32 4294901760, %v207_v44  ;;  %1193 = vmatprep.mubr.f32.mxu0 %v7858_v48 }
  0x47   : > { %11593 = vst [vmem:[#allocation53_spill] sm:$0xff] %v7868_v13  ;;  %11594 = vst [vmem:[#allocation54_spill] sm:$0xff] %v7870_v59  ;;  %511 = vmatmul.mubr.f32.gmra.mrb[8].mxu1 %v510_v30  ;;  %6801 = vmatpush3.bf16.msra.mxu0 %v6800_v62  ;;  %v11122_v61 = vand.u32 4294901760, %v7868_v13  ;;  %v7884_v54 = vsub.f32 %v208_v19, %v7870_v59  ;;  %v11597_v27 = vand.u32 4294901760, %v7515_v57  ;;  %v11598_v20 = vand.u32 4294901760, %v7530_v0 }
  0x48   : > { %11595 = vst [vmem:[#allocation55_spill] sm:$0xff] %v7880_v7  ;;  %v518_v22 = vsub.f32 %v7858_v48, %v11119_v6  ;;  %6803 = vmatprep.subr.bf16.mxu0 %v6802_v50  ;;  %v6804_v19 = vpack.c.bf16 %v11120_v26, %v11121_v41  ;;  %v7901_v30 = vsub.f32 %v207_v44, %v7880_v7  ;;  %v213_v50 = vld [vmem:[%s7609_s25 + $0x120] sm:$0xff]  ;;  %v11600_v44 = vand.u32 4294901760, %v7538_v4  ;;  %v212_v26 = vld [vmem:[%s7609_s25 + $0x118] sm:$0xff] }
  0x49   : > { %11596 = vst [vmem:[#allocation56_spill] sm:$0xff] %v7884_v54  ;;  %v839_v53 = vsub.f32 %v7515_v57, %v11597_v27  ;;  %v846_v16 = vsub.f32 %v7530_v0, %v11598_v20  ;;  %v524_v0 = vsub.f32 %v7868_v13, %v11122_v61  ;;  %v11125_v20 = vand.u32 4294901760, %v7884_v54  ;;  %1196 = vmatmul.mubr.f32.gmra.mrb[10].mxu0 %v7868_v13 }
  0x4a   : > { %11599 = vst [vmem:[#allocation57_spill] sm:$0xff] %v7901_v30  ;;  %v519_v6 = vand.u32 4294901760, %v518_v22  ;;  %v727_v41 = vsub.f32 %v7538_v4, %v11600_v44  ;;  %v11601_v57 = vand.u32 4294901760, %v7540_v5  ;;  %1202 = vmatprep.mubr.f32.mxu0 %v7884_v54  ;;  %v11602_v13 = vand.u32 4294901760, %v7901_v30 }
  0x4b   : > { %v840_v62 = vand.u32 4294901760, %v839_v53  ;;  %v847_v27 = vand.u32 4294901760, %v846_v16  ;;  %v525_v48 = vand.u32 4294901760, %v524_v0  ;;  %v533_v53 = vsub.f32 %v7884_v54, %v11125_v20  ;;  %6805 = vmatpush3.bf16.msra.mxu0 %v6804_v19  ;;  %v218_v0 = vld [vmem:[%s7609_s25 + $0x148] sm:$0xff] }
  0x4c   : > { %v734_v61 = vsub.f32 %v7540_v5, %v11601_v57  ;;  %v11131_v16 = vand.u32 4294901760, %v7641_v29  ;;  %520 = vmatprep.mubr.f32.mxu1 %v519_v6  ;;  %v539_v4 = vsub.f32 %v7901_v30, %v11602_v13  ;;  %v728_v44 = vand.u32 4294901760, %v727_v41 }
  0x4d   : > { %v6698_v22 = vpack.c.bf16 %v847_v27, %v840_v62  ;;  %v7926_v57 = vand.u32 4294901760, %v213_v50  ;;  %526 = vmatmul.mubr.f32.gmra.mrb[10].mxu1 %v525_v48  ;;  %v534_v20 = vand.u32 4294901760, %v533_v53  ;;  %v11604_v19 = vand.u32 4294901760, %v7626_v11  ;;  %1205 = vmatmul.mubr.f32.gmra.mrb[12].mxu0 %v7901_v30  ;;  %v217_v48 = vld [vmem:[%s7609_s25 + $0x140] sm:$0xff]  ;;  %v222_v30 = vld [vmem:[%s7609_s25 + $0x168] sm:$0xff] }
  0x4e   : > { %v735_v5 = vand.u32 4294901760, %v734_v61  ;;  %v11128_v6 = vand.u32 4294901760, %v7647_v3  ;;  %v11127_v27 = vand.u32 4294901760, %v7649_v63  ;;  %v540_v54 = vand.u32 4294901760, %v539_v4 }
  0x4f   : > { %11603 = vst [vmem:[#allocation58_spill] sm:$0xff] %v7926_v57  ;;  %6699 = vmatprep.subr.bf16.mxu1 %v6698_v22  ;;  %v6806_v62 = vpack.c.bf16 %v11131_v16, %v11604_v19  ;;  %v7937_v41 = vsub.f32 %v213_v50, %v7926_v57  ;;  %v7939_v61 = vand.u32 4294901760, %v212_v26  ;;  %535 = vmatprep.mubr.f32.mxu1 %v534_v20  ;;  %v11130_v22 = vand.u32 4294901760, %v7657_v38  ;;  %v223_v16 = vld [vmem:[%s7609_s25 + $0x170] sm:$0xff] }
  0x50   : > { %v6700_v13 = vpack.c.bf16 %v735_v5, %v728_v44  ;;  %v6808_v53 = vpack.c.bf16 %v11127_v27, %v11128_v6  ;;  %v11129_v4 = vand.u32 4294901760, %v7666_v28  ;;  %v7948_v44 = vand.u32 4294901760, %v218_v0 }
  0x51   : > { %11605 = vst [vmem:[#allocation59_spill] sm:$0xff] %v7937_v41  ;;  %11606 = vst [vmem:[#allocation60_spill] sm:$0xff] %v7939_v61  ;;  %6807 = vmatprep.subr.bf16.mxu0 %v6806_v62  ;;  %v11132_v50 = vand.u32 4294901760, %v7937_v41  ;;  %v7952_v5 = vsub.f32 %v212_v26, %v7939_v61  ;;  %1211 = vmatprep.mubr.f32.mxu0 %v7937_v41  ;;  %v11136_v20 = vand.u32 4294901760, %v7673_v60  ;;  %v11135_v19 = vand.u32 4294901760, %v7675_v32 }
  0x52   : > { %11607 = vst [vmem:[#allocation61_spill] sm:$0xff] %v7948_v44  ;;  %6701 = vmatpush3.bf16.msra.mxu1 %v6700_v13  ;;  %6809 = vmatpush3.bf16.msra.mxu0 %v6808_v53  ;;  %v6810_v62 = vpack.c.bf16 %v11129_v4, %v11130_v22  ;;  %v7962_v13 = vsub.f32 %v218_v0, %v7948_v44  ;;  %v7964_v27 = vand.u32 4294901760, %v217_v48  ;;  %v11611_v26 = vand.u32 4294901760, %v7550_v9 }
  0x53   : > { %11608 = vst [vmem:[#allocation62_spill] sm:$0xff] %v7952_v5  ;;  %541 = vmatmul.mubr.f32.gmra.mrb[12].mxu1 %v540_v54  ;;  %v548_v54 = vsub.f32 %v7937_v41, %v11132_v50  ;;  %1214 = vmatmul.mubr.f32.gmra.mrb[14].mxu0 %v7952_v5  ;;  %v6812_v0 = vpack.c.bf16 %v11135_v19, %v11136_v20  ;;  %v11612_v4 = vand.u32 4294901760, %v7566_v24  ;;  %v11614_v53 = vand.u32 4294901760, %v7574_v33 }
  0x54   : > { %11609 = vst [vmem:[#allocation63_spill] sm:$0xff] %v7962_v13  ;;  %11610 = vst [vmem:[#allocation64_spill] sm:$0xff] %v7964_v27  ;;  %v853_v6 = vsub.f32 %v7550_v9, %v11611_v26  ;;  %6811 = vmatprep.subr.bf16.mxu0 %v6810_v62  ;;  %v7984_v26 = vsub.f32 %v217_v48, %v7964_v27  ;;  %1725 = vmatprep.mubr.f32.mxu0 %v7668_v12  ;;  %v11615_v20 = vand.u32 4294901760, %v7952_v5 }
  0x55   : > { %v860_v22 = vsub.f32 %v7566_v24, %v11612_v4  ;;  %v741_v41 = vsub.f32 %v7574_v33, %v11614_v53  ;;  %v549_v19 = vand.u32 4294901760, %v548_v54  ;;  %v11616_v62 = vand.u32 4294901760, %v7576_v34 }
  0x56   : > { %11613 = vst [vmem:[#allocation65_spill] sm:$0xff] %v7984_v26  ;;  %v854_v50 = vand.u32 4294901760, %v853_v6  ;;  %v554_v24 = vsub.f32 %v7952_v5, %v11615_v20  ;;  %v8000_v6 = vld [vmem:[%s11051_s1 + $0x180] sm:$0xff]  ;;  %v11617_v33 = vand.u32 4294901760, %v7962_v13  ;;  %6813 = vmatpush3.bf16.msra.mxu0 %v6812_v0  ;;  %v8006_v42 = vand.u32 4294901760, %v223_v16 }
  0x57   : > { %v861_v4 = vand.u32 4294901760, %v860_v22  ;;  %v748_v9 = vsub.f32 %v7576_v34, %v11616_v62  ;;  %v742_v53 = vand.u32 4294901760, %v741_v41  ;;  %v8011_v22 = vld [vmem:[%s11051_s1 + $0x188] sm:$0xff]  ;;  %v8016_v34 = vld [vmem:[%s11051_s1 + $0x100] sm:$0xff]  ;;  %550 = vmatprep.mubr.f32.mxu1 %v549_v19  ;;  %v11620_v5 = vand.u32 4294901760, %v7984_v26 }
  0x58   : > { %v563_v48 = vsub.f32 %v7962_v13, %v11617_v33  ;;  %11618 = vst [vmem:[#allocation66_spill] sm:$0xff] %v8006_v42  ;;  %v555_v20 = vand.u32 4294901760, %v554_v24  ;;  %v8018_v33 = vand.u32 4294901760, %v222_v30  ;;  %v8023_v41 = vld [vmem:[%s11051_s1 + $0x108] sm:$0xff]  ;;  %v8029_v40 = vsub.f32 %v223_v16, %v8006_v42 }
  0x59   : > { %v6702_v62 = vpack.c.bf16 %v861_v4, %v854_v50  ;;  %v749_v0 = vand.u32 4294901760, %v748_v9  ;;  %v569_v52 = vsub.f32 %v7984_v26, %v11620_v5  ;;  %v11144_v19 = vand.u32 4294901760, %v8000_v6  ;;  %1727 = vmatmul.mubr.f32.vlgmr.msra.gmra.mrb[16].mxu0 %v7677_v21 }
  0x5a   : > { %11619 = vst [vmem:[#allocation67_spill] sm:$0xff] %v8018_v33  ;;  %v564_v54 = vand.u32 4294901760, %v563_v48  ;;  %11621 = vst [vmem:[#allocation68_spill] sm:$0xff] %v8029_v40  ;;  %556 = vmatmul.mubr.f32.gmra.mrb[14].mxu1 %v555_v20  ;;  %v8033_v9 = vsub.f32 %v222_v30, %v8018_v33  ;;  %v11142_v24 = vand.u32 4294901760, %v8011_v22  ;;  %v11146_v4 = vand.u32 4294901760, %v8016_v34  ;;  %v228_v48 = vld [vmem:[%s7609_s25 + $0x198] sm:$0xff]  ;;  %1732 = vmatprep.mubr.f32.mxu0 %v7712_v8 }
  0x5b   : > { %6703 = vmatprep.subr.bf16.mxu1 %v6702_v62  ;;  %v6704_v50 = vpack.c.bf16 %v749_v0, %v742_v53  ;;  %v570_v23 = vand.u32 4294901760, %v569_v52  ;;  %v11143_v16 = vand.u32 4294901760, %v8029_v40  ;;  %v11145_v5 = vand.u32 4294901760, %v8023_v41  ;;  %v227_v20 = vld [vmem:[%s7609_s25 + $0x190] sm:$0xff] }
  0x5c   : > { %11622 = vst [vmem:[#allocation69_spill] sm:$0xff] %v8033_v9  ;;  %565 = vmatprep.mubr.f32.mxu1 %v564_v54  ;;  %v11148_v53 = vand.u32 4294901760, %v8033_v9  ;;  %v8047_v30 = vpack.c.bf16 %v11142_v24, %v11144_v19  ;;  %v8059_v62 = vand.u32 4294901760, %v228_v48  ;;  %v11627_v24 = vand.u32 4294901760, %v7586_v43 }
  0x5d   : > { %6705 = vmatpush3.bf16.msra.mxu1 %v6704_v50  ;;  %v578_v52 = vsub.f32 %v8029_v40, %v11143_v16  ;;  %v8057_v54 = vpack.c.bf16 %v11145_v5, %v11146_v4  ;;  %v8065_v50 = vand.u32 4294901760, %v227_v20  ;;  %v11628_v19 = vand.u32 4294901760, %v7601_v58  ;;  %v233_v4 = vld [vmem:[%s7609_s25 + $0x1c0] sm:$0xff]  ;;  %1734 = vmatmul.mubr.f32.gmra.mrb[18].mxu0 %v7730_v56 }
  0x5e   : > { %11623 = vst [vmem:[#allocation70_spill] sm:$0xff] %v8047_v30  ;;  %11625 = vst [vmem:[#allocation72_spill] sm:$0xff] %v8059_v62  ;;  %571 = vmatmul.mubr.f32.gmra.mrb[16].mxu1 %v570_v23  ;;  %v584_v0 = vsub.f32 %v8033_v9, %v11148_v53  ;;  %6847 = vmatprep.subr.bf16.mxu0 %v8047_v30  ;;  %v867_v16 = vsub.f32 %v7586_v43, %v11627_v24  ;;  %v11630_v53 = vand.u32 4294901760, %v7614_v1  ;;  %v232_v43 = vld [vmem:[%s7609_s25 + $0x1b8] sm:$0xff] }
  0x5f   : > { %11624 = vst [vmem:[#allocation71_spill] sm:$0xff] %v8057_v54  ;;  %11626 = vst [vmem:[#allocation73_spill] sm:$0xff] %v8065_v50  ;;  %v874_v5 = vsub.f32 %v7601_v58, %v11628_v19  ;;  %v579_v55 = vand.u32 4294901760, %v578_v52  ;;  %6849 = vmatpush3.bf16.msra.mxu0 %v8057_v54  ;;  %v8076_v23 = vsub.f32 %v228_v48, %v8059_v62  ;;  %v8088_v58 = vld [vmem:[%s11051_s1 + $0x190] sm:$0xff]  ;;  %1739 = vmatprep.mubr.f32.mxu0 %v7741_v17 }
  0x60   : > { %v755_v30 = vsub.f32 %v7614_v1, %v11630_v53  ;;  %v762_v18 = vsub.f32 %v7616_v2, %v11631_v10  ;;  %v585_v19 = vand.u32 4294901760, %v584_v0  ;;  %v8092_v24 = vsub.f32 %v227_v20, %v8065_v50  ;;  %v8097_v1 = vld [vmem:[%s11051_s1 + $0x198] sm:$0xff]  ;;  %v8106_v20 = vld [vmem:[%s11051_s1 + $0x110] sm:$0xff] }
  0x61   : > { %11629 = vst [vmem:[#allocation74_spill] sm:$0xff] %v8076_v23  ;;  %v868_v48 = vand.u32 4294901760, %v867_v16  ;;  %v875_v52 = vand.u32 4294901760, %v874_v5  ;;  %580 = vmatprep.mubr.f32.mxu1 %v579_v55  ;;  %v11158_v2 = vand.u32 4294901760, %v8076_v23  ;;  %v8101_v0 = vand.u32 4294901760, %v233_v4  ;;  %1741 = vmatmul.mubr.f32.gmra.mrb[20].mxu0 %v7746_v15 }
  0x62   : > { %11632 = vst [vmem:[#allocation75_spill] sm:$0xff] %v8092_v24  ;;  %v756_v10 = vand.u32 4294901760, %v755_v30  ;;  %v763_v53 = vand.u32 4294901760, %v762_v18  ;;  %586 = vmatmul.mubr.f32.gmra.mrb[18].mxu1 %v585_v19  ;;  %v11163_v16 = vand.u32 4294901760, %v8092_v24  ;;  %v8109_v55 = vand.u32 4294901760, %v232_v43  ;;  %v8122_v19 = vld [vmem:[%s11051_s1 + $0x118] sm:$0xff]  ;;  %1746 = vmatprep.mubr.f32.mxu0 %v7780_v14 }
  0x63   : > { %11633 = vst [vmem:[#allocation76_spill] sm:$0xff] %v8101_v0  ;;  %v6706_v5 = vpack.c.bf16 %v875_v52, %v868_v48  ;;  %v11164_v30 = vand.u32 4294901760, %v8088_v58  ;;  %v593_v18 = vsub.f32 %v8076_v23, %v11158_v2  ;;  %v8116_v37 = vsub.f32 %v233_v4, %v8101_v0 }
  0x64   : > { %11634 = vst [vmem:[#allocation77_spill] sm:$0xff] %v8109_v55  ;;  %v6708_v54 = vpack.c.bf16 %v763_v53, %v756_v10  ;;  %v599_v48 = vsub.f32 %v8092_v24, %v11163_v16  ;;  %v8129_v52 = vsub.f32 %v232_v43, %v8109_v55  ;;  %v238_v10 = vld [vmem:[%s7609_s25 + $0x1e8] sm:$0xff]  ;;  %v237_v53 = vld [vmem:[%s7609_s25 + $0x1e0] sm:$0xff]  ;;  %v11637_v23 = vand.u32 4294901760, %v8097_v1 }
  0x65   : > { %11635 = vst [vmem:[#allocation78_spill] sm:$0xff] %v8116_v37  ;;  %6707 = vmatprep.subr.bf16.mxu1 %v6706_v5  ;;  %v594_v2 = vand.u32 4294901760, %v593_v18  ;;  %v11167_v9 = vand.u32 4294901760, %v8116_v37  ;;  %v243_v5 = vld [vmem:[%s7609_s25 + $0x210] sm:$0xff]  ;;  %v11177_v4 = vand.u32 4294901760, %v8122_v19  ;;  %v8149_v18 = vand.u32 4294901760, %v238_v10  ;;  %1748 = vmatmul.mubr.f32.gmra.mrb[22].mxu0 %v7788_v45 }
  0x66   : > { %11636 = vst [vmem:[#allocation79_spill] sm:$0xff] %v8129_v52  ;;  %6709 = vmatpush3.bf16.msra.mxu1 %v6708_v54  ;;  %v8139_v40 = vpack.c.bf16 %v11637_v23, %v11164_v30  ;;  %v600_v43 = vand.u32 4294901760, %v599_v48  ;;  %v11176_v16 = vand.u32 4294901760, %v8129_v52  ;;  %v8151_v23 = vand.u32 4294901760, %v237_v53  ;;  %1753 = vmatprep.mubr.f32.mxu0 %v7794_v46 }
  0x67   : > { %595 = vmatprep.mubr.f32.mxu1 %v594_v2  ;;  %v608_v54 = vsub.f32 %v8116_v37, %v11167_v9  ;;  %11639 = vst [vmem:[#allocation81_spill] sm:$0xff] %v8149_v18  ;;  %v11641_v30 = vand.u32 4294901760, %v7626_v11  ;;  %v11642_v2 = vand.u32 4294901760, %v8106_v20  ;;  %v242_v37 = vld [vmem:[%s7609_s25 + $0x208] sm:$0xff]  ;;  %v8170_v13 = vsub.f32 %v238_v10, %v8149_v18 }
  0x68   : > { %11638 = vst [vmem:[#allocation80_spill] sm:$0xff] %v8139_v40  ;;  %6851 = vmatprep.subr.bf16.mxu0 %v8139_v40  ;;  %11640 = vst [vmem:[#allocation82_spill] sm:$0xff] %v8151_v23  ;;  %601 = vmatmul.mubr.f32.gmra.mrb[20].mxu1 %v600_v43  ;;  %v614_v48 = vsub.f32 %v8129_v52, %v11176_v16  ;;  %v8166_v40 = vand.u32 4294901760, %v243_v5  ;;  %v8179_v43 = vld [vmem:[%s11051_s1 + $0x1a0] sm:$0xff]  ;;  %v11647_v16 = vand.u32 4294901760, %v7641_v29  ;;  %v11648_v10 = vand.u32 4294901760, %v7647_v3 }
  0x69   : > { %v881_v24 = vsub.f32 %v7626_v11, %v11641_v30  ;;  %v8163_v9 = vpack.c.bf16 %v11177_v4, %v11642_v2  ;;  %v609_v26 = vand.u32 4294901760, %v608_v54  ;;  %11645 = vst [vmem:[#allocation85_spill] sm:$0xff] %v8170_v13  ;;  %v8173_v11 = vsub.f32 %v237_v53, %v8151_v23  ;;  %1755 = vmatmul.mubr.f32.gmra.mrb[24].mxu0 %v7810_v39 }
  0x6a   : > { %11644 = vst [vmem:[#allocation84_spill] sm:$0xff] %v8166_v40  ;;  %v615_v2 = vand.u32 4294901760, %v614_v48  ;;  %v888_v54 = vsub.f32 %v7641_v29, %v11647_v16  ;;  %v769_v53 = vsub.f32 %v7647_v3, %v11648_v10  ;;  %v11183_v52 = vand.u32 4294901760, %v8170_v13  ;;  %v8201_v29 = vld [vmem:[%s11051_s1 + $0x1a8] sm:$0xff]  ;;  %1760 = vmatprep.mubr.f32.mxu0 %v7845_v35  ;;  %v248_v16 = vld [vmem:[%s7609_s25 + $0x238] sm:$0xff] }
  0x6b   : > { %11643 = vst [vmem:[#allocation83_spill] sm:$0xff] %v8163_v9  ;;  %11646 = vst [vmem:[#allocation86_spill] sm:$0xff] %v8173_v11  ;;  %v882_v30 = vand.u32 4294901760, %v881_v24  ;;  %6853 = vmatpush3.bf16.msra.mxu0 %v8163_v9  ;;  %v11649_v24 = vand.u32 4294901760, %v7649_v63  ;;  %610 = vmatprep.mubr.f32.mxu1 %v609_v26  ;;  %v11184_v49 = vand.u32 4294901760, %v8173_v11  ;;  %v8194_v48 = vsub.f32 %v243_v5, %v8166_v40 }
  0x6c   : > { %v8196_v9 = vand.u32 4294901760, %v242_v37  ;;  %616 = vmatmul.mubr.f32.gmra.mrb[22].mxu1 %v615_v2  ;;  %v889_v3 = vand.u32 4294901760, %v888_v54  ;;  %v623_v5 = vsub.f32 %v8170_v13, %v11183_v52  ;;  %v247_v2 = vld [vmem:[%s7609_s25 + $0x230] sm:$0xff]  ;;  %v11654_v46 = vand.u32 4294901760, %v8179_v43 }
  0x6d   : > { %v776_v4 = vsub.f32 %v7649_v63, %v11649_v24  ;;  %11650 = vst [vmem:[#allocation87_spill] sm:$0xff] %v8194_v48  ;;  %v770_v63 = vand.u32 4294901760, %v769_v53  ;;  %v629_v10 = vsub.f32 %v8173_v11, %v11184_v49  ;;  %v8224_v53 = vld [vmem:[%s11051_s1 + $0x128] sm:$0xff]  ;;  %v11198_v49 = vand.u32 4294901760, %v8201_v29  ;;  %1762 = vmatmul.mubr.f32.gmra.mrb[26].mxu0 %v7854_v47 }
  0x6e   : > { %11651 = vst [vmem:[#allocation88_spill] sm:$0xff] %v8196_v9  ;;  %v8213_v54 = vsub.f32 %v242_v37, %v8196_v9  ;;  %v6710_v24 = vpack.c.bf16 %v889_v3, %v882_v30  ;;  %v624_v37 = vand.u32 4294901760, %v623_v5  ;;  %v11653_v13 = vand.u32 4294901760, %v8194_v48  ;;  %v253_v9 = vld [vmem:[%s7609_s25 + $0x260] sm:$0xff]  ;;  %1767 = vmatprep.mubr.f32.mxu0 %v7870_v59 }
  0x6f   : > { %v777_v26 = vand.u32 4294901760, %v776_v4  ;;  %v8219_v4 = vld [vmem:[%s11051_s1 + $0x120] sm:$0xff]  ;;  %v630_v11 = vand.u32 4294901760, %v629_v10  ;;  %v8238_v30 = vpack.c.bf16 %v11198_v49, %v11654_v46  ;;  %v8246_v5 = vand.u32 4294901760, %v248_v16 }
  0x70   : > { %11652 = vst [vmem:[#allocation89_spill] sm:$0xff] %v8213_v54  ;;  %v638_v35 = vsub.f32 %v8194_v48, %v11653_v13  ;;  %v11197_v39 = vand.u32 4294901760, %v8213_v54  ;;  %6711 = vmatprep.subr.bf16.mxu1 %v6710_v24  ;;  %v11200_v3 = vand.u32 4294901760, %v8219_v4  ;;  %625 = vmatprep.mubr.f32.mxu1 %v624_v37  ;;  %v8248_v10 = vand.u32 4294901760, %v247_v2 }
  0x71   : > { %v6712_v52 = vpack.c.bf16 %v777_v26, %v770_v63  ;;  %11655 = vst [vmem:[#allocation90_spill] sm:$0xff] %v8238_v30  ;;  %v11199_v63 = vand.u32 4294901760, %v8224_v53  ;;  %11656 = vst [vmem:[#allocation91_spill] sm:$0xff] %v8246_v5  ;;  %631 = vmatmul.mubr.f32.gmra.mrb[24].mxu1 %v630_v11  ;;  %6855 = vmatprep.subr.bf16.mxu0 %v8238_v30  ;;  %v8257_v24 = vand.u32 4294901760, %v253_v9  ;;  %v11662_v11 = vand.u32 4294901760, %v7657_v38 }
  0x72   : > { %v639_v13 = vand.u32 4294901760, %v638_v35  ;;  %v644_v26 = vsub.f32 %v8213_v54, %v11197_v39  ;;  %11657 = vst [vmem:[#allocation92_spill] sm:$0xff] %v8248_v10  ;;  %v252_v35 = vld [vmem:[%s7609_s25 + $0x258] sm:$0xff]  ;;  %v8261_v37 = vsub.f32 %v248_v16, %v8246_v5  ;;  %v8264_v39 = vsub.f32 %v247_v2, %v8248_v10  ;;  %1769 = vmatmul.mubr.f32.gmra.mrb[28].mxu0 %v7880_v7 }
  0x73   : > { %6713 = vmatpush3.bf16.msra.mxu1 %v6712_v52  ;;  %v8255_v46 = vpack.c.bf16 %v11199_v63, %v11200_v3  ;;  %11659 = vst [vmem:[#allocation94_spill] sm:$0xff] %v8257_v24  ;;  %v895_v49 = vsub.f32 %v7657_v38, %v11662_v11  ;;  %v11663_v63 = vand.u32 4294901760, %v7666_v28  ;;  %v8281_v30 = vsub.f32 %v253_v9, %v8257_v24  ;;  %v8286_v38 = vld [vmem:[%s11051_s1 + $0x1b0] sm:$0xff] }
  0x74   : > { %640 = vmatprep.mubr.f32.mxu1 %v639_v13  ;;  %v645_v52 = vand.u32 4294901760, %v644_v26  ;;  %11660 = vst [vmem:[#allocation95_spill] sm:$0xff] %v8261_v37  ;;  %11661 = vst [vmem:[#allocation96_spill] sm:$0xff] %v8264_v39  ;;  %v11664_v13 = vand.u32 4294901760, %v7673_v60  ;;  %v11665_v26 = vand.u32 4294901760, %v7675_v32  ;;  %v11209_v11 = vand.u32 4294901760, %v8261_v37  ;;  %1774 = vmatprep.mubr.f32.mxu0 %v7926_v57 }
  0x75   : > { %11658 = vst [vmem:[#allocation93_spill] sm:$0xff] %v8255_v46  ;;  %6857 = vmatpush3.bf16.msra.mxu0 %v8255_v46  ;;  %v902_v3 = vsub.f32 %v7666_v28, %v11663_v63  ;;  %11666 = vst [vmem:[#allocation97_spill] sm:$0xff] %v8281_v30  ;;  %v11212_v28 = vand.u32 4294901760, %v8264_v39  ;;  %v896_v63 = vand.u32 4294901760, %v895_v49  ;;  %v11213_v46 = vand.u32 4294901760, %v8281_v30  ;;  %v8483_v57 = vld [vmem:[%s11051_s1 + $0x170] sm:$0xff] }
  0x76   : > { %v783_v16 = vsub.f32 %v7673_v60, %v11664_v13  ;;  %v790_v2 = vsub.f32 %v7675_v32, %v11665_v26  ;;  %v8291_v60 = vand.u32 4294901760, %v252_v35  ;;  %v8296_v32 = vld [vmem:[%s11051_s1 + $0x1b8] sm:$0xff]  ;;  %646 = vmatmul.mubr.f32.gmra.mrb[26].mxu1 %v645_v52  ;;  %v653_v49 = vsub.f32 %v8261_v37, %v11209_v11  ;;  %1776 = vmatmul.mubr.f32.gmra.mrb[30].mxu0 %v7939_v61  ;;  %v8344_v37 = vld [vmem:[%s11051_s1 + $0x148] sm:$0xff] }
  0x77   : > { %v903_v9 = vand.u32 4294901760, %v902_v3  ;;  %v659_v54 = vsub.f32 %v8264_v39, %v11212_v28  ;;  %v8313_v3 = vld [vmem:[%s11051_s1 + $0x130] sm:$0xff]  ;;  %v668_v11 = vsub.f32 %v8281_v30, %v11213_v46  ;;  %v8327_v28 = vld [vmem:[%s11051_s1 + $0x1c0] sm:$0xff]  ;;  %v11669_v30 = vand.u32 4294901760, %v8286_v38  ;;  %1781 = vmatprep.mubr.f32.mxu0 %v7948_v44 }
  0x78   : > { %11667 = vst [vmem:[#allocation98_spill] sm:$0xff] %v8291_v60  ;;  %v784_v13 = vand.u32 4294901760, %v783_v16  ;;  %v791_v26 = vand.u32 4294901760, %v790_v2  ;;  %v8307_v48 = vsub.f32 %v252_v35, %v8291_v60  ;;  %v8322_v35 = vld [vmem:[%s11051_s1 + $0x138] sm:$0xff]  ;;  %v8339_v46 = vld [vmem:[%s11051_s1 + $0x140] sm:$0xff]  ;;  %v8357_v39 = vld [vmem:[%s11051_s1 + $0x1d0] sm:$0xff] }
  0x79   : > { %v6714_v16 = vpack.c.bf16 %v903_v9, %v896_v63  ;;  %v8332_v63 = vld [vmem:[%s11051_s1 + $0x1c8] sm:$0xff]  ;;  %v654_v9 = vand.u32 4294901760, %v653_v49  ;;  %v669_v52 = vand.u32 4294901760, %v668_v11  ;;  %v11225_v61 = vand.u32 4294901760, %v8322_v35 }
  0x7a   : > { %11668 = vst [vmem:[#allocation99_spill] sm:$0xff] %v8307_v48  ;;  %v6716_v2 = vpack.c.bf16 %v791_v26, %v784_v13  ;;  %v660_v13 = vand.u32 4294901760, %v659_v54  ;;  %v11670_v54 = vand.u32 4294901760, %v8296_v32  ;;  %v11675_v44 = vand.u32 4294901760, %v8332_v63  ;;  %1783 = vmatmul.mubr.f32.gmra.mrb[32].mxu0 %v7964_v27  ;;  %v8447_v27 = vld [vmem:[%s11051_s1 + $0x1f8] sm:$0xff] }
  0x7b   : > { %6715 = vmatprep.subr.bf16.mxu1 %v6714_v16  ;;  %655 = vmatprep.mubr.f32.mxu1 %v654_v9  ;;  %v11672_v16 = vand.u32 4294901760, %v8307_v48  ;;  %v8376_v9 = vld [vmem:[%s11051_s1 + $0x150] sm:$0xff] }
  0x7c   : > { %v8350_v49 = vpack.c.bf16 %v11670_v54, %v11669_v30  ;;  %6717 = vmatpush3.bf16.msra.mxu1 %v6716_v2  ;;  %v11224_v30 = vand.u32 4294901760, %v8327_v28  ;;  %v8371_v2 = vld [vmem:[%s11051_s1 + $0x1d8] sm:$0xff]  ;;  %1788 = vmatprep.mubr.f32.mxu0 %v8006_v42  ;;  %v8425_v42 = vld [vmem:[%s11051_s1 + $0x160] sm:$0xff] }
  0x7d   : > { %v674_v11 = vsub.f32 %v8307_v48, %v11672_v16  ;;  %661 = vmatmul.mubr.f32.gmra.mrb[28].mxu1 %v660_v13  ;;  %v11673_v13 = vand.u32 4294901760, %v8313_v3  ;;  %7230 = vmatprep.subr.bf16.mxu1 %v7441_v25  ;;  %v8405_v25 = vld [vmem:[%s11051_s1 + $0x1e8] sm:$0xff]  ;;  %v11682_v48 = vand.u32 4294901760, %v8016_v34 }
  0x7e   : > { %11671 = vst [vmem:[#allocation100_spill] sm:$0xff] %v8350_v49  ;;  %6859 = vmatprep.subr.bf16.mxu0 %v8350_v49  ;;  %670 = vmatprep.mubr.f32.mxu1 %v669_v52  ;;  %v8389_v26 = vpack.c.bf16 %v11675_v44, %v11224_v30  ;;  %v8395_v52 = vld [vmem:[%s11051_s1 + $0x158] sm:$0xff]  ;;  %v11677_v44 = vand.u32 4294901760, %v8339_v46 }
  0x7f   : > { %v675_v16 = vand.u32 4294901760, %v674_v11  ;;  %v8382_v54 = vpack.c.bf16 %v11225_v61, %v11673_v13  ;;  %v8400_v11 = vld [vmem:[%s11051_s1 + $0x1e0] sm:$0xff]  ;;  %v11678_v13 = vand.u32 4294901760, %v8344_v37  ;;  %v11234_v61 = vand.u32 4294901760, %v8371_v2  ;;  %1790 = vmatmul.mubr.f32.gmra.mrb[34].mxu0 %v8018_v33 }
  0x80   : > { %11676 = vst [vmem:[#allocation102_spill] sm:$0xff] %v8389_v26  ;;  %v8453_v49 = vsub.f32 %v8016_v34, %v11682_v48  ;;  %1795 = vmatprep.mubr.f32.mxu0 %v8059_v62  ;;  %v11686_v33 = vand.u32 4294901760, %v8023_v41  ;;  %v11687_v34 = vand.u32 4294901760, %v8400_v11  ;;  %v11688_v48 = vand.u32 4294901760, %v8405_v25 }
  0x81   : > { %11674 = vst [vmem:[#allocation101_spill] sm:$0xff] %v8382_v54  ;;  %6861 = vmatpush3.bf16.msra.mxu0 %v8382_v54  ;;  %v8414_v30 = vpack.c.bf16 %v11678_v13, %v11677_v44  ;;  %676 = vmatmul.mubr.f32.gmra.mrb[30].mxu1 %v675_v16  ;;  %v8430_v44 = vld [vmem:[%s11051_s1 + $0x168] sm:$0xff]  ;;  %v11680_v16 = vand.u32 4294901760, %v8357_v39  ;;  %v8442_v54 = vld [vmem:[%s11051_s1 + $0x1f0] sm:$0xff] }
  0x82   : > { %6863 = vmatprep.subr.bf16.mxu0 %v8389_v26  ;;  %906 = vmatprep.mubr.f32.mxu1 %v7668_v12  ;;  %v8468_v7 = vsub.f32 %v8023_v41, %v11686_v33  ;;  %v8488_v33 = vld [vmem:[%s11051_s1 + $0x178] sm:$0xff]  ;;  %v11690_v12 = vand.u32 4294901760, %v8000_v6 }
  0x83   : > { %11679 = vst [vmem:[#allocation103_spill] sm:$0xff] %v8414_v30  ;;  %v8437_v13 = vpack.c.bf16 %v11234_v61, %v11680_v16  ;;  %v11683_v16 = vand.u32 4294901760, %v8376_v9  ;;  %v11684_v61 = vand.u32 4294901760, %v8395_v52  ;;  %v180_v41 = vld [vmem:[%s7609_s25 + $0x18] sm:$0xff]  ;;  %1797 = vmatmul.mubr.f32.gmra.mrb[36].mxu0 %v8065_v50 }
  0x84   : > { %1802 = vmatprep.mubr.f32.mxu0 %v8101_v0 }
  0x85   : > { %11681 = vst [vmem:[#allocation104_spill] sm:$0xff] %v8437_v13  ;;  %6865 = vmatpush3.bf16.msra.mxu0 %v8414_v30  ;;  %v8461_v26 = vpack.c.bf16 %v11684_v61, %v11683_v16  ;;  %908 = vmatmul.mubr.f32.vlgmr.msra.gmra.mrb[32].mxu1 %v7677_v21  ;;  %v8476_v30 = vpack.c.bf16 %v11688_v48, %v11687_v34  ;;  %v11692_v48 = vand.u32 4294901760, %v8011_v22  ;;  %v11694_v61 = vand.u32 4294901760, %v8088_v58 }
  0x86   : > { %6867 = vmatprep.subr.bf16.mxu0 %v8437_v13  ;;  %v8494_v34 = vsub.f32 %v8000_v6, %v11690_v12  ;;  %7238 = vmatpush3.bf16.msra.mxu1 %v7453_v31  ;;  %v11695_v21 = vand.u32 4294901760, %v8097_v1  ;;  %v11696_v31 = vand.u32 4294901760, %v8425_v42  ;;  %v11697_v6 = vand.u32 4294901760, %v8430_v44 }
  0x87   : > { %11685 = vst [vmem:[#allocation105_spill] sm:$0xff] %v8461_v26  ;;  %11689 = vst [vmem:[#allocation106_spill] sm:$0xff] %v8476_v30  ;;  %913 = vmatprep.mubr.f32.mxu1 %v7712_v8  ;;  %v8501_v16 = vsub.f32 %v8011_v22, %v11692_v48  ;;  %v8506_v13 = vsub.f32 %v8088_v58, %v11694_v61  ;;  %7231 = vmatprep.subr.bf16.mxu1 %v7465_v36  ;;  %v11700_v36 = vand.u32 4294901760, %v8106_v20  ;;  %v185_v61 = vld [vmem:[%s7609_s25 + $0x40] sm:$0xff] }
  0x88   : > { %11691 = vst [vmem:[#allocation107_spill] sm:$0xff] %v8494_v34  ;;  %v8511_v12 = vsub.f32 %v8097_v1, %v11695_v21  ;;  %v8521_v22 = vpack.c.bf16 %v11697_v6, %v11696_v31  ;;  %v8525_v21 = vand.u32 4294901760, %v180_v41  ;;  %v179_v1 = vld [vmem:[%s7609_s25 + $0x10] sm:$0xff]  ;;  %v11701_v31 = vand.u32 4294901760, %v8442_v54  ;;  %1804 = vmatmul.mubr.f32.gmra.mrb[38].mxu0 %v8109_v55 }
  0x89   : > { %11693 = vst [vmem:[#allocation108_spill] sm:$0xff] %v8501_v16  ;;  %6869 = vmatpush3.bf16.msra.mxu0 %v8461_v26  ;;  %v8531_v48 = vsub.f32 %v8106_v20, %v11700_v36  ;;  %915 = vmatmul.mubr.f32.gmra.mrb[34].mxu1 %v7730_v56  ;;  %v11702_v6 = vand.u32 4294901760, %v8447_v27  ;;  %v11704_v8 = vand.u32 4294901760, %v8122_v19  ;;  %v11705_v36 = vand.u32 4294901760, %v8179_v43 }
  0x8a   : > { %11698 = vst [vmem:[#allocation109_spill] sm:$0xff] %v8521_v22  ;;  %11699 = vst [vmem:[#allocation110_spill] sm:$0xff] %v8525_v21  ;;  %6871 = vmatprep.subr.bf16.mxu0 %v8476_v30  ;;  %v11706_v30 = vand.u32 4294901760, %v8201_v29  ;;  %920 = vmatprep.mubr.f32.mxu1 %v7741_v17  ;;  %v11718_v26 = vand.u32 4294901760, %v8313_v3 }
  0x8b   : > { %v8539_v58 = vpack.c.bf16 %v11702_v6, %v11701_v31  ;;  %v8547_v20 = vsub.f32 %v8122_v19, %v11704_v8  ;;  %v8552_v56 = vsub.f32 %v8179_v43, %v11705_v36  ;;  %7239 = vmatpush3.bf16.msra.mxu1 %v7496_v51  ;;  %v11707_v31 = vand.u32 4294901760, %v8219_v4  ;;  %1809 = vmatprep.mubr.f32.mxu0 %v8149_v18 }
  0x8c   : > { %v8557_v0 = vsub.f32 %v8201_v29, %v11706_v30  ;;  %v11708_v8 = vand.u32 4294901760, %v8224_v53  ;;  %v11709_v43 = vand.u32 4294901760, %v8286_v38  ;;  %v11710_v29 = vld [vmem:[#allocation8_spill] sm:$0xff]  ;;  %v8578_v51 = vand.u32 4294901760, %v179_v1  ;;  %v184_v30 = vld [vmem:[%s7609_s25 + $0x38] sm:$0xff]  ;;  %1811 = vmatmul.mubr.f32.gmra.mrb[40].mxu0 %v8151_v23 }
  0x8d   : > { %11703 = vst [vmem:[#allocation111_spill] sm:$0xff] %v8539_v58  ;;  %v8564_v6 = vsub.f32 %v8219_v4, %v11707_v31  ;;  %7232 = vmatprep.subr.bf16.mxu1 %v11710_v29  ;;  %v11712_v4 = vand.u32 4294901760, %v8296_v32  ;;  %6873 = vmatpush3.bf16.msra.mxu0 %v8521_v22  ;;  %v8597_v29 = vand.u32 4294901760, %v185_v61  ;;  %v11764_v23 = vld [vmem:[#allocation17_spill] sm:$0xff] }
  0x8e   : > { %v8569_v19 = vsub.f32 %v8224_v53, %v11708_v8  ;;  %v8574_v36 = vsub.f32 %v8286_v38, %v11709_v43  ;;  %11711 = vst [vmem:[#allocation8_spill] sm:$0xff] %v8578_v51  ;;  %v11713_v53 = vand.u32 4294901760, %v8483_v57  ;;  %v11714_v38 = vand.u32 4294901760, %v8488_v33  ;;  %922 = vmatmul.mubr.f32.gmra.mrb[36].mxu1 %v7746_v15  ;;  %6875 = vmatprep.subr.bf16.mxu0 %v8539_v58  ;;  %v11727_v58 = vld [vmem:[#allocation9_spill] sm:$0xff] }
  0x8f   : > { %v8584_v31 = vsub.f32 %v8296_v32, %v11712_v4  ;;  %v8595_v43 = vsub.f32 %v180_v41, %v8525_v21  ;;  %11717 = vst [vmem:[#allocation114_spill] sm:$0xff] %v8597_v29  ;;  %v8602_v32 = vsub.f32 %v8313_v3, %v11718_v26  ;;  %v11719_v4 = vand.u32 4294901760, %v8322_v35  ;;  %927 = vmatprep.mubr.f32.mxu1 %v7780_v14  ;;  %v205_v21 = vld [vmem:[%s7609_s25 + $0xe0] sm:$0xff] }
  0x90   : > { %v8592_v8 = vpack.c.bf16 %v11714_v38, %v11713_v53  ;;  %v6910_v41 = vpack.c.bf16 %v8501_v16, %v8494_v34  ;;  %v190_v53 = vld [vmem:[%s7609_s25 + $0x68] sm:$0xff]  ;;  %v11721_v38 = vand.u32 4294901760, %v8327_v28  ;;  %v11723_v3 = vand.u32 4294901760, %v8332_v63  ;;  %7240 = vmatpush3.bf16.msra.mxu1 %v11727_v58  ;;  %1816 = vmatprep.mubr.f32.mxu0 %v8166_v40  ;;  %v11754_v40 = vld [vmem:[#allocation48_spill] sm:$0xff] }
  0x91   : > { %11716 = vst [vmem:[#allocation113_spill] sm:$0xff] %v8595_v43  ;;  %v8607_v22 = vsub.f32 %v8322_v35, %v11719_v4  ;;  %v11725_v35 = vand.u32 4294901760, %v8339_v46  ;;  %v8631_v15 = vand.u32 4294901760, %v184_v30  ;;  %v11734_v58 = vand.u32 4294901760, %v8371_v2 }
  0x92   : > { %11715 = vst [vmem:[#allocation112_spill] sm:$0xff] %v8592_v8  ;;  %v8617_v17 = vsub.f32 %v8327_v28, %v11721_v38  ;;  %v8622_v26 = vsub.f32 %v8332_v63, %v11723_v3  ;;  %v11729_v28 = vand.u32 4294901760, %v8344_v37  ;;  %v11731_v63 = vand.u32 4294901760, %v8357_v39  ;;  %6877 = vmatpush3.bf16.msra.mxu0 %v8592_v8  ;;  %929 = vmatmul.mubr.f32.gmra.mrb[38].mxu1 %v7788_v45  ;;  %v195_v8 = vld [vmem:[%s7609_s25 + $0x90] sm:$0xff]  ;;  %v11740_v45 = vld [vmem:[#allocation45_spill] sm:$0xff] }
  0x93   : > { %11720 = vst [vmem:[#allocation115_spill] sm:$0xff] %v8607_v22  ;;  %v8627_v4 = vsub.f32 %v8339_v46, %v11725_v35  ;;  %11728 = vst [vmem:[#allocation9_spill] sm:$0xff] %v8631_v15  ;;  %v11732_v46 = vld [vmem:[#allocation12_spill] sm:$0xff]  ;;  %v8646_v35 = vsub.f32 %v179_v1, %v8578_v51  ;;  %v8651_v14 = vsub.f32 %v8371_v2, %v11734_v58  ;;  %v189_v1 = vld [vmem:[%s7609_s25 + $0x60] sm:$0xff]  ;;  %6911 = vmatprep.subr.bf16.mxu0 %v6910_v41 }
  0x94   : > { %11722 = vst [vmem:[#allocation116_spill] sm:$0xff] %v8617_v17  ;;  %11724 = vst [vmem:[#allocation117_spill] sm:$0xff] %v8622_v26  ;;  %v8636_v38 = vsub.f32 %v8344_v37, %v11729_v28  ;;  %v8641_v3 = vsub.f32 %v8357_v39, %v11731_v63  ;;  %7233 = vmatprep.subr.bf16.mxu1 %v11732_v46  ;;  %v8657_v37 = vsub.f32 %v185_v61, %v8597_v29  ;;  %v194_v41 = vld [vmem:[%s7609_s25 + $0x88] sm:$0xff] }
  0x95   : > { %11726 = vst [vmem:[#allocation118_spill] sm:$0xff] %v8627_v4  ;;  %11733 = vst [vmem:[#allocation12_spill] sm:$0xff] %v8646_v35  ;;  %v8659_v28 = vand.u32 4294901760, %v190_v53  ;;  %v11737_v63 = vand.u32 4294901760, %v8376_v9  ;;  %v11738_v46 = vand.u32 4294901760, %v8395_v52  ;;  %v11739_v39 = vand.u32 4294901760, %v8400_v11  ;;  %934 = vmatprep.mubr.f32.mxu1 %v11740_v45 }
  0x96   : > { %11730 = vst [vmem:[#allocation119_spill] sm:$0xff] %v8636_v38  ;;  %11735 = vst [vmem:[#allocation120_spill] sm:$0xff] %v8657_v37  ;;  %v11741_v29 = vand.u32 4294901760, %v8405_v25  ;;  %v11745_v45 = vand.u32 4294901760, %v8430_v44  ;;  %936 = vmatmul.mubr.f32.gmra.mrb[40].mxu1 %v11754_v40  ;;  %v11755_v16 = vand.u32 4294901760, %v8447_v27  ;;  %v11757_v34 = vand.u32 4294901760, %v8483_v57 }
  0x97   : > { %11736 = vst [vmem:[#allocation121_spill] sm:$0xff] %v8659_v28  ;;  %v8666_v2 = vsub.f32 %v8376_v9, %v11737_v63  ;;  %v8671_v58 = vsub.f32 %v8395_v52, %v11738_v46  ;;  %v8676_v61 = vsub.f32 %v8400_v11, %v11739_v39  ;;  %v11742_v63 = vand.u32 4294901760, %v8425_v42  ;;  %v11743_v46 = vld [vmem:[#allocation13_spill] sm:$0xff] }
  0x98   : > { %v8683_v9 = vsub.f32 %v8405_v25, %v11741_v29  ;;  %7241 = vmatpush3.bf16.msra.mxu1 %v11743_v46  ;;  %v8692_v11 = vsub.f32 %v184_v30, %v8631_v15  ;;  %v200_v39 = vld [vmem:[%s7609_s25 + $0xb8] sm:$0xff]  ;;  %v8699_v51 = vsub.f32 %v8430_v44, %v11745_v45  ;;  %v11746_v25 = vld [vmem:[#allocation88_spill] sm:$0xff]  ;;  %v11747_v29 = vand.u32 4294901760, %v8442_v54  ;;  %v210_v30 = vld [vmem:[%s7609_s25 + $0x108] sm:$0xff] }
  0x99   : > { %v8688_v52 = vsub.f32 %v8425_v42, %v11742_v63  ;;  %1818 = vmatmul.mubr.f32.gmra.mrb[42].mxu0 %v11746_v25  ;;  %v11749_v63 = vld [vmem:[#allocation16_spill] sm:$0xff]  ;;  %v8709_v46 = vand.u32 4294901760, %v189_v1  ;;  %v11751_v45 = vand.u32 4294901760, %v8595_v43  ;;  %v8736_v25 = vand.u32 4294901760, %v194_v41 }
  0x9a   : > { %11744 = vst [vmem:[#allocation13_spill] sm:$0xff] %v8692_v11  ;;  %v8705_v42 = vsub.f32 %v8442_v54, %v11747_v29  ;;  %7234 = vmatprep.subr.bf16.mxu1 %v11749_v63  ;;  %v199_v15 = vld [vmem:[%s7609_s25 + $0xb0] sm:$0xff]  ;;  %1823 = vmatprep.mubr.f32.mxu0 %v8246_v5  ;;  %v8719_v54 = vsub.f32 %v190_v53, %v8659_v28  ;;  %v8721_v29 = vand.u32 4294901760, %v195_v8  ;;  %v204_v63 = vld [vmem:[%s7609_s25 + $0xd8] sm:$0xff]  ;;  %v8738_v53 = vand.u32 4294901760, %v200_v39  ;;  %v11761_v28 = vld [vmem:[#allocation50_spill] sm:$0xff] }
  0x9b   : > { %11750 = vst [vmem:[#allocation16_spill] sm:$0xff] %v8709_v46  ;;  %v2145_v44 = vsub.f32 %v8595_v43, %v11751_v45  ;;  %v8729_v5 = vsub.f32 %v8447_v27, %v11755_v16  ;;  %v8734_v45 = vsub.f32 %v8483_v57, %v11757_v34  ;;  %11759 = vst [vmem:[#allocation127_spill] sm:$0xff] %v8736_v25  ;;  %941 = vmatprep.mubr.f32.mxu1 %v11761_v28  ;;  %v209_v57 = vld [vmem:[%s7609_s25 + $0x100] sm:$0xff] }
  0x9c   : > { %11748 = vst [vmem:[#allocation122_spill] sm:$0xff] %v8705_v42  ;;  %11752 = vst [vmem:[#allocation123_spill] sm:$0xff] %v8719_v54  ;;  %v11762_v43 = vand.u32 4294901760, %v8488_v33  ;;  %7242 = vmatpush3.bf16.msra.mxu1 %v11764_v23  ;;  %v8748_v16 = vand.u32 4294901760, %v199_v15  ;;  %v11767_v34 = vand.u32 4294901760, %v8646_v35  ;;  %v8761_v23 = vand.u32 4294901760, %v204_v63 }
  0x9d   : > { %11753 = vst [vmem:[#allocation124_spill] sm:$0xff] %v8721_v29  ;;  %11756 = vst [vmem:[#allocation125_spill] sm:$0xff] %v8729_v5  ;;  %v8750_v5 = vand.u32 4294901760, %v205_v21  ;;  %1825 = vmatmul.mubr.f32.gmra.mrb[44].mxu0 %v8248_v10  ;;  %v2146_v27 = vand.u32 4294901760, %v2145_v44  ;;  %943 = vmatmul.mubr.f32.gmra.mrb[42].mxu1 %v7854_v47  ;;  %v8780_v44 = vsub.f32 %v200_v39, %v8738_v53  ;;  %v11778_v47 = vld [vmem:[#allocation21_spill] sm:$0xff] }
  0x9e   : > { %11758 = vst [vmem:[#allocation126_spill] sm:$0xff] %v8734_v45  ;;  %11760 = vst [vmem:[#allocation128_spill] sm:$0xff] %v8738_v53  ;;  %v8744_v40 = vsub.f32 %v8488_v33, %v11762_v43  ;;  %v2151_v28 = vsub.f32 %v8646_v35, %v11767_v34  ;;  %v11768_v45 = vld [vmem:[#allocation20_spill] sm:$0xff]  ;;  %v8759_v33 = vsub.f32 %v189_v1, %v8709_v46  ;;  %v8763_v43 = vand.u32 4294901760, %v210_v30  ;;  %v220_v53 = vld [vmem:[%s7609_s25 + $0x158] sm:$0xff] }
  0x9f   : > { %11765 = vst [vmem:[#allocation17_spill] sm:$0xff] %v8748_v16  ;;  %11766 = vst [vmem:[#allocation130_spill] sm:$0xff] %v8750_v5  ;;  %7235 = vmatprep.subr.bf16.mxu1 %v11768_v45  ;;  %1830 = vmatprep.mubr.f32.mxu0 %v8257_v24  ;;  %v8771_v34 = vsub.f32 %v195_v8, %v8721_v29  ;;  %v6914_v1 = vpack.c.bf16 %v8511_v12, %v8506_v13  ;;  %v8782_v46 = vand.u32 4294901760, %v209_v57 }
  0xa0   : > { %11763 = vst [vmem:[#allocation129_spill] sm:$0xff] %v8744_v40  ;;  %11769 = vst [vmem:[#allocation20_spill] sm:$0xff] %v8759_v33  ;;  %v11772_v40 = vand.u32 4294901760, %v8657_v37  ;;  %v8777_v45 = vsub.f32 %v194_v41, %v8736_v25  ;;  %948 = vmatprep.mubr.f32.mxu1 %v7870_v59  ;;  %v11777_v8 = vand.u32 4294901760, %v8692_v11  ;;  %7243 = vmatpush3.bf16.msra.mxu1 %v11778_v47  ;;  %v2152_v39 = vand.u32 4294901760, %v2151_v28  ;;  %v11781_v25 = vld [vmem:[#allocation24_spill] sm:$0xff] }
  0xa1   : > { %11770 = vst [vmem:[#allocation131_spill] sm:$0xff] %v8761_v23  ;;  %11771 = vst [vmem:[#allocation132_spill] sm:$0xff] %v8763_v43  ;;  %v8791_v29 = vsub.f32 %v199_v15, %v8748_v16  ;;  %v8794_v41 = vsub.f32 %v205_v21, %v8750_v5  ;;  %1832 = vmatmul.mubr.f32.gmra.mrb[46].mxu0 %v8291_v60  ;;  %7236 = vmatprep.subr.bf16.mxu1 %v11781_v25  ;;  %v214_v47 = vld [vmem:[%s7609_s25 + $0x128] sm:$0xff]  ;;  %v11784_v21 = vand.u32 4294901760, %v8719_v54  ;;  %v11789_v28 = vld [vmem:[#allocation25_spill] sm:$0xff] }
  0xa2   : > { %v2160_v10 = vsub.f32 %v8657_v37, %v11772_v40  ;;  %11773 = vst [vmem:[#allocation133_spill] sm:$0xff] %v8771_v34  ;;  %11774 = vst [vmem:[#allocation134_spill] sm:$0xff] %v8777_v45  ;;  %v215_v40 = vld [vmem:[%s7609_s25 + $0x130] sm:$0xff]  ;;  %v2166_v42 = vsub.f32 %v8692_v11, %v11777_v8  ;;  %v8800_v59 = vsub.f32 %v204_v63, %v8761_v23  ;;  %2147 = vmatprep.mubr.f32.mxu0 %v2146_v27  ;;  %v11786_v11 = vld [vmem:[#allocation55_spill] sm:$0xff] }
  0xa3   : > { %11775 = vst [vmem:[#allocation135_spill] sm:$0xff] %v8780_v44  ;;  %11776 = vst [vmem:[#allocation136_spill] sm:$0xff] %v8782_v46  ;;  %v8803_v8 = vsub.f32 %v210_v30, %v8763_v43  ;;  %v2175_v5 = vsub.f32 %v8719_v54, %v11784_v21  ;;  %v8810_v16 = vand.u32 4294901760, %v215_v40  ;;  %950 = vmatmul.mubr.f32.gmra.mrb[44].mxu1 %v11786_v11  ;;  %v219_v27 = vld [vmem:[%s7609_s25 + $0x150] sm:$0xff]  ;;  %v11788_v43 = vld [vmem:[#allocation58_spill] sm:$0xff]  ;;  %v8826_v54 = vand.u32 4294901760, %v214_v47 }
  0xa4   : > { %11779 = vst [vmem:[#allocation21_spill] sm:$0xff] %v8791_v29  ;;  %11780 = vst [vmem:[#allocation137_spill] sm:$0xff] %v8794_v41  ;;  %v2161_v15 = vand.u32 4294901760, %v2160_v10  ;;  %v6916_v25 = vpack.c.bf16 %v8547_v20, %v8531_v48  ;;  %v8819_v10 = vsub.f32 %v209_v57, %v8782_v46  ;;  %955 = vmatprep.mubr.f32.mxu1 %v11788_v43  ;;  %v2167_v21 = vand.u32 4294901760, %v2166_v42  ;;  %v11792_v46 = vld [vmem:[#allocation30_spill] sm:$0xff]  ;;  %v11817_v37 = vld [vmem:[#allocation67_spill] sm:$0xff] }
  0xa5   : > { %11782 = vst [vmem:[#allocation24_spill] sm:$0xff] %v8800_v59  ;;  %11783 = vst [vmem:[#allocation138_spill] sm:$0xff] %v8803_v8  ;;  %7244 = vmatpush3.bf16.msra.mxu1 %v11789_v28  ;;  %2153 = vmatmul.mubr.f32.vlgmr.msra.gmra.mrb[48].mxu0 %v2152_v39  ;;  %v11791_v30 = vand.u32 4294901760, %v8759_v33  ;;  %v8834_v42 = vand.u32 4294901760, %v220_v53  ;;  %v11794_v28 = vpack.c.bf16 %v8468_v7, %v8453_v49  ;;  %v2176_v11 = vand.u32 4294901760, %v2175_v5 }
  0xa6   : > { %11785 = vst [vmem:[#allocation139_spill] sm:$0xff] %v8810_v16  ;;  %11787 = vst [vmem:[#allocation140_spill] sm:$0xff] %v8819_v10  ;;  %7237 = vmatprep.subr.bf16.mxu1 %v11792_v46  ;;  %2162 = vmatprep.mubr.f32.mxu0 %v2161_v15  ;;  %v11795_v39 = vand.u32 4294901760, %v8771_v34  ;;  %v8845_v57 = vand.u32 4294901760, %v219_v27  ;;  %v11798_v46 = vld [vmem:[#allocation60_spill] sm:$0xff]  ;;  %v11799_v43 = vand.u32 4294901760, %v8777_v45 }
  0xa7   : > { %11790 = vst [vmem:[#allocation25_spill] sm:$0xff] %v8826_v54  ;;  %v2181_v63 = vsub.f32 %v8759_v33, %v11791_v30  ;;  %11793 = vst [vmem:[#allocation30_spill] sm:$0xff] %v8834_v42  ;;  %6913 = vmatpush3.bf16.msra.mxu0 %v11794_v28  ;;  %v8843_v30 = vsub.f32 %v215_v40, %v8810_v16  ;;  %957 = vmatmul.mubr.f32.gmra.mrb[46].mxu1 %v11798_v46  ;;  %v11800_v5 = vand.u32 4294901760, %v8780_v44  ;;  %v11801_v16 = vld [vmem:[#allocation61_spill] sm:$0xff]  ;;  %v11808_v33 = vld [vmem:[#allocation2_spill] sm:$0xff] }
  0xa8   : > { %v2190_v23 = vsub.f32 %v8771_v34, %v11795_v39  ;;  %11797 = vst [vmem:[#allocation142_spill] sm:$0xff] %v8845_v57  ;;  %6915 = vmatprep.subr.bf16.mxu0 %v6914_v1  ;;  %v8851_v15 = vsub.f32 %v8777_v45, %v11799_v43  ;;  %v6918_v40 = vpack.c.bf16 %v8557_v0, %v8552_v56  ;;  %v11802_v1 = vand.u32 4294901760, %v8791_v29  ;;  %v11804_v34 = vld [vmem:[#allocation32_spill] sm:$0xff] }
  0xa9   : > { %11796 = vst [vmem:[#allocation141_spill] sm:$0xff] %v8843_v30  ;;  %v8856_v28 = vsub.f32 %v8780_v44, %v11800_v5  ;;  %962 = vmatprep.mubr.f32.mxu1 %v11801_v16  ;;  %v11803_v43 = vand.u32 4294901760, %v8794_v41  ;;  %7245 = vmatpush3.bf16.msra.mxu1 %v11804_v34  ;;  %v8874_v5 = vsub.f32 %v214_v47, %v8826_v54  ;;  %v2182_v44 = vand.u32 4294901760, %v2181_v63  ;;  %v225_v47 = vld [vmem:[%s7609_s25 + $0x180] sm:$0xff] }
  0xaa   : > { %v8865_v46 = vsub.f32 %v8791_v29, %v11802_v1  ;;  %2168 = vmatmul.mubr.f32.gmra.mrb[50].mxu0 %v2167_v21  ;;  %v11806_v39 = vand.u32 4294901760, %v8800_v59  ;;  %v11807_v1 = vand.u32 4294901760, %v8803_v8  ;;  %6751 = vmatprep.subr.bf16.mxu1 %v11808_v33  ;;  %v8888_v34 = vsub.f32 %v220_v53, %v8834_v42  ;;  %v245_v33 = vld [vmem:[%s7609_s25 + $0x220] sm:$0xff] }
  0xab   : > { %v8870_v45 = vsub.f32 %v8794_v41, %v11803_v43  ;;  %11805 = vst [vmem:[#allocation32_spill] sm:$0xff] %v8874_v5  ;;  %2177 = vmatprep.mubr.f32.mxu0 %v2176_v11  ;;  %v2191_v21 = vand.u32 4294901760, %v2190_v23  ;;  %6917 = vmatpush3.bf16.msra.mxu0 %v6916_v25  ;;  %v6920_v63 = vpack.c.bf16 %v8569_v19, %v8564_v6  ;;  %v2197_v54 = vand.u32 4294901760, %v8851_v15 }
  0xac   : > { %v8879_v16 = vsub.f32 %v8800_v59, %v11806_v39  ;;  %v8884_v29 = vsub.f32 %v8803_v8, %v11807_v1  ;;  %11809 = vst [vmem:[#allocation143_spill] sm:$0xff] %v8888_v34  ;;  %v8895_v43 = vsub.f32 %v219_v27, %v8845_v57  ;;  %v11811_v1 = vld [vmem:[#allocation64_spill] sm:$0xff]  ;;  %v2206_v53 = vand.u32 4294901760, %v8856_v28  ;;  %6919 = vmatprep.subr.bf16.mxu0 %v6918_v40  ;;  %v224_v39 = vld [vmem:[%s7609_s25 + $0x178] sm:$0xff]  ;;  %v11813_v27 = vld [vmem:[#allocation66_spill] sm:$0xff] }
  0xad   : > { %964 = vmatmul.mubr.f32.gmra.mrb[48].mxu1 %v11811_v1  ;;  %v11812_v11 = vand.u32 4294901760, %v8819_v10  ;;  %v6922_v25 = vpack.c.bf16 %v8584_v31, %v8574_v36  ;;  %v2212_v1 = vand.u32 4294901760, %v8865_v46  ;;  %v6924_v15 = vpack.c.bf16 %v8607_v22, %v8602_v32  ;;  %v230_v57 = vld [vmem:[%s7609_s25 + $0x1a8] sm:$0xff]  ;;  %v235_v8 = vld [vmem:[%s7609_s25 + $0x1d0] sm:$0xff] }
  0xae   : > { %11810 = vst [vmem:[#allocation144_spill] sm:$0xff] %v8895_v43  ;;  %969 = vmatprep.mubr.f32.mxu1 %v11813_v27  ;;  %v8913_v40 = vand.u32 4294901760, %v225_v47  ;;  %2183 = vmatmul.mubr.f32.gmra.mrb[52].mxu0 %v2182_v44  ;;  %v2221_v42 = vand.u32 4294901760, %v8870_v45  ;;  %v234_v59 = vld [vmem:[%s7609_s25 + $0x1c8] sm:$0xff]  ;;  %v11815_v28 = vand.u32 4294901760, %v8843_v30  ;;  %v6926_v45 = vpack.c.bf16 %v8622_v26, %v8617_v17  ;;  %v240_v27 = vld [vmem:[%s7609_s25 + $0x1f8] sm:$0xff] }
  0xaf   : > { %v8903_v23 = vsub.f32 %v8819_v10, %v11812_v11  ;;  %v229_v11 = vld [vmem:[%s7609_s25 + $0x1a0] sm:$0xff]  ;;  %2192 = vmatprep.mubr.f32.mxu0 %v2191_v21  ;;  %6921 = vmatpush3.bf16.msra.mxu0 %v6920_v63  ;;  %v8931_v10 = vand.u32 4294901760, %v224_v39  ;;  %v239_v46 = vld [vmem:[%s7609_s25 + $0x1f0] sm:$0xff]  ;;  %v6928_v63 = vpack.c.bf16 %v8636_v38, %v8627_v4  ;;  %v11820_v35 = vand.u32 4294901760, %v8874_v5  ;;  %v250_v38 = vld [vmem:[%s7609_s25 + $0x248] sm:$0xff] }
  0xb0   : > { %11814 = vst [vmem:[#allocation145_spill] sm:$0xff] %v8913_v40  ;;  %v8926_v41 = vsub.f32 %v8843_v30, %v11815_v28  ;;  %6923 = vmatprep.subr.bf16.mxu0 %v6922_v25  ;;  %v8940_v28 = vand.u32 4294901760, %v230_v57  ;;  %v8942_v44 = vand.u32 4294901760, %v229_v11  ;;  %v244_v30 = vld [vmem:[%s7609_s25 + $0x218] sm:$0xff]  ;;  %v8954_v21 = vand.u32 4294901760, %v235_v8 }
  0xb1   : > { %11816 = vst [vmem:[#allocation146_spill] sm:$0xff] %v8931_v10  ;;  %971 = vmatmul.mubr.f32.gmra.mrb[50].mxu1 %v11817_v37  ;;  %v8949_v26 = vsub.f32 %v8874_v5, %v11820_v35  ;;  %v8952_v37 = vsub.f32 %v225_v47, %v8913_v40  ;;  %v8956_v25 = vand.u32 4294901760, %v234_v59  ;;  %v11824_v4 = vand.u32 4294901760, %v8888_v34 }
  0xb2   : > { %11818 = vst [vmem:[#allocation147_spill] sm:$0xff] %v8940_v28  ;;  %11819 = vst [vmem:[#allocation148_spill] sm:$0xff] %v8942_v44  ;;  %976 = vmatprep.mubr.f32.mxu1 %v8059_v62  ;;  %2198 = vmatmul.mubr.f32.gmra.mrb[54].mxu0 %v2197_v54  ;;  %v8964_v62 = vand.u32 4294901760, %v240_v27  ;;  %v8966_v22 = vand.u32 4294901760, %v239_v46  ;;  %v8968_v35 = vand.u32 4294901760, %v245_v33  ;;  %v11828_v40 = vand.u32 4294901760, %v8895_v43 }
  0xb3   : > { %11821 = vst [vmem:[#allocation149_spill] sm:$0xff] %v8952_v37  ;;  %11822 = vst [vmem:[#allocation150_spill] sm:$0xff] %v8954_v21  ;;  %v8962_v17 = vsub.f32 %v8888_v34, %v11824_v4  ;;  %2207 = vmatprep.mubr.f32.mxu0 %v2206_v53  ;;  %6925 = vmatpush3.bf16.msra.mxu0 %v6924_v15  ;;  %v8977_v5 = vsub.f32 %v224_v39, %v8931_v10  ;;  %v8979_v4 = vand.u32 4294901760, %v244_v30  ;;  %v255_v39 = vld [vmem:[%s7609_s25 + $0x270] sm:$0xff] }
  0xb4   : > { %11823 = vst [vmem:[#allocation151_spill] sm:$0xff] %v8956_v25  ;;  %11825 = vst [vmem:[#allocation152_spill] sm:$0xff] %v8964_v62  ;;  %v8974_v54 = vsub.f32 %v8895_v43, %v11828_v40  ;;  %6927 = vmatprep.subr.bf16.mxu0 %v6926_v45  ;;  %v8983_v34 = vsub.f32 %v230_v57, %v8940_v28  ;;  %v8986_v53 = vsub.f32 %v229_v11, %v8942_v44  ;;  %v249_v40 = vld [vmem:[%s7609_s25 + $0x240] sm:$0xff]  ;;  %v11834_v43 = vld [vmem:[#allocation76_spill] sm:$0xff] }
  0xb5   : > { %11826 = vst [vmem:[#allocation153_spill] sm:$0xff] %v8966_v22  ;;  %11827 = vst [vmem:[#allocation154_spill] sm:$0xff] %v8968_v35  ;;  %978 = vmatmul.mubr.f32.gmra.mrb[52].mxu1 %v8065_v50  ;;  %v6930_v15 = vpack.c.bf16 %v8651_v14, %v8641_v3  ;;  %v8990_v47 = vand.u32 4294901760, %v250_v38  ;;  %v8997_v45 = vsub.f32 %v235_v8, %v8954_v21  ;;  %v9018_v11 = vand.u32 4294901760, %v249_v40 }
  0xb6   : > { %11829 = vst [vmem:[#allocation155_spill] sm:$0xff] %v8977_v5  ;;  %11830 = vst [vmem:[#allocation156_spill] sm:$0xff] %v8979_v4  ;;  %983 = vmatprep.mubr.f32.mxu1 %v11834_v43  ;;  %v9000_v57 = vsub.f32 %v234_v59, %v8956_v25  ;;  %2213 = vmatmul.mubr.f32.gmra.mrb[56].mxu0 %v2212_v1  ;;  %v9004_v50 = vsub.f32 %v240_v27, %v8964_v62  ;;  %v11385_v8 = vand.u32 4294901760, %v8453_v49 }
  0xb7   : > { %11831 = vst [vmem:[#allocation157_spill] sm:$0xff] %v8983_v34  ;;  %11832 = vst [vmem:[#allocation158_spill] sm:$0xff] %v8986_v53  ;;  %v9007_v44 = vsub.f32 %v239_v46, %v8966_v22  ;;  %v9010_v43 = vsub.f32 %v245_v33, %v8968_v35  ;;  %2222 = vmatprep.mubr.f32.mxu0 %v2221_v42  ;;  %6929 = vmatpush3.bf16.msra.mxu0 %v6928_v63  ;;  %v11843_v33 = vand.u32 4294901760, %v8879_v16  ;;  %v11846_v16 = vld [vmem:[#allocation122_spill] sm:$0xff] }
  0xb8   : > { %11833 = vst [vmem:[#allocation159_spill] sm:$0xff] %v8990_v47  ;;  %11835 = vst [vmem:[#allocation160_spill] sm:$0xff] %v8997_v45  ;;  %v6932_v59 = vpack.c.bf16 %v8671_v58, %v8666_v2  ;;  %v9016_v1 = vsub.f32 %v244_v30, %v8979_v4  ;;  %6931 = vmatprep.subr.bf16.mxu0 %v6930_v15  ;;  %v6934_v42 = vpack.c.bf16 %v8683_v9, %v8676_v61  ;;  %v11849_v4 = vld [vmem:[#allocation82_spill] sm:$0xff] }
  0xb9   : > { %11836 = vst [vmem:[#allocation161_spill] sm:$0xff] %v9000_v57  ;;  %11837 = vst [vmem:[#allocation162_spill] sm:$0xff] %v9004_v50  ;;  %985 = vmatmul.mubr.f32.gmra.mrb[54].mxu1 %v8109_v55  ;;  %v9026_v46 = vsub.f32 %v250_v38, %v8990_v47  ;;  %v6936_v47 = vpack.c.bf16 %v8699_v51, %v8688_v52  ;;  %v11844_v30 = vand.u32 4294901760, %v8884_v29  ;;  %v11848_v38 = vand.u32 4294901760, %v8468_v7 }
  0xba   : > { %11838 = vst [vmem:[#allocation163_spill] sm:$0xff] %v9007_v44  ;;  %11839 = vst [vmem:[#allocation164_spill] sm:$0xff] %v9010_v43  ;;  %990 = vmatprep.mubr.f32.mxu1 %v8149_v18  ;;  %2228 = vmatmul.mubr.f32.gmra.mrb[58].mxu0 %v11843_v33  ;;  %v9045_v27 = vsub.f32 %v249_v40, %v9018_v11  ;;  %v11847_v33 = vld [vmem:[#allocation125_spill] sm:$0xff]  ;;  %v11852_v40 = vld [vmem:[#allocation108_spill] sm:$0xff]  ;;  %v11854_v55 = vand.u32 4294901760, %v8952_v37  ;;  %v11858_v62 = vand.u32 4294901760, %v8903_v23 }
  0xbb   : > { %11840 = vst [vmem:[#allocation165_spill] sm:$0xff] %v9016_v1  ;;  %11841 = vst [vmem:[#allocation166_spill] sm:$0xff] %v9018_v11  ;;  %2237 = vmatprep.mubr.f32.mxu0 %v11844_v30  ;;  %6933 = vmatpush3.bf16.msra.mxu0 %v6932_v59  ;;  %v6938_v15 = vpack.c.bf16 %v11847_v33, %v11846_v16  ;;  %v9053_v10 = vpack.c.bf16 %v11848_v38, %v11385_v8  ;;  %v9057_v59 = vand.u32 4294901760, %v255_v39  ;;  %v11851_v30 = vld [vmem:[#allocation107_spill] sm:$0xff]  ;;  %v11853_v18 = vld [vmem:[#allocation84_spill] sm:$0xff] }
  0xbc   : > { %11842 = vst [vmem:[#allocation167_spill] sm:$0xff] %v9026_v46  ;;  %11845 = vst [vmem:[#allocation168_spill] sm:$0xff] %v9045_v27  ;;  %6935 = vmatprep.subr.bf16.mxu0 %v6934_v42  ;;  %v2498_v63 = vand.u32 4294901760, %v11851_v30  ;;  %v2505_v11 = vand.u32 4294901760, %v11852_v40  ;;  %v2280_v35 = vsub.f32 %v8952_v37, %v11854_v55  ;;  %v11855_v38 = vand.u32 4294901760, %v8977_v5 }
  0xbd   : > { %992 = vmatmul.mubr.f32.gmra.mrb[56].mxu1 %v11849_v4  ;;  %11850 = vst [vmem:[#allocation122_spill] sm:$0xff] %v9057_v59  ;;  %v11856_v42 = vand.u32 4294901760, %v8983_v34  ;;  %v11857_v4 = vand.u32 4294901760, %v8986_v53  ;;  %v11859_v55 = vand.u32 4294901760, %v8997_v45 }
  0xbe   : > { %997 = vmatprep.mubr.f32.mxu1 %v11853_v18  ;;  %v9068_v8 = vsub.f32 %v8977_v5, %v11855_v38  ;;  %v254_v18 = vld [vmem:[%s7609_s25 + $0x268] sm:$0xff]  ;;  %2243 = vmatmul.mubr.f32.gmra.mrb[60].mxu0 %v11858_v62  ;;  %v11860_v38 = vand.u32 4294901760, %v9000_v57  ;;  %v11863_v62 = vand.u32 4294901760, %v8926_v41  ;;  %v11869_v41 = vand.u32 4294901760, %v9026_v46 }
  0xbf   : > { %v9073_v29 = vsub.f32 %v8983_v34, %v11856_v42  ;;  %v9078_v22 = vsub.f32 %v8986_v53, %v11857_v4  ;;  %v9086_v25 = vsub.f32 %v8997_v45, %v11859_v55  ;;  %v11861_v42 = vand.u32 4294901760, %v9004_v50  ;;  %6937 = vmatpush3.bf16.msra.mxu0 %v6936_v47  ;;  %v11867_v53 = vld [vmem:[#allocation129_spill] sm:$0xff] }
  0xc0   : > { %v9091_v21 = vsub.f32 %v9000_v57, %v11860_v38  ;;  %v11862_v4 = vand.u32 4294901760, %v9007_v44  ;;  %2252 = vmatprep.mubr.f32.mxu0 %v11863_v62  ;;  %v11864_v55 = vand.u32 4294901760, %v9010_v43  ;;  %v11865_v38 = vand.u32 4294901760, %v9016_v1  ;;  %6939 = vmatprep.subr.bf16.mxu0 %v6938_v15 }
  0xc1   : > { %v9096_v28 = vsub.f32 %v9004_v50, %v11861_v42  ;;  %v11866_v50 = vld [vmem:[#allocation126_spill] sm:$0xff]  ;;  %v9122_v62 = vsub.f32 %v9026_v46, %v11869_v41  ;;  %v9125_v47 = vsub.f32 %v255_v39, %v9057_v59  ;;  %v2272_v42 = vand.u32 4294901760, %v8974_v54 }
  0xc2   : > { %v9101_v23 = vsub.f32 %v9007_v44, %v11862_v4  ;;  %v9108_v45 = vsub.f32 %v9010_v43, %v11864_v55  ;;  %v9113_v57 = vsub.f32 %v9016_v1, %v11865_v38  ;;  %v6940_v4 = vpack.c.bf16 %v11867_v53, %v11866_v50  ;;  %v11868_v44 = vld [vmem:[#allocation88_spill] sm:$0xff]  ;;  %v11872_v1 = vld [vmem:[#allocation91_spill] sm:$0xff] }
  0xc3   : > { %999 = vmatmul.mubr.f32.gmra.mrb[58].mxu1 %v11868_v44  ;;  %11870 = vst [vmem:[#allocation125_spill] sm:$0xff] %v9125_v47  ;;  %v9127_v55 = vand.u32 4294901760, %v254_v18  ;;  %v6974_v38 = vpack.c.bf16 %v2505_v11, %v2498_v63  ;;  %v2281_v43 = vand.u32 4294901760, %v2280_v35  ;;  %v2287_v34 = vand.u32 4294901760, %v9068_v8  ;;  %v11884_v35 = vld [vmem:[#allocation65_spill] sm:$0xff] }
  0xc4   : > { %1004 = vmatprep.mubr.f32.mxu1 %v11872_v1  ;;  %v11873_v44 = vand.u32 4294901760, %v8949_v26  ;;  %v2296_v41 = vand.u32 4294901760, %v9073_v29  ;;  %v2302_v15 = vand.u32 4294901760, %v9078_v22  ;;  %v11874_v46 = vand.u32 4294901760, %v8962_v17  ;;  %6941 = vmatpush3.bf16.msra.mxu0 %v6940_v4 }
  0xc5   : > { %11871 = vst [vmem:[#allocation107_spill] sm:$0xff] %v9127_v55  ;;  %v11876_v8 = vand.u32 4294901760, %v9045_v27  ;;  %6975 = vmatprep.subr.bf16.mxu0 %v6974_v38  ;;  %v11416_v26 = vand.u32 4294901760, %v8506_v13  ;;  %v11417_v4 = vand.u32 4294901760, %v8511_v12  ;;  %v2499_v22 = vsub.f32 %v11851_v30, %v2498_v63 }
  0xc6   : > { %2258 = vmatmul.mubr.f32.gmra.mrb[62].mxu0 %v11873_v44  ;;  %v11875_v44 = vld [vmem:[#allocation92_spill] sm:$0xff]  ;;  %v2506_v17 = vsub.f32 %v11852_v40, %v2505_v11  ;;  %v11879_v54 = vand.u32 4294901760, %v8468_v7 }
  0xc7   : > { %2267 = vmatprep.mubr.f32.mxu0 %v11874_v46  ;;  %1006 = vmatmul.mubr.f32.gmra.mrb[60].mxu1 %v11875_v44  ;;  %v9149_v29 = vsub.f32 %v9045_v27, %v11876_v8  ;;  %v9153_v46 = vsub.f32 %v254_v18, %v9127_v55  ;;  %v11418_v8 = vand.u32 4294901760, %v8547_v20  ;;  %v11878_v18 = vand.u32 4294901760, %v8453_v49 }
  0xc8   : > { %1011 = vmatprep.mubr.f32.mxu1 %v8257_v24  ;;  %v2500_v39 = vand.u32 4294901760, %v2499_v22  ;;  %v2394_v63 = vsub.f32 %v8468_v7, %v11879_v54  ;;  %v2520_v22 = vsub.f32 %v8511_v12, %v11417_v4  ;;  %v11896_v55 = vand.u32 4294901760, %v9086_v25 }
  0xc9   : > { %11877 = vst [vmem:[#allocation108_spill] sm:$0xff] %v9153_v46  ;;  %v2387_v38 = vsub.f32 %v8453_v49, %v11878_v18  ;;  %v2513_v49 = vsub.f32 %v8506_v13, %v11416_v26  ;;  %v11881_v18 = vand.u32 4294901760, %v8531_v48  ;;  %v2408_v54 = vsub.f32 %v8547_v20, %v11418_v8 }
  0xca   : > { %2273 = vmatmul.mubr.f32.gmra.mrb[64].mxu0 %v2272_v42  ;;  %v2507_v42 = vand.u32 4294901760, %v2506_v17  ;;  %v2395_v40 = vand.u32 4294901760, %v2394_v63  ;;  %v2521_v4 = vand.u32 4294901760, %v2520_v22  ;;  %v11885_v8 = vand.u32 4294901760, %v8552_v56  ;;  %v11897_v22 = vld [vmem:[#allocation117_spill] sm:$0xff] }
  0xcb   : > { %2282 = vmatprep.mubr.f32.mxu0 %v2281_v43  ;;  %1013 = vmatmul.mubr.f32.gmra.mrb[62].mxu1 %v8291_v60  ;;  %v2388_v11 = vand.u32 4294901760, %v2387_v38  ;;  %v11880_v43 = vld [vmem:[#allocation63_spill] sm:$0xff]  ;;  %v2401_v7 = vsub.f32 %v8531_v48, %v11881_v18  ;;  %v2514_v63 = vand.u32 4294901760, %v2513_v49  ;;  %v2409_v1 = vand.u32 4294901760, %v2408_v54  ;;  %v11889_v49 = vld [vmem:[#allocation68_spill] sm:$0xff]  ;;  %v11901_v60 = vld [vmem:[#allocation118_spill] sm:$0xff] }
  0xcc   : > { %1220 = vmatprep.mubr.f32.mxu1 %v11880_v43  ;;  %v9188_v26 = vpack.c.bf16 %v2507_v42, %v2500_v39  ;;  %v11886_v17 = vand.u32 4294901760, %v8557_v0  ;;  %v11887_v42 = vand.u32 4294901760, %v8564_v6  ;;  %v11894_v38 = vld [vmem:[#allocation4_spill] sm:$0xff]  ;;  %v11903_v25 = vand.u32 4294901760, %v8602_v32 }
  0xcd   : > { %v9190_v30 = vpack.c.bf16 %v2395_v40, %v2388_v11  ;;  %v2402_v59 = vand.u32 4294901760, %v2401_v7  ;;  %v11888_v11 = vld [vmem:[#allocation3_spill] sm:$0xff]  ;;  %v9206_v7 = vpack.c.bf16 %v2521_v4, %v2514_v63  ;;  %v11905_v4 = vld [vmem:[#allocation5_spill] sm:$0xff] }
  0xce   : > { %2288 = vmatmul.mubr.f32.gmra.mrb[66].mxu0 %v2287_v34  ;;  %11882 = vst [vmem:[#allocation126_spill] sm:$0xff] %v9188_v26  ;;  %v2527_v34 = vsub.f32 %v8552_v56, %v11885_v8  ;;  %v2534_v39 = vsub.f32 %v8557_v0, %v11886_v17  ;;  %v11890_v40 = vld [vmem:[#allocation115_spill] sm:$0xff]  ;;  %v11893_v8 = vand.u32 4294901760, %v8569_v19  ;;  %v11895_v17 = vld [vmem:[#allocation116_spill] sm:$0xff]  ;;  %v11933_v26 = vld [vmem:[#allocation14_spill] sm:$0xff] }
  0xcf   : > { %2297 = vmatprep.mubr.f32.mxu0 %v2296_v41  ;;  %11883 = vst [vmem:[#allocation129_spill] sm:$0xff] %v9190_v30  ;;  %1223 = vmatmul.mubr.f32.vlgmr.msra.gmra.mrb[64].mxu1 %v11884_v35  ;;  %v2415_v41 = vsub.f32 %v8564_v6, %v11887_v42  ;;  %11891 = vst [vmem:[#allocation63_spill] sm:$0xff] %v9206_v7  ;;  %v9208_v54 = vpack.c.bf16 %v2409_v1, %v2402_v59  ;;  %v11898_v1 = vand.u32 4294901760, %v8574_v36  ;;  %v11907_v7 = vld [vmem:[#allocation119_spill] sm:$0xff] }
  0xd0   : > { %6753 = vmatpush3.bf16.msra.mxu1 %v11888_v11  ;;  %1229 = vmatprep.mubr.f32.mxu1 %v11889_v49  ;;  %v2422_v18 = vsub.f32 %v8569_v19, %v11893_v8  ;;  %v2528_v42 = vand.u32 4294901760, %v2527_v34  ;;  %v2535_v24 = vand.u32 4294901760, %v2534_v39  ;;  %v11899_v8 = vand.u32 4294901760, %v8584_v31  ;;  %v11931_v35 = vld [vmem:[#allocation11_spill] sm:$0xff] }
  0xd1   : > { %11892 = vst [vmem:[#allocation3_spill] sm:$0xff] %v9208_v54  ;;  %6755 = vmatprep.subr.bf16.mxu1 %v11894_v38  ;;  %v2416_v44 = vand.u32 4294901760, %v2415_v41  ;;  %v2541_v59 = vsub.f32 %v8574_v36, %v11898_v1  ;;  %v11906_v1 = vld [vmem:[#allocation74_spill] sm:$0xff] }
  0xd2   : > { %2303 = vmatmul.mubr.f32.gmra.mrb[68].mxu0 %v2302_v15  ;;  %v2423_v63 = vand.u32 4294901760, %v2422_v18  ;;  %v2548_v54 = vsub.f32 %v8584_v31, %v11899_v8  ;;  %v11900_v15 = vld [vmem:[#allocation69_spill] sm:$0xff]  ;;  %v9226_v39 = vpack.c.bf16 %v2535_v24, %v2528_v42  ;;  %v11904_v18 = vand.u32 4294901760, %v11890_v40  ;;  %v11909_v24 = vld [vmem:[#allocation6_spill] sm:$0xff] }
  0xd3   : > { %2312 = vmatprep.mubr.f32.mxu0 %v11896_v55  ;;  %1232 = vmatmul.mubr.f32.gmra.mrb[66].mxu1 %v11900_v15  ;;  %v2429_v55 = vsub.f32 %v8602_v32, %v11903_v25  ;;  %v11425_v8 = vand.u32 4294901760, %v11907_v7  ;;  %v2542_v27 = vand.u32 4294901760, %v2541_v59  ;;  %v11910_v42 = vand.u32 4294901760, %v9091_v21 }
  0xd4   : > { %11902 = vst [vmem:[#allocation115_spill] sm:$0xff] %v9226_v39  ;;  %v2436_v41 = vsub.f32 %v11890_v40, %v11904_v18  ;;  %6757 = vmatpush3.bf16.msra.mxu1 %v11905_v4  ;;  %1238 = vmatprep.mubr.f32.mxu1 %v11906_v1  ;;  %v9237_v30 = vpack.c.bf16 %v2423_v63, %v2416_v44  ;;  %v2549_v34 = vand.u32 4294901760, %v2548_v54  ;;  %v11911_v18 = vand.u32 4294901760, %v11895_v17 }
  0xd5   : > { %6759 = vmatprep.subr.bf16.mxu1 %v11909_v24  ;;  %v2430_v39 = vand.u32 4294901760, %v2429_v55  ;;  %v11912_v1 = vand.u32 4294901760, %v9096_v28  ;;  %v11914_v54 = vand.u32 4294901760, %v11897_v22  ;;  %v11915_v21 = vand.u32 4294901760, %v11901_v60 }
  0xd6   : > { %11908 = vst [vmem:[#allocation4_spill] sm:$0xff] %v9237_v30  ;;  %2318 = vmatmul.mubr.f32.gmra.mrb[70].mxu0 %v11910_v42  ;;  %v2437_v15 = vand.u32 4294901760, %v2436_v41  ;;  %v2555_v49 = vsub.f32 %v11895_v17, %v11911_v18  ;;  %v9248_v44 = vpack.c.bf16 %v2549_v34, %v2542_v27  ;;  %v2450_v55 = vsub.f32 %v11907_v7, %v11425_v8  ;;  %v11916_v41 = vld [vmem:[#allocation75_spill] sm:$0xff]  ;;  %v11919_v18 = vld [vmem:[#allocation78_spill] sm:$0xff] }
  0xd7   : > { %2327 = vmatprep.mubr.f32.mxu0 %v11912_v1  ;;  %v2562_v63 = vsub.f32 %v11897_v22, %v11914_v54  ;;  %v2443_v59 = vsub.f32 %v11901_v60, %v11915_v21  ;;  %1241 = vmatmul.mubr.f32.gmra.mrb[68].mxu1 %v11916_v41  ;;  %v11918_v1 = vld [vmem:[#allocation7_spill] sm:$0xff]  ;;  %v11920_v30 = vld [vmem:[#allocation10_spill] sm:$0xff]  ;;  %v11921_v8 = vand.u32 4294901760, %v9101_v23  ;;  %v11924_v54 = vand.u32 4294901760, %v8666_v2 }
  0xd8   : > { %11913 = vst [vmem:[#allocation116_spill] sm:$0xff] %v9248_v44  ;;  %v9262_v27 = vpack.c.bf16 %v2437_v15, %v2430_v39  ;;  %v2556_v34 = vand.u32 4294901760, %v2555_v49  ;;  %6761 = vmatpush3.bf16.msra.mxu1 %v11918_v1  ;;  %1247 = vmatprep.mubr.f32.mxu1 %v11919_v18  ;;  %v2451_v44 = vand.u32 4294901760, %v2450_v55  ;;  %v11922_v15 = vand.u32 4294901760, %v8641_v3 }
  0xd9   : > { %v2563_v21 = vand.u32 4294901760, %v2562_v63  ;;  %v2444_v25 = vand.u32 4294901760, %v2443_v59  ;;  %6763 = vmatprep.subr.bf16.mxu1 %v11920_v30  ;;  %v11923_v39 = vand.u32 4294901760, %v8651_v14  ;;  %v2457_v63 = vsub.f32 %v8666_v2, %v11924_v54 }
  0xda   : > { %11917 = vst [vmem:[#allocation117_spill] sm:$0xff] %v9262_v27  ;;  %2333 = vmatmul.mubr.f32.gmra.mrb[72].mxu0 %v11921_v8  ;;  %v2569_v49 = vsub.f32 %v8641_v3, %v11922_v15  ;;  %v11925_v59 = vand.u32 4294901760, %v9108_v45  ;;  %v11926_v23 = vand.u32 4294901760, %v9125_v47  ;;  %v11929_v15 = vand.u32 4294901760, %v8671_v58  ;;  %v11932_v45 = vld [vmem:[#allocation85_spill] sm:$0xff] }
  0xdb   : > { %v2576_v28 = vsub.f32 %v8651_v14, %v11923_v39  ;;  %v9285_v55 = vpack.c.bf16 %v2563_v21, %v2556_v34  ;;  %v9287_v42 = vpack.c.bf16 %v2451_v44, %v2444_v25  ;;  %v11930_v39 = vld [vmem:[#allocation79_spill] sm:$0xff]  ;;  %v2458_v54 = vand.u32 4294901760, %v2457_v63 }
  0xdc   : > { %2342 = vmatprep.mubr.f32.mxu0 %v11925_v59  ;;  %v2370_v8 = vsub.f32 %v9125_v47, %v11926_v23  ;;  %v2464_v27 = vsub.f32 %v8671_v58, %v11929_v15  ;;  %1250 = vmatmul.mubr.f32.gmra.mrb[70].mxu1 %v11930_v39  ;;  %v2570_v18 = vand.u32 4294901760, %v2569_v49  ;;  %v11934_v34 = vand.u32 4294901760, %v9113_v57  ;;  %v11946_v47 = vld [vmem:[#allocation22_spill] sm:$0xff] }
  0xdd   : > { %11927 = vst [vmem:[#allocation118_spill] sm:$0xff] %v9285_v55  ;;  %11928 = vst [vmem:[#allocation5_spill] sm:$0xff] %v9287_v42  ;;  %v2577_v41 = vand.u32 4294901760, %v2576_v28  ;;  %6765 = vmatpush3.bf16.msra.mxu1 %v11931_v35  ;;  %1256 = vmatprep.mubr.f32.mxu1 %v11932_v45  ;;  %v2362_v25 = vand.u32 4294901760, %v9149_v29  ;;  %v11935_v44 = vand.u32 4294901760, %v9153_v46  ;;  %v11937_v28 = vand.u32 4294901760, %v9122_v62 }
  0xde   : > { %v2465_v59 = vand.u32 4294901760, %v2464_v27  ;;  %6767 = vmatprep.subr.bf16.mxu1 %v11933_v26  ;;  %2348 = vmatmul.mubr.f32.gmra.mrb[74].mxu0 %v11934_v34  ;;  %v2371_v49 = vand.u32 4294901760, %v2370_v8  ;;  %v11939_v27 = vld [vmem:[#allocation86_spill] sm:$0xff]  ;;  %v11426_v15 = vand.u32 4294901760, %v8676_v61  ;;  %v11427_v57 = vand.u32 4294901760, %v8683_v9  ;;  %v11940_v34 = vld [vmem:[#allocation15_spill] sm:$0xff] }
  0xdf   : > { %v2376_v21 = vsub.f32 %v9153_v46, %v11935_v44  ;;  %v9302_v23 = vpack.c.bf16 %v2577_v41, %v2570_v18  ;;  %2357 = vmatprep.mubr.f32.mxu0 %v11937_v28  ;;  %v11941_v29 = vld [vmem:[#allocation87_spill] sm:$0xff]  ;;  %v11428_v44 = vand.u32 4294901760, %v8688_v52  ;;  %v11433_v41 = vand.u32 4294901760, %v8699_v51  ;;  %v11942_v18 = vld [vmem:[#allocation18_spill] sm:$0xff] }
  0xe0   : > { %v9306_v63 = vpack.c.bf16 %v2465_v59, %v2458_v54  ;;  %1259 = vmatmul.mubr.f32.gmra.mrb[72].mxu1 %v11939_v27  ;;  %v2583_v8 = vsub.f32 %v8676_v61, %v11426_v15  ;;  %v2590_v54 = vsub.f32 %v8683_v9, %v11427_v57  ;;  %v11944_v42 = vld [vmem:[#allocation19_spill] sm:$0xff] }
  0xe1   : > { %11936 = vst [vmem:[#allocation119_spill] sm:$0xff] %v9302_v23  ;;  %6769 = vmatpush3.bf16.msra.mxu1 %v11940_v34  ;;  %1265 = vmatprep.mubr.f32.mxu1 %v11941_v29  ;;  %v2377_v62 = vand.u32 4294901760, %v2376_v21  ;;  %v2471_v59 = vsub.f32 %v8688_v52, %v11428_v44  ;;  %v2478_v28 = vsub.f32 %v8699_v51, %v11433_v41  ;;  %v11945_v57 = vld [vmem:[#allocation95_spill] sm:$0xff]  ;;  %v11435_v44 = vand.u32 4294901760, %v11867_v53  ;;  %v11958_v29 = vld [vmem:[#allocation12_spill] sm:$0xff] }
  0xe2   : > { %11938 = vst [vmem:[#allocation6_spill] sm:$0xff] %v9306_v63  ;;  %6771 = vmatprep.subr.bf16.mxu1 %v11942_v18  ;;  %2363 = vmatmul.mubr.f32.gmra.mrb[76].mxu0 %v2362_v25  ;;  %v11943_v63 = vld [vmem:[#allocation89_spill] sm:$0xff]  ;;  %v11434_v25 = vand.u32 4294901760, %v11846_v16  ;;  %v2584_v15 = vand.u32 4294901760, %v2583_v8  ;;  %v2591_v23 = vand.u32 4294901760, %v2590_v54 }
  0xe3   : > { %2372 = vmatprep.mubr.f32.mxu0 %v2371_v49  ;;  %v2472_v55 = vand.u32 4294901760, %v2471_v59  ;;  %v2479_v46 = vand.u32 4294901760, %v2478_v28  ;;  %v11948_v54 = vld [vmem:[#allocation113_spill] sm:$0xff]  ;;  %v11951_v59 = vand.u32 4294901760, %v11866_v50 }
  0xe4   : > { %1268 = vmatmul.mubr.f32.gmra.mrb[74].mxu1 %v11943_v63  ;;  %v9336_v41 = vpack.c.bf16 %v2591_v23, %v2584_v15  ;;  %v2597_v8 = vsub.f32 %v11846_v16, %v11434_v25  ;;  %v2492_v23 = vsub.f32 %v11867_v53, %v11435_v44  ;;  %v11952_v15 = vld [vmem:[#allocation96_spill] sm:$0xff]  ;;  %v11954_v25 = vand.u32 4294901760, %v8511_v12 }
  0xe5   : > { %6773 = vmatpush3.bf16.msra.mxu1 %v11944_v42  ;;  %1274 = vmatprep.mubr.f32.mxu1 %v11945_v57  ;;  %v9342_v21 = vpack.c.bf16 %v2479_v46, %v2472_v55  ;;  %v11950_v57 = vand.u32 4294901760, %v11847_v33  ;;  %v2485_v28 = vsub.f32 %v11866_v50, %v11951_v59  ;;  %v11957_v59 = vld [vmem:[#allocation26_spill] sm:$0xff]  ;;  %v11959_v44 = vld [vmem:[#allocation120_spill] sm:$0xff]  ;;  %v11961_v12 = vand.u32 4294901760, %v8547_v20  ;;  %v11969_v20 = vld [vmem:[#allocation13_spill] sm:$0xff] }
  0xe6   : > { %6775 = vmatprep.subr.bf16.mxu1 %v11946_v47  ;;  %2378 = vmatmul.mubr.f32.gmra.mrb[78].mxu0 %v2377_v62  ;;  %11947 = vst [vmem:[#allocation7_spill] sm:$0xff] %v9336_v41  ;;  %v11953_v62 = vand.u32 4294901760, %v8506_v13  ;;  %v2598_v55 = vand.u32 4294901760, %v2597_v8  ;;  %v2493_v63 = vand.u32 4294901760, %v2492_v23  ;;  %v11960_v13 = vand.u32 4294901760, %v8531_v48  ;;  %v11968_v48 = vld [vmem:[#allocation2_spill] sm:$0xff] }
  0xe7   : > { %2850 = vmatprep.mubr.f32.mxu0 %v11948_v54  ;;  %11949 = vst [vmem:[#allocation10_spill] sm:$0xff] %v9342_v21  ;;  %v2604_v49 = vsub.f32 %v11847_v33, %v11950_v57  ;;  %v11955_v54 = vld [vmem:[#allocation23_spill] sm:$0xff]  ;;  %v11956_v21 = vld [vmem:[#allocation97_spill] sm:$0xff]  ;;  %v2486_v41 = vand.u32 4294901760, %v2485_v28  ;;  %v11963_v28 = vand.u32 4294901760, %v8552_v56  ;;  %v11964_v23 = vand.u32 4294901760, %v8557_v0 }
  0xe8   : > { %1277 = vmatmul.mubr.f32.gmra.mrb[76].mxu1 %v11952_v15  ;;  %v6978_v46 = vpack.c.bf16 %v11954_v25, %v11953_v62  ;;  %v6980_v25 = vpack.c.bf16 %v11961_v12, %v11960_v13  ;;  %v11977_v12 = vld [vmem:[#allocation35_spill] sm:$0xff] }
  0xe9   : > { %6777 = vmatpush3.bf16.msra.mxu1 %v11955_v54  ;;  %1283 = vmatprep.mubr.f32.mxu1 %v11956_v21  ;;  %v2605_v57 = vand.u32 4294901760, %v2604_v49  ;;  %v9370_v62 = vpack.c.bf16 %v2493_v63, %v2486_v41  ;;  %v11962_v49 = vld [vmem:[#allocation99_spill] sm:$0xff]  ;;  %v11971_v63 = vand.u32 4294901760, %v8564_v6  ;;  %v11972_v41 = vand.u32 4294901760, %v8569_v19  ;;  %v11979_v6 = vld [vmem:[#allocation20_spill] sm:$0xff]  ;;  %v11980_v19 = vld [vmem:[#allocation133_spill] sm:$0xff] }
  0xea   : > { %6779 = vmatprep.subr.bf16.mxu1 %v11957_v59  ;;  %2853 = vmatmul.mubr.f32.vlgmr.msra.gmra.mrb[80].mxu0 %v11958_v29  ;;  %v6982_v29 = vpack.c.bf16 %v11964_v23, %v11963_v28  ;;  %v11978_v28 = vand.u32 4294901760, %v11977_v12  ;;  %v11983_v23 = vld [vmem:[#allocation37_spill] sm:$0xff]  ;;  %v12002_v12 = vand.u32 4294901760, %v8671_v58  ;;  %v322_v58 = vld [vmem:[%s11051_s1 + $0x208] sm:$0xff] }
  0xeb   : > { %2859 = vmatprep.mubr.f32.mxu0 %v11959_v44  ;;  %6977 = vmatpush3.bf16.msra.mxu0 %v9053_v10  ;;  %v9368_v8 = vpack.c.bf16 %v2605_v57, %v2598_v55  ;;  %v11965_v44 = vld [vmem:[#allocation28_spill] sm:$0xff]  ;;  %v11966_v10 = vld [vmem:[#allocation31_spill] sm:$0xff]  ;;  %v6984_v56 = vpack.c.bf16 %v11972_v41, %v11971_v63  ;;  %v11975_v57 = vand.u32 4294901760, %v8574_v36  ;;  %v11989_v41 = vld [vmem:[#allocation134_spill] sm:$0xff] }
  0xec   : > { %1286 = vmatmul.mubr.f32.gmra.mrb[78].mxu1 %v11962_v49  ;;  %6979 = vmatprep.subr.bf16.mxu0 %v6978_v46  ;;  %v11967_v21 = vand.u32 4294901760, %v11966_v10  ;;  %v11970_v55 = vld [vmem:[#allocation123_spill] sm:$0xff]  ;;  %v11973_v46 = vld [vmem:[#allocation33_spill] sm:$0xff]  ;;  %v11986_v10 = vand.u32 4294901760, %v11897_v22 }
  0xed   : > { %6781 = vmatpush3.bf16.msra.mxu1 %v11965_v44  ;;  %v11974_v0 = vand.u32 4294901760, %v11973_v46  ;;  %v11993_v46 = vld [vmem:[#allocation41_spill] sm:$0xff] }
  0xee   : > { %1390 = vmatprep.mubr.f32.mxu1 %v11967_v21  ;;  %6815 = vmatprep.subr.bf16.mxu1 %v11968_v48  ;;  %v11976_v21 = vand.u32 4294901760, %v8584_v31  ;;  %v11984_v31 = vand.u32 4294901760, %v11983_v23  ;;  %v11994_v22 = vand.u32 4294901760, %v11993_v46  ;;  %v12021_v46 = vand.u32 4294901760, %v11866_v50  ;;  %v12030_v50 = vld [vmem:[#allocation57_spill] sm:$0xff] }
  0xef   : > { %2862 = vmatmul.mubr.f32.gmra.mrb[82].mxu0 %v11969_v20 }
  0xf0   : > { %2868 = vmatprep.mubr.f32.mxu0 %v11970_v55  ;;  %6981 = vmatpush3.bf16.msra.mxu0 %v6980_v25  ;;  %v6986_v13 = vpack.c.bf16 %v11976_v21, %v11975_v57  ;;  %v11981_v25 = vand.u32 4294901760, %v8602_v32  ;;  %v11990_v32 = vld [vmem:[#allocation135_spill] sm:$0xff] }
  0xf1   : > { %1394 = vmatmul.mubr.f32.vlgmr.msra.gmra.mrb[80].mxu1 %v11974_v0  ;;  %6983 = vmatprep.subr.bf16.mxu0 %v6982_v29  ;;  %v11982_v29 = vand.u32 4294901760, %v11890_v40  ;;  %v11991_v40 = vand.u32 4294901760, %v11901_v60  ;;  %v11995_v0 = vand.u32 4294901760, %v8641_v3  ;;  %v11997_v21 = vld [vmem:[#allocation43_spill] sm:$0xff]  ;;  %v12000_v60 = vld [vmem:[#allocation137_spill] sm:$0xff] }
  0xf2   : > { %6817 = vmatpush3.bf16.msra.mxu1 %v11888_v11  ;;  %1401 = vmatprep.mubr.f32.mxu1 %v11978_v28  ;;  %v11985_v11 = vand.u32 4294901760, %v11895_v17  ;;  %v12003_v28 = vld [vmem:[#allocation46_spill] sm:$0xff] }
  0xf3   : > { %6819 = vmatprep.subr.bf16.mxu1 %v11894_v38  ;;  %2871 = vmatmul.mubr.f32.gmra.mrb[84].mxu0 %v11979_v6  ;;  %v6988_v36 = vpack.c.bf16 %v11982_v29, %v11981_v25  ;;  %v11987_v38 = vld [vmem:[#allocation40_spill] sm:$0xff]  ;;  %v12005_v25 = vand.u32 4294901760, %v8676_v61  ;;  %v12010_v61 = vld [vmem:[#allocation138_spill] sm:$0xff] }
  0xf4   : > { %2877 = vmatprep.mubr.f32.mxu0 %v11980_v19  ;;  %6985 = vmatpush3.bf16.msra.mxu0 %v6984_v56  ;;  %v6990_v48 = vpack.c.bf16 %v11986_v10, %v11985_v11  ;;  %v11988_v63 = vand.u32 4294901760, %v11987_v38  ;;  %v11992_v56 = vand.u32 4294901760, %v11907_v7  ;;  %v12001_v7 = vand.u32 4294901760, %v8666_v2  ;;  %v321_v2 = vld [vmem:[%s11051_s1 + $0x200] sm:$0xff]  ;;  %v12013_v11 = vld [vmem:[#allocation49_spill] sm:$0xff]  ;;  %v12120_v6 = vld [vmem:[#allocation44_spill] sm:$0xff] }
  0xf5   : > { %1405 = vmatmul.mubr.f32.gmra.mrb[82].mxu1 %v11984_v31  ;;  %6987 = vmatprep.subr.bf16.mxu0 %v6986_v13  ;;  %v11998_v13 = vand.u32 4294901760, %v11997_v21  ;;  %v12012_v31 = vand.u32 4294901760, %v8699_v51  ;;  %v12014_v10 = vand.u32 4294901760, %v12013_v11  ;;  %v12016_v38 = vand.u32 4294901760, %v11847_v33  ;;  %v12020_v51 = vld [vmem:[#allocation141_spill] sm:$0xff]  ;;  %v12029_v21 = vld [vmem:[#allocation143_spill] sm:$0xff] }
  0xf6   : > { %1412 = vmatprep.mubr.f32.mxu1 %v11988_v63  ;;  %6821 = vmatpush3.bf16.msra.mxu1 %v11905_v4  ;;  %v6992_v17 = vpack.c.bf16 %v11992_v56, %v11991_v40  ;;  %v11996_v4 = vand.u32 4294901760, %v8651_v14  ;;  %v6996_v3 = vpack.c.bf16 %v12002_v12, %v12001_v7  ;;  %v12004_v14 = vand.u32 4294901760, %v12003_v28  ;;  %v12034_v12 = vld [vmem:[#allocation144_spill] sm:$0xff]  ;;  %v12038_v28 = vld [vmem:[#allocation126_spill] sm:$0xff]  ;;  %v12053_v11 = vld [vmem:[#allocation161_spill] sm:$0xff] }
  0xf7   : > { %2880 = vmatmul.mubr.f32.gmra.mrb[86].mxu0 %v11989_v41  ;;  %6823 = vmatprep.subr.bf16.mxu1 %v11909_v24  ;;  %v11999_v24 = vld [vmem:[#allocation21_spill] sm:$0xff]  ;;  %v3749_v40 = vand.u32 4294901760, %v321_v2  ;;  %v3752_v56 = vand.u32 4294901760, %v322_v58 }
  0xf8   : > { %2886 = vmatprep.mubr.f32.mxu0 %v11990_v32  ;;  %6989 = vmatpush3.bf16.msra.mxu0 %v6988_v36  ;;  %v6994_v57 = vpack.c.bf16 %v11996_v4, %v11995_v0  ;;  %v12007_v36 = vld [vmem:[#allocation47_spill] sm:$0xff]  ;;  %v12125_v19 = vld [vmem:[#allocation117_spill] sm:$0xff] }
  0xf9   : > { %1416 = vmatmul.mubr.f32.gmra.mrb[84].mxu1 %v11994_v22  ;;  %6991 = vmatprep.subr.bf16.mxu0 %v6990_v48  ;;  %v12008_v23 = vand.u32 4294901760, %v12007_v36  ;;  %v12015_v48 = vand.u32 4294901760, %v11846_v16  ;;  %v12022_v16 = vand.u32 4294901760, %v11867_v53  ;;  %v12023_v22 = vld [vmem:[#allocation53_spill] sm:$0xff]  ;;  %v9475_v4 = vpack.c.bf16 %v3752_v56, %v3749_v40 }
  0xfa   : > { %1423 = vmatprep.mubr.f32.mxu1 %v11998_v13  ;;  %6825 = vmatpush3.bf16.msra.mxu1 %v11918_v1  ;;  %v12006_v1 = vand.u32 4294901760, %v8683_v9  ;;  %v12011_v9 = vand.u32 4294901760, %v8688_v52  ;;  %v12019_v52 = vld [vmem:[#allocation140_spill] sm:$0xff]  ;;  %v12024_v0 = vand.u32 4294901760, %v12023_v22  ;;  %v12031_v53 = vand.u32 4294901760, %v12030_v50  ;;  %v12032_v13 = vld [vmem:[#allocation59_spill] sm:$0xff] }
  0xfb   : > { %2889 = vmatmul.mubr.f32.gmra.mrb[88].mxu0 %v11999_v24  ;;  %6827 = vmatprep.subr.bf16.mxu1 %v11920_v30  ;;  %v12009_v30 = vld [vmem:[#allocation24_spill] sm:$0xff]  ;;  %v7002_v63 = vpack.c.bf16 %v12016_v38, %v12015_v48  ;;  %v7004_v33 = vpack.c.bf16 %v12022_v16, %v12021_v46  ;;  %12025 = vst [vmem:[#allocation79_spill] sm:$0xff] %v9475_v4  ;;  %v12033_v7 = vand.u32 4294901760, %v12032_v13  ;;  %v12054_v48 = vld [vmem:[#allocation162_spill] sm:$0xff]  ;;  %v12059_v22 = vld [vmem:[#allocation163_spill] sm:$0xff] }
  0xfc   : > { %2895 = vmatprep.mubr.f32.mxu0 %v12000_v60  ;;  %6993 = vmatpush3.bf16.msra.mxu0 %v6992_v17  ;;  %v6998_v29 = vpack.c.bf16 %v12006_v1, %v12005_v25  ;;  %v12041_v25 = vld [vmem:[#allocation157_spill] sm:$0xff]  ;;  %v12114_v24 = vld [vmem:[#allocation116_spill] sm:$0xff] }
  0xfd   : > { %1427 = vmatmul.mubr.f32.gmra.mrb[86].mxu1 %v12004_v14  ;;  %6995 = vmatprep.subr.bf16.mxu0 %v6994_v57  ;;  %v12026_v57 = vld [vmem:[#allocation56_spill] sm:$0xff]  ;;  %v9499_v14 = vsub.f32 %v321_v2, %v3749_v40  ;;  %v12049_v2 = vld [vmem:[#allocation69_spill] sm:$0xff]  ;;  %v12055_v40 = vld [vmem:[#allocation75_spill] sm:$0xff] }
  0xfe   : > { %1434 = vmatprep.mubr.f32.mxu1 %v12008_v23  ;;  %6829 = vmatpush3.bf16.msra.mxu1 %v11931_v35  ;;  %v7000_v35 = vpack.c.bf16 %v12012_v31, %v12011_v9  ;;  %v12048_v23 = vld [vmem:[#allocation160_spill] sm:$0xff]  ;;  %v12050_v9 = vand.u32 4294901760, %v12049_v2  ;;  %v12066_v2 = vld [vmem:[#allocation87_spill] sm:$0xff] }
  0xff   : > { %2898 = vmatmul.mubr.f32.gmra.mrb[90].mxu0 %v12009_v30  ;;  %6831 = vmatprep.subr.bf16.mxu1 %v11933_v26  ;;  %v12017_v26 = vld [vmem:[#allocation52_spill] sm:$0xff]  ;;  %12039 = vst [vmem:[#allocation11_spill] sm:$0xff] %v9499_v14  ;;  %v9720_v30 = vld [vmem:[%s11051_s1 + $0x278] sm:$0xff] }
 0x100   : > { %2904 = vmatprep.mubr.f32.mxu0 %v12010_v61  ;;  %6997 = vmatpush3.bf16.msra.mxu0 %v6996_v3  ;;  %v12018_v17 = vand.u32 4294901760, %v12017_v26  ;;  %v12037_v3 = vand.u32 4294901760, %v11880_v43  ;;  %v12045_v43 = vld [vmem:[#allocation68_spill] sm:$0xff] }
 0x101   : > { %1438 = vmatmul.mubr.f32.gmra.mrb[88].mxu1 %v12014_v10  ;;  %6999 = vmatprep.subr.bf16.mxu0 %v6998_v29  ;;  %v12046_v36 = vand.u32 4294901760, %v12045_v43  ;;  %v12112_v61 = vld [vmem:[#allocation4_spill] sm:$0xff] }
 0x102   : > { %1445 = vmatprep.mubr.f32.mxu1 %v12018_v17  ;;  %6833 = vmatpush3.bf16.msra.mxu1 %v11940_v34  ;;  %v12027_v34 = vand.u32 4294901760, %v12026_v57  ;;  %v12057_v17 = vld [vmem:[#allocation78_spill] sm:$0xff]  ;;  %v12060_v57 = vld [vmem:[#allocation164_spill] sm:$0xff] }
 0x103   : > { %2907 = vmatmul.mubr.f32.gmra.mrb[92].mxu0 %v12019_v52  ;;  %6835 = vmatprep.subr.bf16.mxu1 %v11942_v18  ;;  %v12028_v18 = vld [vmem:[#allocation32_spill] sm:$0xff]  ;;  %v12058_v46 = vand.u32 4294901760, %v12057_v17  ;;  %v12107_v52 = vld [vmem:[#allocation39_spill] sm:$0xff] }
 0x104   : > { %2913 = vmatprep.mubr.f32.mxu0 %v12020_v51  ;;  %7001 = vmatpush3.bf16.msra.mxu0 %v7000_v35  ;;  %v12111_v51 = vld [vmem:[#allocation42_spill] sm:$0xff] }
 0x105   : > { %1449 = vmatmul.mubr.f32.gmra.mrb[90].mxu1 %v12024_v0  ;;  %7003 = vmatprep.subr.bf16.mxu0 %v7002_v63 }
 0x106   : > { %1456 = vmatprep.mubr.f32.mxu1 %v12027_v34  ;;  %6837 = vmatpush3.bf16.msra.mxu1 %v11944_v42  ;;  %v5198_v35 = vpop.f32.mrb[0].mxu1 }
 0x107   : > { %2916 = vmatmul.mubr.f32.gmra.mrb[94].mxu0 %v12028_v18  ;;  %6839 = vmatprep.subr.bf16.mxu1 %v11946_v47  ;;  %v12035_v47 = vld [vmem:[#allocation62_spill] sm:$0xff]  ;;  %v5199_v10 = vpop.f32.mrb[1].mxu1  ;;  %v5358_v63 = vpop.f32.mrb[0].mxu0 }
 0x108   : > { %2922 = vmatprep.mubr.f32.mxu0 %v12029_v21  ;;  %7005 = vmatpush3.bf16.msra.mxu0 %v7004_v33  ;;  %v12036_v42 = vand.u32 4294901760, %v12035_v47  ;;  %v9520_v38 = vadd.f32 %v5199_v10, %v5198_v35  ;;  %v5359_v26 = vpop.f32.mrb[1].mxu0  ;;  %v12068_v35 = vld [vmem:[#allocation168_spill] sm:$0xff]  ;;  %v9683_v21 = vld [vmem:[%s11051_s1 + $0x260] sm:$0xff] }
 0x109   : > { %1460 = vmatmul.mubr.f32.gmra.mrb[92].mxu1 %v12031_v53  ;;  %7039 = vmatprep.subr.bf16.mxu0 %v9475_v4  ;;  %v9526_v33 = vadd.f32 %v5359_v26, %v5358_v63  ;;  %v12061_v53 = vand.u32 4294901760, %v11930_v39  ;;  %v12070_v63 = vld [vmem:[#allocation89_spill] sm:$0xff] }
 0x10a   : > { %1467 = vmatprep.mubr.f32.mxu1 %v12033_v7  ;;  %6841 = vmatpush3.bf16.msra.mxu1 %v11955_v54  ;;  %v9501_v54 = vsub.f32 %v322_v58, %v3752_v56  ;;  %v12051_v58 = vld [vmem:[#allocation74_spill] sm:$0xff]  ;;  %v12056_v56 = vand.u32 4294901760, %v12055_v40  ;;  %v12062_v7 = vand.u32 4294901760, %v11932_v45  ;;  %v12071_v40 = vand.u32 4294901760, %v12070_v63 }
 0x10b   : > { %2925 = vmatmul.mubr.f32.gmra.mrb[96].mxu0 %v12034_v12  ;;  %6843 = vmatprep.subr.bf16.mxu1 %v11957_v59  ;;  %v12042_v59 = vld [vmem:[#allocation65_spill] sm:$0xff]  ;;  %v12052_v31 = vand.u32 4294901760, %v12051_v58  ;;  %v5201_v16 = vpop.f32.mrb[2].mxu1  ;;  %v9551_v58 = vld [vmem:[%s11051_s1 + $0x210] sm:$0xff] }
 0x10c   : > { %2931 = vmatprep.mubr.f32.mxu0 %v8952_v37  ;;  %12040 = vst [vmem:[#allocation85_spill] sm:$0xff] %v9501_v54  ;;  %v12043_v1 = vand.u32 4294901760, %v12042_v59  ;;  %v9508_v29 = vpack.c.bf16 %v9501_v54, %v9499_v14  ;;  %v5202_v0 = vpop.f32.mrb[3].mxu1  ;;  %v5361_v50 = vpop.f32.mrb[2].mxu0  ;;  %v12064_v59 = vld [vmem:[#allocation167_spill] sm:$0xff]  ;;  %v11437_v17 = vand.u32 4294901760, %v9551_v58 }
 0x10d   : > { %1471 = vmatmul.mubr.f32.gmra.mrb[94].mxu1 %v12036_v42  ;;  %v9530_v34 = vadd.f32 %v5202_v0, %v5201_v16  ;;  %v5362_v13 = vpop.f32.mrb[3].mxu0  ;;  %v12072_v16 = vld [vmem:[#allocation95_spill] sm:$0xff]  ;;  %v12106_v12 = vld [vmem:[#allocation128_spill] sm:$0xff] }
 0x10e   : > { %1478 = vmatprep.mubr.f32.mxu1 %v12037_v3  ;;  %6845 = vmatpush3.bf16.msra.mxu1 %v11965_v44  ;;  %12044 = vst [vmem:[#allocation14_spill] sm:$0xff] %v9508_v29  ;;  %v12047_v44 = vld [vmem:[#allocation158_spill] sm:$0xff]  ;;  %v9536_v42 = vadd.f32 %v5362_v13, %v5361_v50  ;;  %v12063_v3 = vld [vmem:[#allocation165_spill] sm:$0xff]  ;;  %v12073_v0 = vand.u32 4294901760, %v12072_v16  ;;  %v12105_v37 = vld [vmem:[#allocation115_spill] sm:$0xff] }
 0x10f   : > { %2934 = vmatmul.mubr.f32.gmra.mrb[98].mxu0 %v8977_v5  ;;  %6879 = vmatprep.subr.bf16.mxu1 %v12038_v28  ;;  %v5204_v47 = vpop.f32.mrb[4].mxu1  ;;  %v9571_v13 = vld [vmem:[%s11051_s1 + $0x220] sm:$0xff] }
 0x110   : > { %2940 = vmatprep.mubr.f32.mxu0 %v12041_v25  ;;  %v5205_v28 = vpop.f32.mrb[5].mxu1  ;;  %v5364_v43 = vpop.f32.mrb[4].mxu0  ;;  %v11439_v63 = vand.u32 4294901760, %v9571_v13 }
 0x111   : > { %1482 = vmatmul.mubr.f32.gmra.mrb[96].mxu1 %v12043_v1  ;;  %v9540_v1 = vadd.f32 %v5205_v28, %v5204_v47  ;;  %v5365_v39 = vpop.f32.mrb[5].mxu0  ;;  %v12074_v47 = vld [vmem:[#allocation108_spill] sm:$0xff] }
 0x112   : > { %1489 = vmatprep.mubr.f32.mxu1 %v12046_v36  ;;  %v12065_v36 = vand.u32 4294901760, %v11939_v27  ;;  %v9546_v45 = vadd.f32 %v5365_v39, %v5364_v43  ;;  %v12069_v27 = vld [vmem:[#allocation125_spill] sm:$0xff]  ;;  %v12075_v43 = vld [vmem:[#allocation110_spill] sm:$0xff]  ;;  %v12076_v39 = vand.u32 4294901760, %v11952_v15  ;;  %v9599_v15 = vld [vmem:[%s11051_s1 + $0x230] sm:$0xff] }
 0x113   : > { %2943 = vmatmul.mubr.f32.gmra.mrb[100].mxu0 %v12047_v44 }
 0x114   : > { %2949 = vmatprep.mubr.f32.mxu0 %v12048_v23  ;;  %v5367_v10 = vpop.f32.mrb[6].mxu0  ;;  %v12092_v23 = vld [vmem:[#allocation34_spill] sm:$0xff] }
 0x115   : > { %1493 = vmatmul.mubr.f32.gmra.mrb[98].mxu1 %v12050_v9  ;;  %v12067_v9 = vand.u32 4294901760, %v12066_v2  ;;  %v5368_v26 = vpop.f32.mrb[7].mxu0 }
 0x116   : > { %1500 = vmatprep.mubr.f32.mxu1 %v12052_v31  ;;  %v9556_v31 = vld [vmem:[%s11051_s1 + $0x218] sm:$0xff] }
 0x117   : > { %2952 = vmatmul.mubr.f32.gmra.mrb[102].mxu0 %v12053_v11  ;;  %v12091_v11 = vld [vmem:[#allocation129_spill] sm:$0xff] }
 0x118   : > { %2958 = vmatprep.mubr.f32.mxu0 %v12054_v48 }
 0x119   : > { %1504 = vmatmul.mubr.f32.gmra.mrb[100].mxu1 %v12056_v56  ;;  %v5207_v56 = vpop.f32.mrb[6].mxu1 }
 0x11a   : > { %1511 = vmatprep.mubr.f32.mxu1 %v12058_v46  ;;  %v11436_v46 = vand.u32 4294901760, %v9556_v31  ;;  %v5208_v50 = vpop.f32.mrb[7].mxu1 }
 0x11b   : > { %2961 = vmatmul.mubr.f32.gmra.mrb[104].mxu0 %v12059_v22  ;;  %v9579_v28 = vadd.f32 %v5208_v50, %v5207_v56  ;;  %v5210_v2 = vpop.f32.mrb[8].mxu1  ;;  %v12078_v56 = vld [vmem:[#allocation97_spill] sm:$0xff]  ;;  %v12096_v22 = vld [vmem:[#allocation124_spill] sm:$0xff] }
 0x11c   : > { %2967 = vmatprep.mubr.f32.mxu0 %v12060_v57  ;;  %v5211_v16 = vpop.f32.mrb[9].mxu1  ;;  %v9604_v50 = vld [vmem:[%s11051_s1 + $0x238] sm:$0xff] }
 0x11d   : > { %1515 = vmatmul.mubr.f32.gmra.mrb[102].mxu1 %v12061_v53  ;;  %v9566_v53 = vadd.f32 %v5368_v26, %v5367_v10  ;;  %v9588_v10 = vpack.c.bf16 %v11436_v46, %v11437_v17  ;;  %v12079_v26 = vand.u32 4294901760, %v12078_v56  ;;  %v9607_v46 = vadd.f32 %v5211_v16, %v5210_v2  ;;  %v12081_v17 = vld [vmem:[#allocation114_spill] sm:$0xff] }
 0x11e   : > { %1522 = vmatprep.mubr.f32.mxu1 %v12062_v7  ;;  %v9576_v7 = vld [vmem:[%s11051_s1 + $0x228] sm:$0xff] }
 0x11f   : > { %2970 = vmatmul.mubr.f32.gmra.mrb[106].mxu0 %v12063_v3  ;;  %12077 = vst [vmem:[#allocation86_spill] sm:$0xff] %v9588_v10  ;;  %v12089_v3 = vand.u32 4294901760, %v9604_v50 }
 0x120   : > { %2976 = vmatprep.mubr.f32.mxu0 %v12064_v59  ;;  %v12088_v59 = vand.u32 4294901760, %v9599_v15 }
 0x121   : > { %1526 = vmatmul.mubr.f32.gmra.mrb[104].mxu1 %v12065_v36  ;;  %v5370_v36 = vpop.f32.mrb[8].mxu0 }
 0x122   : > { %1533 = vmatprep.mubr.f32.mxu1 %v12067_v9  ;;  %v5371_v9 = vpop.f32.mrb[9].mxu0  ;;  %v9646_v57 = vpack.c.bf16 %v12089_v3, %v12088_v59  ;;  %v9662_v3 = vld [vmem:[%s11051_s1 + $0x258] sm:$0xff]  ;;  %v12094_v59 = vld [vmem:[#allocation63_spill] sm:$0xff] }
 0x123   : > { %2979 = vmatmul.mubr.f32.gmra.mrb[108].mxu0 %v12068_v35  ;;  %v12086_v35 = vld [vmem:[#allocation121_spill] sm:$0xff] }
 0x124   : > { %2985 = vmatprep.mubr.f32.mxu0 %v12069_v27  ;;  %12090 = vst [vmem:[#allocation18_spill] sm:$0xff] %v9646_v57 }
 0x125   : > { %1537 = vmatmul.mubr.f32.gmra.mrb[106].mxu1 %v12071_v40  ;;  %v11438_v40 = vand.u32 4294901760, %v9576_v7 }
 0x126   : > { %1544 = vmatprep.mubr.f32.mxu1 %v12073_v0  ;;  %v9594_v0 = vadd.f32 %v5371_v9, %v5370_v36  ;;  %v5373_v36 = vpop.f32.mrb[10].mxu0  ;;  %v12082_v9 = vand.u32 4294901760, %v11962_v49  ;;  %v9628_v49 = vld [vmem:[%s11051_s1 + $0x240] sm:$0xff] }
 0x127   : > { %2988 = vmatmul.mubr.f32.gmra.mrb[110].mxu0 %v12074_v47  ;;  %v5374_v56 = vpop.f32.mrb[11].mxu0  ;;  %v12084_v47 = vld [vmem:[#allocation27_spill] sm:$0xff]  ;;  %v12098_v25 = vand.u32 4294901760, %v9628_v49 }
 0x128   : > { %3427 = vmatprep.mubr.f32.mxu0 %v12075_v43  ;;  %v9623_v27 = vadd.f32 %v5374_v56, %v5373_v36  ;;  %v12087_v36 = vld [vmem:[#allocation29_spill] sm:$0xff] }
 0x129   : > { %1548 = vmatmul.mubr.f32.gmra.mrb[108].mxu1 %v12076_v39  ;;  %v12080_v39 = vld [vmem:[#allocation8_spill] sm:$0xff] }
 0x12a   : > { %1555 = vmatprep.mubr.f32.mxu1 %v12079_v26  ;;  %v9618_v26 = vpack.c.bf16 %v11438_v40, %v11439_v63  ;;  %v12085_v40 = vld [vmem:[#allocation9_spill] sm:$0xff]  ;;  %v5213_v63 = vpop.f32.mrb[10].mxu1 }
 0x12b   : > { %3429 = vmatmul.mubr.f32.vlgmr.msra.gmra.mrb[112].mxu0 %v12080_v39  ;;  %v5214_v2 = vpop.f32.mrb[11].mxu1 }
 0x12c   : > { %3434 = vmatprep.mubr.f32.mxu0 %v12081_v17  ;;  %7041 = vmatpush3.bf16.msra.mxu0 %v9475_v4  ;;  %12083 = vst [vmem:[#allocation15_spill] sm:$0xff] %v9618_v26  ;;  %v9639_v56 = vadd.f32 %v5214_v2, %v5213_v63  ;;  %v9657_v63 = vld [vmem:[%s11051_s1 + $0x250] sm:$0xff]  ;;  %v5216_v48 = vpop.f32.mrb[12].mxu1  ;;  %v12138_v4 = vld [vmem:[#allocation119_spill] sm:$0xff] }
 0x12d   : > { %1559 = vmatmul.mubr.f32.gmra.mrb[110].mxu1 %v12082_v9  ;;  %7043 = vmatprep.subr.bf16.mxu0 %v9588_v10  ;;  %v9633_v9 = vld [vmem:[%s11051_s1 + $0x248] sm:$0xff]  ;;  %v12095_v2 = vld [vmem:[#allocation16_spill] sm:$0xff] }
 0x12e   : > { %1934 = vmatprep.mubr.f32.mxu1 %v12084_v47  ;;  %v5376_v47 = vpop.f32.mrb[12].mxu0 }
 0x12f   : > { %3436 = vmatmul.mubr.f32.gmra.mrb[114].mxu0 %v12085_v40  ;;  %v5377_v16 = vpop.f32.mrb[13].mxu0 }
 0x130   : > { %3441 = vmatprep.mubr.f32.mxu0 %v12086_v35  ;;  %7045 = vmatpush3.bf16.msra.mxu0 %v9588_v10  ;;  %v12136_v10 = vld [vmem:[#allocation5_spill] sm:$0xff] }
 0x131   : > { %1936 = vmatmul.mubr.f32.vlgmr.msra.gmra.mrb[112].mxu1 %v12087_v36  ;;  %7047 = vmatprep.subr.bf16.mxu0 %v9618_v26  ;;  %v9652_v36 = vadd.f32 %v5377_v16, %v5376_v47  ;;  %v12097_v16 = vld [vmem:[#allocation36_spill] sm:$0xff] }
 0x132   : > { %6881 = vmatpush3.bf16.msra.mxu1 %v12091_v11  ;;  %1941 = vmatprep.mubr.f32.mxu1 %v12092_v23  ;;  %v5217_v11 = vpop.f32.mrb[13].mxu1  ;;  %v5379_v23 = vpop.f32.mrb[14].mxu0 }
 0x133   : > { %12093 = vst [vmem:[#allocation19_spill] sm:$0xff] %v9652_v36  ;;  %6883 = vmatprep.subr.bf16.mxu1 %v12094_v59  ;;  %3443 = vmatmul.mubr.f32.gmra.mrb[116].mxu0 %v12095_v2  ;;  %v9669_v47 = vadd.f32 %v5217_v11, %v5216_v48  ;;  %v5380_v44 = vpop.f32.mrb[15].mxu0  ;;  %v12099_v59 = vand.u32 4294901760, %v9633_v9  ;;  %v9688_v48 = vld [vmem:[%s11051_s1 + $0x268] sm:$0xff]  ;;  %v12101_v11 = vld [vmem:[#allocation38_spill] sm:$0xff] }
 0x134   : > { %3448 = vmatprep.mubr.f32.mxu0 %v12096_v22  ;;  %7049 = vmatpush3.bf16.msra.mxu0 %v9618_v26  ;;  %v5518_v60 = vpop.f32.mrb[16].mxu0 }
 0x135   : > { %1943 = vmatmul.mubr.f32.gmra.mrb[114].mxu1 %v12097_v16  ;;  %7051 = vmatprep.subr.bf16.mxu0 %v9646_v57  ;;  %v9676_v5 = vpack.c.bf16 %v12099_v59, %v12098_v25  ;;  %v12102_v16 = vld [vmem:[#allocation3_spill] sm:$0xff]  ;;  %v9692_v25 = vadd.f32 %v5380_v44, %v5379_v23  ;;  %v12109_v44 = vand.u32 4294901760, %v9662_v3  ;;  %v5519_v18 = vpop.f32.mrb[17].mxu0 }
 0x136   : > { %1948 = vmatprep.mubr.f32.mxu1 %v12101_v11  ;;  %6885 = vmatpush3.bf16.msra.mxu1 %v12102_v16  ;;  %v12104_v59 = vld [vmem:[#allocation127_spill] sm:$0xff]  ;;  %v12108_v11 = vand.u32 4294901760, %v9657_v63  ;;  %v12116_v16 = vld [vmem:[#allocation130_spill] sm:$0xff]  ;;  %v9736_v55 = vadd.f32 %v5519_v18, %v5518_v60  ;;  %v5521_v20 = vpop.f32.mrb[18].mxu0 }
 0x137   : > { %12100 = vst [vmem:[#allocation22_spill] sm:$0xff] %v9676_v5  ;;  %12103 = vst [vmem:[#allocation96_spill] sm:$0xff] %v9692_v25  ;;  %3450 = vmatmul.mubr.f32.gmra.mrb[118].mxu0 %v12104_v59  ;;  %6887 = vmatprep.subr.bf16.mxu1 %v12105_v37  ;;  %v9711_v37 = vld [vmem:[%s11051_s1 + $0x270] sm:$0xff]  ;;  %v12126_v60 = vld [vmem:[#allocation131_spill] sm:$0xff] }
 0x138   : > { %3455 = vmatprep.mubr.f32.mxu0 %v12106_v12  ;;  %7053 = vmatpush3.bf16.msra.mxu0 %v9646_v57  ;;  %v9706_v23 = vpack.c.bf16 %v12109_v44, %v12108_v11  ;;  %v12113_v44 = vld [vmem:[#allocation17_spill] sm:$0xff]  ;;  %12121 = vst [vmem:[#allocation28_spill] sm:$0xff] %v9736_v55  ;;  %v12127_v18 = vld [vmem:[#allocation118_spill] sm:$0xff]  ;;  %v12140_v25 = vld [vmem:[#allocation139_spill] sm:$0xff] }
 0x139   : > { %1950 = vmatmul.mubr.f32.gmra.mrb[116].mxu1 %v12107_v52  ;;  %7055 = vmatprep.subr.bf16.mxu0 %v9676_v5  ;;  %v5219_v52 = vpop.f32.mrb[14].mxu1 }
 0x13a   : > { %12110 = vst [vmem:[#allocation23_spill] sm:$0xff] %v9706_v23  ;;  %1955 = vmatprep.mubr.f32.mxu1 %v12111_v51  ;;  %6889 = vmatpush3.bf16.msra.mxu1 %v12112_v61  ;;  %v5220_v11 = vpop.f32.mrb[15].mxu1  ;;  %v12117_v61 = vand.u32 4294901760, %v9683_v21  ;;  %v12118_v51 = vand.u32 4294901760, %v9688_v48 }
 0x13b   : > { %3457 = vmatmul.mubr.f32.gmra.mrb[120].mxu0 %v12113_v44  ;;  %6891 = vmatprep.subr.bf16.mxu1 %v12114_v24  ;;  %v9724_v32 = vadd.f32 %v5220_v11, %v5219_v52  ;;  %v12122_v52 = vand.u32 4294901760, %v9499_v14  ;;  %v12129_v24 = vld [vmem:[#allocation132_spill] sm:$0xff] }
 0x13c   : > { %3462 = vmatprep.mubr.f32.mxu0 %v12116_v16  ;;  %7057 = vmatpush3.bf16.msra.mxu0 %v9676_v5  ;;  %v9732_v41 = vpack.c.bf16 %v12118_v51, %v12117_v61  ;;  %v12123_v5 = vand.u32 4294901760, %v9501_v54  ;;  %v12124_v61 = vld [vmem:[#allocation45_spill] sm:$0xff]  ;;  %v5222_v51 = vpop.f32.mrb[16].mxu1  ;;  %v12223_v16 = vld [vmem:[#allocation159_spill] sm:$0xff]  ;;  %v12242_v44 = vld [vmem:[#allocation88_spill] sm:$0xff] }
 0x13d   : > { %12115 = vst [vmem:[#allocation26_spill] sm:$0xff] %v9724_v32  ;;  %1957 = vmatmul.mubr.f32.gmra.mrb[118].mxu1 %v12120_v6  ;;  %7059 = vmatprep.subr.bf16.mxu0 %v9706_v23  ;;  %v3993_v11 = vsub.f32 %v9499_v14, %v12122_v52  ;;  %v5223_v6 = vpop.f32.mrb[17].mxu1  ;;  %v12130_v52 = vld [vmem:[#allocation48_spill] sm:$0xff] }
 0x13e   : > { %12119 = vst [vmem:[#allocation99_spill] sm:$0xff] %v9732_v41  ;;  %v4000_v57 = vsub.f32 %v9501_v54, %v12123_v5  ;;  %1962 = vmatprep.mubr.f32.mxu1 %v12124_v61  ;;  %6893 = vmatpush3.bf16.msra.mxu1 %v12125_v19  ;;  %v9750_v55 = vadd.f32 %v5223_v6, %v5222_v51  ;;  %v5522_v5 = vpop.f32.mrb[19].mxu0  ;;  %v12131_v61 = vand.u32 4294901760, %v9711_v37  ;;  %v12132_v19 = vand.u32 4294901760, %v9720_v30  ;;  %v12134_v51 = vld [vmem:[#allocation50_spill] sm:$0xff]  ;;  %v5225_v6 = vpop.f32.mrb[18].mxu1 }
 0x13f   : > { %3464 = vmatmul.mubr.f32.gmra.mrb[122].mxu0 %v12126_v60  ;;  %6895 = vmatprep.subr.bf16.mxu1 %v12127_v18  ;;  %v3994_v14 = vand.u32 4294901760, %v3993_v11  ;;  %v9763_v26 = vadd.f32 %v5522_v5, %v5521_v20  ;;  %v12191_v60 = vld [vmem:[#allocation151_spill] sm:$0xff] }
 0x140   : > { %12128 = vst [vmem:[#allocation31_spill] sm:$0xff] %v9750_v55  ;;  %3469 = vmatprep.mubr.f32.mxu0 %v12129_v24  ;;  %7061 = vmatpush3.bf16.msra.mxu0 %v9706_v23  ;;  %v9760_v54 = vpack.c.bf16 %v12132_v19, %v12131_v61  ;;  %v4001_v18 = vand.u32 4294901760, %v4000_v57  ;;  %v5226_v23 = vpop.f32.mrb[19].mxu1  ;;  %v5524_v61 = vpop.f32.mrb[20].mxu0  ;;  %v12141_v57 = vld [vmem:[#allocation51_spill] sm:$0xff]  ;;  %v12180_v24 = vld [vmem:[#allocation150_spill] sm:$0xff] }
 0x141   : > { %1964 = vmatmul.mubr.f32.gmra.mrb[120].mxu1 %v12130_v52  ;;  %7063 = vmatprep.subr.bf16.mxu0 %v9732_v41  ;;  %12135 = vst [vmem:[#allocation33_spill] sm:$0xff] %v9763_v26  ;;  %v12137_v52 = vld [vmem:[#allocation136_spill] sm:$0xff]  ;;  %v9768_v29 = vadd.f32 %v5226_v23, %v5225_v6  ;;  %v5525_v11 = vpop.f32.mrb[21].mxu0  ;;  %v12145_v23 = vld [vmem:[#allocation25_spill] sm:$0xff]  ;;  %v12146_v19 = vld [vmem:[#allocation7_spill] sm:$0xff] }
 0x142   : > { %12133 = vst [vmem:[#allocation2_spill] sm:$0xff] %v9760_v54  ;;  %1969 = vmatprep.mubr.f32.mxu1 %v12134_v51  ;;  %6897 = vmatpush3.bf16.msra.mxu1 %v12136_v10  ;;  %v9774_v20 = vpack.c.bf16 %v4001_v18, %v3994_v14  ;;  %v12142_v10 = vld [vmem:[#allocation54_spill] sm:$0xff]  ;;  %v9777_v5 = vadd.f32 %v5525_v11, %v5524_v61  ;;  %v5228_v51 = vpop.f32.mrb[20].mxu1  ;;  %v12148_v14 = vld [vmem:[#allocation55_spill] sm:$0xff] }
 0x143   : > { %3471 = vmatmul.mubr.f32.gmra.mrb[124].mxu0 %v12137_v52  ;;  %6899 = vmatprep.subr.bf16.mxu1 %v12138_v4  ;;  %12139 = vst [vmem:[#allocation35_spill] sm:$0xff] %v9768_v29  ;;  %v12144_v4 = vld [vmem:[#allocation6_spill] sm:$0xff]  ;;  %v5229_v18 = vpop.f32.mrb[21].mxu1  ;;  %v186_v26 = vld [vmem:[%s7609_s25 + $0x48] sm:$0xff] }
 0x144   : > { %3476 = vmatprep.mubr.f32.mxu0 %v12140_v25  ;;  %7065 = vmatpush3.bf16.msra.mxu0 %v9732_v41  ;;  %12143 = vst [vmem:[#allocation37_spill] sm:$0xff] %v9777_v5  ;;  %v12147_v6 = vld [vmem:[#allocation30_spill] sm:$0xff]  ;;  %v191_v41 = vld [vmem:[%s7609_s25 + $0x70] sm:$0xff] }
 0x145   : > { %1971 = vmatmul.mubr.f32.gmra.mrb[122].mxu1 %v12141_v57  ;;  %7067 = vmatprep.subr.bf16.mxu0 %v9760_v54  ;;  %v5527_v57 = vpop.f32.mrb[22].mxu0  ;;  %v181_v11 = vld [vmem:[%s7609_s25 + $0x20] sm:$0xff] }
 0x146   : > { %1976 = vmatprep.mubr.f32.mxu1 %v12142_v10  ;;  %6901 = vmatpush3.bf16.msra.mxu1 %v12144_v4  ;;  %v5528_v61 = vpop.f32.mrb[23].mxu0  ;;  %v12149_v10 = vld [vmem:[#allocation58_spill] sm:$0xff]  ;;  %v9788_v4 = vadd.f32 %v5229_v18, %v5228_v51  ;;  %v9799_v29 = vand.u32 4294901760, %v181_v11  ;;  %v12156_v51 = vld [vmem:[#allocation60_spill] sm:$0xff] }
 0x147   : > { %3478 = vmatmul.mubr.f32.gmra.mrb[126].mxu0 %v12145_v23  ;;  %6903 = vmatprep.subr.bf16.mxu1 %v12146_v19  ;;  %v9790_v5 = vadd.f32 %v5528_v61, %v5527_v57  ;;  %v12152_v19 = vld [vmem:[#allocation10_spill] sm:$0xff]  ;;  %v12154_v23 = vld [vmem:[#allocation145_spill] sm:$0xff]  ;;  %v5530_v25 = vpop.f32.mrb[24].mxu0  ;;  %v9802_v61 = vand.u32 4294901760, %v186_v26 }
 0x148   : > { %3483 = vmatprep.mubr.f32.mxu0 %v12147_v6  ;;  %7069 = vmatpush3.bf16.msra.mxu0 %v9760_v54  ;;  %12150 = vst [vmem:[#allocation40_spill] sm:$0xff] %v9788_v4  ;;  %v12153_v6 = vld [vmem:[#allocation142_spill] sm:$0xff]  ;;  %v5231_v54 = vpop.f32.mrb[22].mxu1  ;;  %12155 = vst [vmem:[#allocation43_spill] sm:$0xff] %v9799_v29  ;;  %v5531_v18 = vpop.f32.mrb[25].mxu0 }
 0x149   : > { %1978 = vmatmul.mubr.f32.gmra.mrb[124].mxu1 %v12148_v14  ;;  %7071 = vmatprep.subr.bf16.mxu0 %v9774_v20  ;;  %12151 = vst [vmem:[#allocation41_spill] sm:$0xff] %v9790_v5  ;;  %v196_v14 = vld [vmem:[%s7609_s25 + $0x98] sm:$0xff]  ;;  %v5232_v57 = vpop.f32.mrb[23].mxu1  ;;  %12157 = vst [vmem:[#allocation46_spill] sm:$0xff] %v9802_v61  ;;  %v12165_v4 = vld [vmem:[#allocation146_spill] sm:$0xff] }
 0x14a   : > { %1983 = vmatprep.mubr.f32.mxu1 %v12149_v10  ;;  %6905 = vmatpush3.bf16.msra.mxu1 %v12152_v19  ;;  %v9804_v10 = vand.u32 4294901760, %v191_v41  ;;  %v12159_v19 = vld [vmem:[#allocation61_spill] sm:$0xff]  ;;  %v9807_v5 = vadd.f32 %v5232_v57, %v5231_v54  ;;  %v12166_v52 = vld [vmem:[#allocation70_spill] sm:$0xff]  ;;  %v12169_v57 = vld [vmem:[#allocation147_spill] sm:$0xff] }
 0x14b   : > { %3485 = vmatmul.mubr.f32.gmra.mrb[128].mxu0 %v12153_v6  ;;  %6907 = vmatprep.subr.bf16.mxu1 %v9368_v8  ;;  %v9809_v8 = vadd.f32 %v5531_v18, %v5530_v25  ;;  %v12163_v6 = vand.u32 4294901760, %v9551_v58  ;;  %v201_v25 = vld [vmem:[%s7609_s25 + $0xc0] sm:$0xff]  ;;  %v9829_v18 = vsub.f32 %v181_v11, %v9799_v29 }
 0x14c   : > { %3490 = vmatprep.mubr.f32.mxu0 %v12154_v23  ;;  %12158 = vst [vmem:[#allocation47_spill] sm:$0xff] %v9804_v10  ;;  %12160 = vst [vmem:[#allocation49_spill] sm:$0xff] %v9807_v5  ;;  %v9812_v23 = vand.u32 4294901760, %v196_v14  ;;  %v12174_v5 = vld [vmem:[#allocation66_spill] sm:$0xff] }
 0x14d   : > { %1985 = vmatmul.mubr.f32.gmra.mrb[126].mxu1 %v12156_v51  ;;  %12161 = vst [vmem:[#allocation52_spill] sm:$0xff] %v9809_v8  ;;  %v9817_v51 = vsub.f32 %v9551_v58, %v12163_v6  ;;  %12170 = vst [vmem:[#allocation59_spill] sm:$0xff] %v9829_v18  ;;  %v12171_v8 = vld [vmem:[#allocation64_spill] sm:$0xff]  ;;  %v9833_v6 = vsub.f32 %v186_v26, %v9802_v61 }
 0x14e   : > { %1990 = vmatprep.mubr.f32.mxu1 %v12159_v19  ;;  %6909 = vmatpush3.bf16.msra.mxu1 %v9370_v62  ;;  %12162 = vst [vmem:[#allocation53_spill] sm:$0xff] %v9812_v23  ;;  %v12167_v19 = vand.u32 4294901760, %v9556_v31  ;;  %v5533_v62 = vpop.f32.mrb[26].mxu0  ;;  %v12178_v26 = vld [vmem:[#allocation148_spill] sm:$0xff] }
 0x14f   : > { %12164 = vst [vmem:[#allocation56_spill] sm:$0xff] %v9817_v51  ;;  %3492 = vmatmul.mubr.f32.gmra.mrb[130].mxu0 %v12165_v4  ;;  %6943 = vmatprep.subr.bf16.mxu1 %v12166_v52  ;;  %v5534_v58 = vpop.f32.mrb[27].mxu0  ;;  %12172 = vst [vmem:[#allocation62_spill] sm:$0xff] %v9833_v6  ;;  %v9836_v4 = vsub.f32 %v191_v41, %v9804_v10  ;;  %v9843_v52 = vsub.f32 %v196_v14, %v9812_v23  ;;  %v211_v10 = vld [vmem:[%s7609_s25 + $0x110] sm:$0xff]  ;;  %v216_v14 = vld [vmem:[%s7609_s25 + $0x138] sm:$0xff] }
 0x150   : > { %v9824_v54 = vsub.f32 %v9556_v31, %v12167_v19  ;;  %3497 = vmatprep.mubr.f32.mxu0 %v12169_v57  ;;  %v206_v31 = vld [vmem:[%s7609_s25 + $0xe8] sm:$0xff]  ;;  %v5234_v19 = vpop.f32.mrb[24].mxu1  ;;  %v9840_v57 = vadd.f32 %v5534_v58, %v5533_v62  ;;  %v5536_v11 = vpop.f32.mrb[28].mxu0 }
 0x151   : > { %1992 = vmatmul.mubr.f32.gmra.mrb[128].mxu1 %v12171_v8  ;;  %12173 = vst [vmem:[#allocation126_spill] sm:$0xff] %v9836_v4  ;;  %12176 = vst [vmem:[#allocation68_spill] sm:$0xff] %v9843_v52  ;;  %v9846_v8 = vand.u32 4294901760, %v201_v25  ;;  %v5235_v29 = vpop.f32.mrb[25].mxu1  ;;  %v9855_v62 = vand.u32 4294901760, %v206_v31  ;;  %v12182_v58 = vld [vmem:[#allocation67_spill] sm:$0xff] }
 0x152   : > { %12168 = vst [vmem:[#allocation57_spill] sm:$0xff] %v9824_v54  ;;  %1997 = vmatprep.mubr.f32.mxu1 %v12174_v5  ;;  %12175 = vst [vmem:[#allocation65_spill] sm:$0xff] %v9840_v57  ;;  %v9851_v61 = vadd.f32 %v5235_v29, %v5234_v19  ;;  %v12185_v29 = vand.u32 4294901760, %v9576_v7  ;;  %v5237_v5 = vpop.f32.mrb[26].mxu1  ;;  %v12188_v57 = vand.u32 4294901760, %v9817_v51 }
 0x153   : > { %12177 = vst [vmem:[#allocation69_spill] sm:$0xff] %v9846_v8  ;;  %3499 = vmatmul.mubr.f32.gmra.mrb[132].mxu0 %v12178_v26  ;;  %12181 = vst [vmem:[#allocation75_spill] sm:$0xff] %v9855_v62  ;;  %v12183_v26 = vand.u32 4294901760, %v9571_v13  ;;  %v9877_v55 = vsub.f32 %v201_v25, %v9846_v8  ;;  %v12197_v25 = vand.u32 4294901760, %v9829_v18 }
 0x154   : > { %12179 = vst [vmem:[#allocation74_spill] sm:$0xff] %v9851_v61  ;;  %3504 = vmatprep.mubr.f32.mxu0 %v12180_v24  ;;  %v9869_v19 = vsub.f32 %v9576_v7, %v12185_v29  ;;  %v12187_v24 = vld [vmem:[#allocation72_spill] sm:$0xff]  ;;  %v5537_v61 = vpop.f32.mrb[29].mxu0  ;;  %v4007_v23 = vsub.f32 %v9817_v51, %v12188_v57  ;;  %v12208_v51 = vand.u32 4294901760, %v9599_v15 }
 0x155   : > { %1999 = vmatmul.mubr.f32.gmra.mrb[130].mxu1 %v12182_v58  ;;  %v9864_v41 = vsub.f32 %v9571_v13, %v12183_v26  ;;  %12189 = vst [vmem:[#allocation89_spill] sm:$0xff] %v9877_v55  ;;  %v9879_v13 = vand.u32 4294901760, %v211_v10  ;;  %v5238_v26 = vpop.f32.mrb[27].mxu1  ;;  %v9882_v7 = vadd.f32 %v5537_v61, %v5536_v11  ;;  %v9887_v58 = vand.u32 4294901760, %v216_v14  ;;  %v12196_v57 = vld [vmem:[#allocation152_spill] sm:$0xff]  ;;  %v12199_v61 = vld [vmem:[#allocation73_spill] sm:$0xff] }
 0x156   : > { %12186 = vst [vmem:[#allocation87_spill] sm:$0xff] %v9869_v19  ;;  %2004 = vmatprep.mubr.f32.mxu1 %v12187_v24  ;;  %v12193_v24 = vand.u32 4294901760, %v9824_v54  ;;  %v9889_v36 = vadd.f32 %v5238_v26, %v5237_v5  ;;  %v9895_v8 = vsub.f32 %v9829_v18, %v12197_v25  ;;  %v5539_v11 = vpop.f32.mrb[30].mxu0  ;;  %v12201_v5 = vand.u32 4294901760, %v9836_v4  ;;  %v221_v18 = vld [vmem:[%s7609_s25 + $0x160] sm:$0xff] }
 0x157   : > { %12184 = vst [vmem:[#allocation78_spill] sm:$0xff] %v9864_v41  ;;  %12190 = vst [vmem:[#allocation95_spill] sm:$0xff] %v9879_v13  ;;  %3506 = vmatmul.mubr.f32.gmra.mrb[134].mxu0 %v12191_v60  ;;  %v9898_v60 = vsub.f32 %v206_v31, %v9855_v62  ;;  %v12202_v31 = vld [vmem:[#allocation76_spill] sm:$0xff] }
 0x158   : > { %12192 = vst [vmem:[#allocation97_spill] sm:$0xff] %v9882_v7  ;;  %v4014_v29 = vsub.f32 %v9824_v54, %v12193_v24  ;;  %12194 = vst [vmem:[#allocation27_spill] sm:$0xff] %v9887_v58  ;;  %3511 = vmatprep.mubr.f32.mxu0 %v12196_v57  ;;  %v12200_v24 = vand.u32 4294901760, %v9833_v6  ;;  %v9909_v26 = vsub.f32 %v9836_v4, %v12201_v5  ;;  %v226_v5 = vld [vmem:[%s7609_s25 + $0x188] sm:$0xff]  ;;  %v12205_v4 = vld [vmem:[#allocation153_spill] sm:$0xff] }
 0x159   : > { %12195 = vst [vmem:[#allocation29_spill] sm:$0xff] %v9889_v36  ;;  %12198 = vst [vmem:[#allocation129_spill] sm:$0xff] %v9898_v60  ;;  %2006 = vmatmul.mubr.f32.gmra.mrb[132].mxu1 %v12199_v61  ;;  %v5540_v36 = vpop.f32.mrb[31].mxu0  ;;  %v12203_v61 = vand.u32 4294901760, %v9843_v52  ;;  %v9922_v54 = vsub.f32 %v211_v10, %v9879_v13  ;;  %v12216_v10 = vand.u32 4294901760, %v9869_v19 }
 0x15a   : > { %v9904_v7 = vsub.f32 %v9833_v6, %v12200_v24  ;;  %2011 = vmatprep.mubr.f32.mxu1 %v12202_v31  ;;  %v4008_v24 = vand.u32 4294901760, %v4007_v23  ;;  %v9926_v57 = vadd.f32 %v5540_v36, %v5539_v11  ;;  %v4015_v25 = vand.u32 4294901760, %v4014_v29  ;;  %v5240_v23 = vpop.f32.mrb[28].mxu1  ;;  %v12214_v11 = vld [vmem:[#allocation77_spill] sm:$0xff] }
 0x15b   : > { %v9918_v62 = vsub.f32 %v9843_v52, %v12203_v61  ;;  %12204 = vst [vmem:[#allocation34_spill] sm:$0xff] %v9922_v54  ;;  %3513 = vmatmul.mubr.f32.gmra.mrb[136].mxu0 %v12205_v4  ;;  %v9929_v31 = vsub.f32 %v216_v14, %v9887_v58  ;;  %v9934_v61 = vsub.f32 %v9599_v15, %v12208_v51  ;;  %v12210_v52 = vld [vmem:[#allocation154_spill] sm:$0xff]  ;;  %v12211_v4 = vand.u32 4294901760, %v9604_v50  ;;  %v5241_v14 = vpop.f32.mrb[29].mxu1 }
 0x15c   : > { %12206 = vst [vmem:[#allocation63_spill] sm:$0xff] %v9926_v57  ;;  %3518 = vmatprep.mubr.f32.mxu0 %v12210_v52  ;;  %v9944_v29 = vand.u32 4294901760, %v221_v18  ;;  %v12215_v51 = vand.u32 4294901760, %v9864_v41  ;;  %v4028_v6 = vsub.f32 %v9869_v19, %v12216_v10  ;;  %v9954_v52 = vand.u32 4294901760, %v226_v5 }
 0x15d   : > { %12207 = vst [vmem:[#allocation36_spill] sm:$0xff] %v9929_v31  ;;  %12209 = vst [vmem:[#allocation38_spill] sm:$0xff] %v9934_v61  ;;  %v9942_v36 = vsub.f32 %v9604_v50, %v12211_v4  ;;  %2013 = vmatmul.mubr.f32.gmra.mrb[134].mxu1 %v12214_v11  ;;  %v9956_v58 = vadd.f32 %v5241_v14, %v5240_v23  ;;  %v12219_v50 = vld [vmem:[#allocation81_spill] sm:$0xff]  ;;  %v5542_v4 = vpop.f32.mrb[32].mxu0  ;;  %v12220_v15 = vand.u32 4294901760, %v9877_v55  ;;  %v5243_v11 = vpop.f32.mrb[30].mxu1 }
 0x15e   : > { %12213 = vst [vmem:[#allocation115_spill] sm:$0xff] %v9944_v29  ;;  %v4021_v57 = vsub.f32 %v9864_v41, %v12215_v51  ;;  %12217 = vst [vmem:[#allocation39_spill] sm:$0xff] %v9954_v52  ;;  %2018 = vmatprep.mubr.f32.mxu1 %v12219_v50  ;;  %v12221_v41 = vld [vmem:[#allocation156_spill] sm:$0xff]  ;;  %v5543_v10 = vpop.f32.mrb[33].mxu0  ;;  %v9968_v14 = vpack.c.bf16 %v4015_v25, %v4008_v24  ;;  %v9982_v23 = vsub.f32 %v221_v18, %v9944_v29  ;;  %v236_v24 = vld [vmem:[%s7609_s25 + $0x1d8] sm:$0xff]  ;;  %v5244_v50 = vpop.f32.mrb[31].mxu1 }
 0x15f   : > { %12212 = vst [vmem:[#allocation3_spill] sm:$0xff] %v9942_v36  ;;  %12218 = vst [vmem:[#allocation42_spill] sm:$0xff] %v9956_v58  ;;  %v9963_v13 = vsub.f32 %v9877_v55, %v12220_v15  ;;  %3520 = vmatmul.mubr.f32.gmra.mrb[138].mxu0 %v12221_v41  ;;  %v9972_v19 = vadd.f32 %v5543_v10, %v5542_v4  ;;  %v12224_v15 = vand.u32 4294901760, %v9898_v60  ;;  %v231_v25 = vld [vmem:[%s7609_s25 + $0x1b0] sm:$0xff]  ;;  %v12226_v41 = vld [vmem:[#allocation82_spill] sm:$0xff]  ;;  %v4029_v4 = vand.u32 4294901760, %v4028_v6 }
 0x160   : > { %3525 = vmatprep.mubr.f32.mxu0 %v12223_v16  ;;  %12225 = vst [vmem:[#allocation116_spill] sm:$0xff] %v9982_v23  ;;  %v4022_v58 = vand.u32 4294901760, %v4021_v57  ;;  %v9988_v10 = vsub.f32 %v226_v5, %v9954_v52  ;;  %v12230_v55 = vld [vmem:[#allocation84_spill] sm:$0xff]  ;;  %v5545_v18 = vpop.f32.mrb[34].mxu0  ;;  %v12231_v29 = vand.u32 4294901760, %v9922_v54  ;;  %v12232_v6 = vand.u32 4294901760, %v9633_v9 }
 0x161   : > { %12222 = vst [vmem:[#allocation4_spill] sm:$0xff] %v9972_v19  ;;  %v9978_v51 = vsub.f32 %v9898_v60, %v12224_v15  ;;  %2020 = vmatmul.mubr.f32.gmra.mrb[136].mxu1 %v12226_v41  ;;  %v12228_v19 = vand.u32 4294901760, %v9628_v49  ;;  %v9995_v60 = vadd.f32 %v5244_v50, %v5243_v11  ;;  %v12235_v5 = vand.u32 4294901760, %v9929_v31 }
 0x162   : > { %12227 = vst [vmem:[#allocation44_spill] sm:$0xff] %v9988_v10  ;;  %2025 = vmatprep.mubr.f32.mxu1 %v12230_v55  ;;  %v10002_v41 = vsub.f32 %v9922_v54, %v12231_v29  ;;  %v10007_v57 = vsub.f32 %v9633_v9, %v12232_v6  ;;  %v5546_v55 = vpop.f32.mrb[35].mxu0  ;;  %v12236_v29 = vand.u32 4294901760, %v9934_v61  ;;  %v10023_v16 = vand.u32 4294901760, %v231_v25  ;;  %v5278_v6 = vpop.f32.mrb[32].mxu1 }
 0x163   : > { %v9993_v15 = vsub.f32 %v9628_v49, %v12228_v19  ;;  %12229 = vst [vmem:[#allocation45_spill] sm:$0xff] %v9995_v60  ;;  %v10012_v49 = vld [vmem:[%s11052_s2] ss:$0 sm:$0xff]  ;;  %v10018_v11 = vsub.f32 %v9929_v31, %v12235_v5  ;;  %v10025_v9 = vand.u32 4294901760, %v236_v24  ;;  %v10027_v54 = vadd.f32 %v5546_v55, %v5545_v18  ;;  %v5279_v32 = vpop.f32.mrb[33].mxu1  ;;  %v5548_v31 = vpop.f32.mrb[36].mxu0 }
 0x164   : > { %12233 = vst [vmem:[#allocation117_spill] sm:$0xff] %v10007_v57  ;;  %v12234_v19 = vld [vmem:[#allocation166_spill] sm:$0xff]  ;;  %v4035_v50 = vsub.f32 %v9934_v61, %v12236_v29  ;;  %12237 = vst [vmem:[#allocation118_spill] sm:$0xff] %v10023_v16  ;;  %v12241_v52 = vand.u32 4294901760, %v9942_v36  ;;  %v10036_v29 = vpack.c.bf16 %v4029_v4, %v4022_v58  ;;  %v12243_v55 = vand.u32 4294901760, %v9657_v63  ;;  %v12245_v4 = vld [vmem:[#allocation107_spill] sm:$0xff] }
 0x165   : > { %3527 = vmatmul.mubr.f32.gmra.mrb[140].mxu0 %v12234_v19  ;;  %12238 = vst [vmem:[#allocation48_spill] sm:$0xff] %v10025_v9  ;;  %12239 = vst [vmem:[#allocation50_spill] sm:$0xff] %v10027_v54  ;;  %v12240_v60 = vld [vmem:[#allocation122_spill] sm:$0xff]  ;;  %2027 = vmatmul.mubr.f32.gmra.mrb[138].mxu1 %v12242_v44  ;;  %v453_v19 = vadd.f32 %v9520_v38, %v10012_v49  ;;  %v5549_v18 = vpop.f32.mrb[37].mxu0  ;;  %v12248_v58 = vand.u32 4294901760, %v9982_v23 }
 0x166   : > { %3532 = vmatprep.mubr.f32.mxu0 %v12240_v60  ;;  %v4042_v5 = vsub.f32 %v9942_v36, %v12241_v52  ;;  %v10043_v54 = vsub.f32 %v9657_v63, %v12243_v55  ;;  %v5280_v52 = vadd.f32 %v5279_v32, %v5278_v6  ;;  %v12244_v60 = vld [vmem:[#allocation91_spill] sm:$0xff]  ;;  %v4036_v36 = vand.u32 4294901760, %v4035_v50  ;;  %v241_v50 = vld [vmem:[%s7609_s25 + $0x200] sm:$0xff] }
 0x167   : > { %2032 = vmatprep.mubr.f32.mxu1 %v12244_v60  ;;  %v10053_v63 = vsub.f32 %v231_v25, %v10023_v16  ;;  %v10056_v32 = vsub.f32 %v236_v24, %v10025_v9  ;;  %v5281_v60 = vpop.f32.mrb[34].mxu1  ;;  %v10058_v6 = vadd.f32 %v5549_v18, %v5548_v31  ;;  %v12247_v55 = vand.u32 4294901760, %v9895_v8  ;;  %v12249_v25 = vld [vmem:[#allocation92_spill] sm:$0xff] }
 0x168   : > { %v910_v38 = vadd.f32 %v5280_v52, %v453_v19  ;;  %v4043_v44 = vand.u32 4294901760, %v4042_v5  ;;  %v10065_v61 = vsub.f32 %v9982_v23, %v12248_v58  ;;  %v12250_v24 = vand.u32 4294901760, %v9988_v10  ;;  %v246_v58 = vld [vmem:[%s7609_s25 + $0x228] sm:$0xff] }
 0x169   : > { %3534 = vmatmul.mubr.f32.gmra.mrb[142].mxu0 %v12245_v4  ;;  %12246 = vst [vmem:[#allocation5_spill] sm:$0xff] %v10058_v6  ;;  %v5282_v4 = vpop.f32.mrb[35].mxu1  ;;  %2034 = vmatmul.mubr.f32.gmra.mrb[140].mxu1 %v12249_v25  ;;  %v12251_v31 = vand.u32 4294901760, %v9993_v15  ;;  %v12252_v18 = vand.u32 4294901760, %v9662_v3  ;;  %v12253_v6 = vld [vmem:[#allocation94_spill] sm:$0xff]  ;;  %v12255_v5 = vand.u32 4294901760, %v9904_v7 }
 0x16a   : > { %6350 = vmatprep.mubr.f32.mxu0 %v12247_v55  ;;  %v10072_v19 = vsub.f32 %v9988_v10, %v12250_v24  ;;  %v468_v55 = vadd.f32 %v9530_v34, %v10012_v49  ;;  %v5283_v25 = vadd.f32 %v5282_v4, %v5281_v60  ;;  %2039 = vmatprep.mubr.f32.mxu1 %v12253_v6  ;;  %v5551_v24 = vpop.f32.mrb[38].mxu0  ;;  %v12254_v10 = vand.u32 4294901760, %v10007_v57  ;;  %v5284_v6 = vpop.f32.mrb[36].mxu1 }
 0x16b   : > { %v10077_v8 = vsub.f32 %v9993_v15, %v12251_v31  ;;  %v10083_v52 = vsub.f32 %v9662_v3, %v12252_v18  ;;  %v10093_v23 = vadd.f32 %v9526_v33, %v910_v38  ;;  %v5552_v3 = vpop.f32.mrb[39].mxu0  ;;  %v10099_v34 = vand.u32 4294901760, %v241_v50  ;;  %v5285_v9 = vpop.f32.mrb[37].mxu1  ;;  %v12261_v18 = vld [vmem:[#allocation98_spill] sm:$0xff] }
 0x16c   : > { %v4056_v31 = vsub.f32 %v10007_v57, %v12254_v10  ;;  %v12257_v4 = vand.u32 4294901760, %v9683_v21  ;;  %v917_v10 = vadd.f32 %v5283_v25, %v468_v55  ;;  %v10107_v33 = vadd.f32 %v5552_v3, %v5551_v24 }
 0x16d   : > { %6351 = vmatmul.mubr.f32.vlgmr.msra.gmra.mrb[144].mxu0 %v12255_v5  ;;  %12256 = vst [vmem:[#allocation119_spill] sm:$0xff] %v10099_v34  ;;  %v12259_v7 = vand.u32 4294901760, %v9909_v26  ;;  %v10111_v38 = vpack.c.bf16 %v4043_v44, %v4036_v36  ;;  %v10113_v5 = vand.u32 4294901760, %v246_v58  ;;  %2041 = vmatmul.mubr.f32.gmra.mrb[142].mxu1 %v12261_v18  ;;  %v12262_v55 = vand.u32 4294901760, %v10043_v54  ;;  %v251_v44 = vld [vmem:[%s7609_s25 + $0x250] sm:$0xff] }
 0x16e   : > { %v10104_v60 = vsub.f32 %v9683_v21, %v12257_v4  ;;  %7073 = vmatpush3.bf16.msra.mxu0 %v9774_v20  ;;  %12258 = vst [vmem:[#allocation51_spill] sm:$0xff] %v10107_v33  ;;  %v4050_v21 = vand.u32 4294901760, %v10077_v8  ;;  %v12263_v26 = vand.u32 4294901760, %v9688_v48  ;;  %v483_v24 = vadd.f32 %v9540_v1, %v10012_v49  ;;  %2608 = vmatprep.mubr.f32.mxu1 %v12075_v43  ;;  %v5554_v8 = vpop.f32.mrb[40].mxu0 }
 0x16f   : > { %6353 = vmatprep.mubr.f32.mxu0 %v12259_v7  ;;  %12260 = vst [vmem:[#allocation54_spill] sm:$0xff] %v10113_v5  ;;  %7075 = vmatprep.subr.bf16.mxu0 %v9968_v14  ;;  %v10121_v20 = vsub.f32 %v10043_v54, %v12262_v55  ;;  %v5286_v3 = vadd.f32 %v5285_v9, %v5284_v6  ;;  %v4057_v18 = vand.u32 4294901760, %v4056_v31  ;;  %v12264_v7 = vand.u32 4294901760, %v9918_v62  ;;  %v5555_v55 = vpop.f32.mrb[41].mxu0 }
 0x170   : > { %v10127_v36 = vsub.f32 %v9688_v48, %v12263_v26  ;;  %v10134_v4 = vadd.f32 %v9536_v42, %v917_v10  ;;  %v12265_v48 = vand.u32 4294901760, %v10053_v63  ;;  %v12266_v1 = vand.u32 4294901760, %v10056_v32  ;;  %v5287_v10 = vpop.f32.mrb[38].mxu1  ;;  %v12273_v42 = vld [vmem:[#allocation71_spill] sm:$0xff] }
 0x171   : > { %6354 = vmatmul.mubr.f32.gmra.mrb[146].mxu0 %v12264_v7  ;;  %v10149_v6 = vsub.f32 %v241_v50, %v10099_v34  ;;  %v924_v31 = vadd.f32 %v5286_v3, %v483_v24  ;;  %v10153_v62 = vadd.f32 %v5555_v55, %v5554_v8  ;;  %v12268_v7 = vand.u32 4294901760, %v9963_v13  ;;  %v5288_v33 = vpop.f32.mrb[39].mxu1  ;;  %2610 = vmatmul.mubr.f32.vlgmr.msra.gmra.mrb[144].mxu1 %v12080_v39 }
 0x172   : > { %v10141_v26 = vsub.f32 %v10053_v63, %v12265_v48  ;;  %v10146_v9 = vsub.f32 %v10056_v32, %v12266_v1  ;;  %7077 = vmatpush3.bf16.msra.mxu0 %v9968_v14  ;;  %v10158_v48 = vsub.f32 %v246_v58, %v10113_v5  ;;  %v10160_v25 = vand.u32 4294901760, %v251_v44  ;;  %v256_v1 = vld [vmem:[%s7609_s25 + $0x278] sm:$0xff]  ;;  %6945 = vmatpush3.bf16.msra.mxu1 %v12273_v42  ;;  %v5290_v39 = vpop.f32.mrb[40].mxu1  ;;  %s5162_s25 = sshll.u32 %s12589_s5, 3 }
 0x173   : > { %12267 = vst [vmem:[#allocation6_spill] sm:$0xff] %v10153_v62  ;;  %6356 = vmatprep.mubr.f32.mxu0 %v12268_v7  ;;  %7079 = vmatprep.subr.bf16.mxu0 %v10036_v29  ;;  %v12270_v50 = vand.u32 4294901760, %v10083_v52  ;;  %v12271_v13 = vand.u32 4294901760, %v9711_v37  ;;  %v12272_v58 = vand.u32 4294901760, %v9720_v30  ;;  %v498_v55 = vadd.f32 %v9579_v28, %v10012_v49  ;;  %s11020_s10 = scalar_lea.vmem %s11053_s3, %s5162_s25 }
 0x174   : > { %12269 = vst [vmem:[#allocation7_spill] sm:$0xff] %v10160_v25  ;;  %v5289_v7 = vadd.f32 %v5288_v33, %v5287_v10  ;;  %2615 = vmatprep.mubr.f32.mxu1 %v12081_v17  ;;  %v3913_v24 = vand.u32 4294901760, %v10065_v61  ;;  %v10185_v62 = vadd.f32 %v9546_v45, %v924_v31  ;;  %v11517_v28 = vand.u32 4294901760, %v10149_v6  ;;  %v5291_v31 = vpop.f32.mrb[41].mxu1 }
 0x175   : > { %v4070_v14 = vsub.f32 %v10083_v52, %v12270_v50  ;;  %v10172_v3 = vsub.f32 %v9711_v37, %v12271_v13  ;;  %v10177_v8 = vsub.f32 %v9720_v30, %v12272_v58  ;;  %v5557_v50 = vpop.f32.mrb[42].mxu0  ;;  %v12274_v37 = vld [vmem:[#allocation80_spill] sm:$0xff]  ;;  %v12275_v13 = vand.u32 4294901760, %v9978_v51  ;;  %2617 = vmatmul.mubr.f32.gmra.mrb[146].mxu1 %v12085_v40 }
 0x176   : > { %6947 = vmatprep.subr.bf16.mxu1 %v12274_v37  ;;  %v5558_v30 = vpop.f32.mrb[43].mxu0  ;;  %v7086_v58 = vpack.c.bf16 %v4057_v18, %v4050_v21  ;;  %v12276_v33 = vand.u32 4294901760, %v10104_v60  ;;  %v10196_v17 = vand.u32 4294901760, %v256_v1  ;;  %v931_v61 = vadd.f32 %v5289_v7, %v498_v55  ;;  %7081 = vmatpush3.bf16.msra.mxu0 %v10036_v29  ;;  %v12284_v7 = vld [vmem:[#allocation90_spill] sm:$0xff]  ;;  %v12329_v40 = vld [vmem:[#allocation40_spill] sm:$0xff] }
 0x177   : > { %6357 = vmatmul.mubr.f32.gmra.mrb[148].mxu0 %v12275_v13  ;;  %v10199_v45 = vadd.f32 %v5558_v30, %v5557_v50  ;;  %v12279_v51 = vand.u32 4294901760, %v10002_v41  ;;  %v4064_v21 = vand.u32 4294901760, %v10121_v20  ;;  %v10205_v18 = vsub.f32 %v251_v44, %v10160_v25  ;;  %7083 = vmatprep.subr.bf16.mxu0 %v10111_v38  ;;  %v12281_v44 = vld [vmem:[#allocation83_spill] sm:$0xff]  ;;  %v5560_v30 = vpop.f32.mrb[44].mxu0 }
 0x178   : > { %v10194_v10 = vsub.f32 %v10104_v60, %v12276_v33  ;;  %12277 = vst [vmem:[#allocation55_spill] sm:$0xff] %v10196_v17  ;;  %v4071_v13 = vand.u32 4294901760, %v4070_v14  ;;  %v12280_v55 = vand.u32 4294901760, %v10127_v36  ;;  %v513_v20 = vadd.f32 %v9607_v46, %v10012_v49  ;;  %2622 = vmatprep.mubr.f32.mxu1 %v12086_v35  ;;  %6949 = vmatpush3.bf16.msra.mxu1 %v12281_v44 }
 0x179   : > { %12278 = vst [vmem:[#allocation58_spill] sm:$0xff] %v10199_v45  ;;  %6359 = vmatprep.mubr.f32.mxu0 %v12279_v51  ;;  %v5292_v50 = vadd.f32 %v5291_v31, %v5290_v39  ;;  %v3923_v33 = vand.u32 4294901760, %v10072_v19  ;;  %v10220_v14 = vadd.f32 %v9566_v53, %v931_v61  ;;  %v12283_v51 = vand.u32 4294901760, %v10018_v11  ;;  %6951 = vmatprep.subr.bf16.mxu1 %v12284_v7  ;;  %v5293_v53 = vpop.f32.mrb[42].mxu1 }
 0x17a   : > { %v4084_v29 = vsub.f32 %v10127_v36, %v12280_v55  ;;  %v5561_v55 = vpop.f32.mrb[45].mxu0  ;;  %v3933_v41 = vand.u32 4294901760, %v10141_v26  ;;  %v3952_v46 = vsub.f32 %v10149_v6, %v11517_v28  ;;  %v10231_v31 = vsub.f32 %v256_v1, %v10196_v17  ;;  %7085 = vmatpush3.bf16.msra.mxu0 %v10111_v38  ;;  %2624 = vmatmul.mubr.f32.gmra.mrb[148].mxu1 %v12095_v2  ;;  %v12325_v2 = vld [vmem:[#allocation47_spill] sm:$0xff] }
 0x17b   : > { %12282 = vst [vmem:[#allocation10_spill] sm:$0xff] %v10220_v14  ;;  %6360 = vmatmul.mubr.f32.gmra.mrb[150].mxu0 %v12283_v51  ;;  %v938_v19 = vadd.f32 %v5292_v50, %v513_v20  ;;  %v10234_v11 = vadd.f32 %v5561_v55, %v5560_v30  ;;  %v4078_v61 = vand.u32 4294901760, %v10194_v10  ;;  %v5294_v51 = vpop.f32.mrb[43].mxu1  ;;  %7087 = vmatprep.subr.bf16.mxu0 %v7086_v58  ;;  %v12286_v1 = vand.u32 4294901760, %v10172_v3  ;;  %v12288_v30 = vld [vmem:[#allocation93_spill] sm:$0xff]  ;;  %v5563_v55 = vpop.f32.mrb[46].mxu0 }
 0x17c   : > { %6362 = vmatprep.mubr.f32.mxu0 %v3913_v24  ;;  %v7090_v28 = vpack.c.bf16 %v4071_v13, %v4064_v21  ;;  %v4085_v39 = vand.u32 4294901760, %v4084_v29  ;;  %v12287_v50 = vand.u32 4294901760, %v10177_v8  ;;  %v528_v24 = vadd.f32 %v9639_v56, %v10012_v49  ;;  %2629 = vmatprep.mubr.f32.mxu1 %v12096_v22  ;;  %v5564_v13 = vpop.f32.mrb[47].mxu0  ;;  %v12344_v14 = vld [vmem:[#allocation146_spill] sm:$0xff] }
 0x17d   : > { %12285 = vst [vmem:[#allocation60_spill] sm:$0xff] %v10234_v11  ;;  %v4091_v20 = vsub.f32 %v10172_v3, %v12286_v1  ;;  %v5295_v10 = vadd.f32 %v5294_v51, %v5293_v53  ;;  %6953 = vmatpush3.bf16.msra.mxu1 %v12288_v30  ;;  %v10250_v21 = vadd.f32 %v9594_v0, %v938_v19  ;;  %v3943_v29 = vand.u32 4294901760, %v10146_v9  ;;  %v12290_v1 = vld [vmem:[#allocation100_spill] sm:$0xff]  ;;  %v5296_v51 = vpop.f32.mrb[44].mxu1 }
 0x17e   : > { %v4098_v38 = vsub.f32 %v10177_v8, %v12287_v50  ;;  %6955 = vmatprep.subr.bf16.mxu1 %v12290_v1  ;;  %v12291_v50 = vand.u32 4294901760, %v10158_v48  ;;  %v11519_v56 = vand.u32 4294901760, %v10231_v31  ;;  %7089 = vmatpush3.bf16.msra.mxu0 %v7086_v58  ;;  %v10258_v11 = vadd.f32 %v5564_v13, %v5563_v55  ;;  %v5297_v9 = vpop.f32.mrb[45].mxu1  ;;  %v5678_v58 = vpop.f32.mrb[48].mxu0 }
 0x17f   : > { %12289 = vst [vmem:[#allocation61_spill] sm:$0xff] %v10250_v21  ;;  %6363 = vmatmul.mubr.f32.gmra.mrb[152].mxu0 %v3923_v33  ;;  %v945_v53 = vadd.f32 %v5295_v10, %v528_v24  ;;  %v3953_v0 = vand.u32 4294901760, %v3952_v46  ;;  %v12293_v33 = vand.u32 4294901760, %v10205_v18  ;;  %2631 = vmatmul.mubr.f32.gmra.mrb[150].mxu1 %v12104_v59  ;;  %v7094_v45 = vpack.c.bf16 %v4085_v39, %v4078_v61  ;;  %v5679_v55 = vpop.f32.mrb[49].mxu0  ;;  %v12296_v61 = vld [vmem:[#allocation102_spill] sm:$0xff] }
 0x180   : > { %v3962_v26 = vsub.f32 %v10158_v48, %v12291_v50  ;;  %12292 = vst [vmem:[#allocation64_spill] sm:$0xff] %v10258_v11  ;;  %6365 = vmatprep.mubr.f32.mxu0 %v3933_v41  ;;  %7091 = vmatprep.subr.bf16.mxu0 %v7090_v28  ;;  %v4092_v22 = vand.u32 4294901760, %v4091_v20  ;;  %v4099_v50 = vand.u32 4294901760, %v4098_v38  ;;  %v543_v24 = vadd.f32 %v9669_v47, %v10012_v49  ;;  %v12294_v41 = vld [vmem:[#allocation101_spill] sm:$0xff]  ;;  %v5299_v47 = vpop.f32.mrb[46].mxu1  ;;  %v12300_v11 = vld [vmem:[#allocation130_spill] sm:$0xff] }
 0x181   : > { %v3972_v19 = vsub.f32 %v10205_v18, %v12293_v33  ;;  %v5298_v10 = vadd.f32 %v5297_v9, %v5296_v51  ;;  %2636 = vmatprep.mubr.f32.mxu1 %v12106_v12  ;;  %6957 = vmatpush3.bf16.msra.mxu1 %v12294_v41  ;;  %v10269_v46 = vadd.f32 %v9623_v27, %v945_v53  ;;  %v5300_v33 = vpop.f32.mrb[47].mxu1  ;;  %v12298_v9 = vld [vmem:[#allocation17_spill] sm:$0xff]  ;;  %v12301_v12 = vld [vmem:[#allocation103_spill] sm:$0xff] }
 0x182   : > { %v3963_v13 = vand.u32 4294901760, %v3962_v26  ;;  %v3982_v39 = vsub.f32 %v10231_v31, %v11519_v56  ;;  %6959 = vmatprep.subr.bf16.mxu1 %v12296_v61  ;;  %7093 = vmatpush3.bf16.msra.mxu0 %v7090_v28  ;;  %v10275_v38 = vadd.f32 %v5679_v55, %v5678_v58  ;;  %v7098_v27 = vpack.c.bf16 %v4099_v50, %v4092_v22  ;;  %v12299_v26 = vld [vmem:[#allocation26_spill] sm:$0xff]  ;;  %v5681_v56 = vpop.f32.mrb[50].mxu0  ;;  %v5302_v55 = vpop.f32.mrb[48].mxu1 }
 0x183   : > { %12295 = vst [vmem:[#allocation66_spill] sm:$0xff] %v10269_v46  ;;  %6366 = vmatmul.mubr.f32.gmra.mrb[154].mxu0 %v3943_v29  ;;  %v952_v20 = vadd.f32 %v5298_v10, %v543_v24  ;;  %v3973_v51 = vand.u32 4294901760, %v3972_v19  ;;  %2638 = vmatmul.mubr.f32.gmra.mrb[152].mxu1 %v12298_v9  ;;  %v558_v29 = vadd.f32 %v12299_v26, %v10012_v49  ;;  %v12302_v24 = vld [vmem:[#allocation19_spill] sm:$0xff]  ;;  %v12304_v10 = vld [vmem:[#allocation104_spill] sm:$0xff]  ;;  %v5303_v50 = vpop.f32.mrb[49].mxu1 }
 0x184   : > { %12297 = vst [vmem:[#allocation67_spill] sm:$0xff] %v10275_v38  ;;  %6368 = vmatprep.mubr.f32.mxu0 %v3953_v0  ;;  %7095 = vmatprep.subr.bf16.mxu0 %v7094_v45  ;;  %v5301_v53 = vadd.f32 %v5300_v33, %v5299_v47  ;;  %v5682_v0 = vpop.f32.mrb[51].mxu0  ;;  %v3983_v19 = vand.u32 4294901760, %v3982_v39  ;;  %v12306_v47 = vld [vmem:[#allocation131_spill] sm:$0xff]  ;;  %v12309_v39 = vld [vmem:[#allocation105_spill] sm:$0xff]  ;;  %v12310_v38 = vld [vmem:[#allocation96_spill] sm:$0xff]  ;;  %v603_v43 = vadd.f32 %v12329_v40, %v10012_v49 }
 0x185   : > { %2643 = vmatprep.mubr.f32.mxu1 %v12300_v11  ;;  %6961 = vmatpush3.bf16.msra.mxu1 %v12301_v12  ;;  %v10283_v28 = vadd.f32 %v12302_v24, %v952_v20  ;;  %v10286_v22 = vadd.f32 %v5682_v0, %v5681_v56  ;;  %v12307_v33 = vld [vmem:[#allocation31_spill] sm:$0xff]  ;;  %v5304_v20 = vadd.f32 %v5303_v50, %v5302_v55  ;;  %v12308_v24 = vld [vmem:[#allocation132_spill] sm:$0xff]  ;;  %v12312_v56 = vld [vmem:[#allocation106_spill] sm:$0xff] }
 0x186   : > { %6963 = vmatprep.subr.bf16.mxu1 %v12304_v10  ;;  %v959_v58 = vadd.f32 %v5301_v53, %v558_v29  ;;  %7097 = vmatpush3.bf16.msra.mxu0 %v7094_v45  ;;  %v573_v26 = vadd.f32 %v12307_v33, %v10012_v49  ;;  %v5305_v53 = vpop.f32.mrb[50].mxu1  ;;  %v12314_v33 = vld [vmem:[#allocation43_spill] sm:$0xff]  ;;  %v12315_v50 = vld [vmem:[#allocation136_spill] sm:$0xff] }
 0x187   : > { %12303 = vst [vmem:[#allocation72_spill] sm:$0xff] %v10283_v28  ;;  %6369 = vmatmul.mubr.f32.gmra.mrb[156].mxu0 %v3963_v13  ;;  %12305 = vst [vmem:[#allocation73_spill] sm:$0xff] %v10286_v22  ;;  %2645 = vmatmul.mubr.f32.gmra.mrb[154].mxu1 %v12306_v47  ;;  %v5684_v13 = vpop.f32.mrb[52].mxu0  ;;  %v5306_v55 = vpop.f32.mrb[51].mxu1  ;;  %v12316_v22 = vld [vmem:[#allocation14_spill] sm:$0xff] }
 0x188   : > { %6371 = vmatprep.mubr.f32.mxu0 %v3973_v51  ;;  %7099 = vmatprep.subr.bf16.mxu0 %v7098_v27  ;;  %v10294_v29 = vadd.f32 %v12310_v38, %v959_v58  ;;  %v5685_v45 = vpop.f32.mrb[53].mxu0  ;;  %v10297_v51 = vadd.f32 %v5304_v20, %v573_v26  ;;  %v12318_v38 = vld [vmem:[#allocation57_spill] sm:$0xff]  ;;  %v5307_v11 = vadd.f32 %v5306_v55, %v5305_v53  ;;  %v12320_v26 = vld [vmem:[#allocation139_spill] sm:$0xff]  ;;  %v5308_v9 = vpop.f32.mrb[52].mxu1 }
 0x189   : > { %2650 = vmatprep.mubr.f32.mxu1 %v12308_v24  ;;  %6965 = vmatpush3.bf16.msra.mxu1 %v12309_v39  ;;  %v10299_v0 = vadd.f32 %v5685_v45, %v5684_v13  ;;  %v12317_v24 = vld [vmem:[#allocation56_spill] sm:$0xff]  ;;  %v5687_v20 = vpop.f32.mrb[54].mxu0  ;;  %v12322_v13 = vld [vmem:[#allocation46_spill] sm:$0xff]  ;;  %v5309_v53 = vpop.f32.mrb[53].mxu1  ;;  %v12326_v55 = vld [vmem:[#allocation25_spill] sm:$0xff] }
 0x18a   : > { %12311 = vst [vmem:[#allocation76_spill] sm:$0xff] %v10294_v29  ;;  %6967 = vmatprep.subr.bf16.mxu1 %v12312_v56  ;;  %7101 = vmatpush3.bf16.msra.mxu0 %v7098_v27  ;;  %v7106_v58 = vpack.c.bf16 %v12318_v38, %v12317_v24  ;;  %v12321_v27 = vld [vmem:[#allocation109_spill] sm:$0xff]  ;;  %v5688_v45 = vpop.f32.mrb[55].mxu0 }
 0x18b   : > { %6372 = vmatmul.mubr.f32.gmra.mrb[158].mxu0 %v3983_v19  ;;  %12313 = vst [vmem:[#allocation77_spill] sm:$0xff] %v10299_v0  ;;  %2652 = vmatmul.mubr.f32.gmra.mrb[156].mxu1 %v12315_v50  ;;  %v12319_v19 = vld [vmem:[#allocation35_spill] sm:$0xff]  ;;  %v10315_v59 = vadd.f32 %v5688_v45, %v5687_v20  ;;  %v12333_v45 = vld [vmem:[#allocation70_spill] sm:$0xff]  ;;  %v12335_v29 = vld [vmem:[#allocation69_spill] sm:$0xff] }
 0x18c   : > { %6406 = vmatprep.mubr.f32.mxu0 %v12314_v33  ;;  %7103 = vmatprep.subr.bf16.mxu0 %v12316_v22  ;;  %v588_v47 = vadd.f32 %v12319_v19, %v10012_v49  ;;  %v12323_v0 = vld [vmem:[#allocation111_spill] sm:$0xff]  ;;  %v12327_v19 = vld [vmem:[#allocation78_spill] sm:$0xff]  ;;  %v12331_v33 = vld [vmem:[#allocation112_spill] sm:$0xff] }
 0x18d   : > { %2657 = vmatprep.mubr.f32.mxu1 %v12320_v26  ;;  %6969 = vmatpush3.bf16.msra.mxu1 %v12321_v27  ;;  %12324 = vst [vmem:[#allocation81_spill] sm:$0xff] %v10315_v59  ;;  %v12328_v26 = vld [vmem:[#allocation87_spill] sm:$0xff] }
 0x18e   : > { %6971 = vmatprep.subr.bf16.mxu1 %v12323_v0  ;;  %v10312_v50 = vadd.f32 %v5307_v11, %v588_v47  ;;  %v7110_v35 = vpack.c.bf16 %v12328_v26, %v12327_v19  ;;  %v12330_v11 = vld [vmem:[#allocation30_spill] sm:$0xff]  ;;  %v5690_v47 = vpop.f32.mrb[56].mxu0 }
 0x18f   : > { %6407 = vmatmul.mubr.f32.vlgmr.msra.gmra.mrb[144].mxu0 %v12322_v13  ;;  %2659 = vmatmul.mubr.f32.gmra.mrb[158].mxu1 %v12326_v55  ;;  %v5310_v13 = vadd.f32 %v5309_v53, %v5308_v9  ;;  %v5691_v20 = vpop.f32.mrb[57].mxu0  ;;  %v5311_v55 = vpop.f32.mrb[54].mxu1  ;;  %v12336_v9 = vld [vmem:[#allocation142_spill] sm:$0xff] }
 0x190   : > { %7105 = vmatpush3.bf16.msra.mxu0 %v12316_v22  ;;  %6409 = vmatprep.mubr.f32.mxu0 %v12325_v2  ;;  %v12332_v22 = vld [vmem:[#allocation53_spill] sm:$0xff]  ;;  %v10329_v2 = vadd.f32 %v5691_v20, %v5690_v47  ;;  %v5312_v40 = vpop.f32.mrb[55].mxu1  ;;  %v12337_v53 = vld [vmem:[#allocation38_spill] sm:$0xff] }
 0x191   : > { %7107 = vmatprep.subr.bf16.mxu0 %v7106_v58  ;;  %2664 = vmatprep.mubr.f32.mxu1 %v12330_v11  ;;  %v10327_v59 = vadd.f32 %v5310_v13, %v603_v43  ;;  %v12338_v11 = vld [vmem:[#allocation3_spill] sm:$0xff]  ;;  %v5313_v21 = vadd.f32 %v5312_v40, %v5311_v55  ;;  %v5693_v43 = vpop.f32.mrb[58].mxu0  ;;  %v5314_v20 = vpop.f32.mrb[56].mxu1  ;;  %v7118_v55 = vpack.c.bf16 %v10007_v57, %v9993_v15  ;;  %v12350_v57 = vld [vmem:[#allocation148_spill] sm:$0xff] }
 0x192   : > { %6973 = vmatpush3.bf16.msra.mxu1 %v12331_v33  ;;  %12334 = vst [vmem:[#allocation82_spill] sm:$0xff] %v10329_v2  ;;  %v7114_v28 = vpack.c.bf16 %v12338_v11, %v12337_v53  ;;  %v12341_v13 = vld [vmem:[#allocation75_spill] sm:$0xff] }
 0x193   : > { %6410 = vmatmul.mubr.f32.gmra.mrb[146].mxu0 %v12332_v22  ;;  %7007 = vmatprep.subr.bf16.mxu1 %v12333_v45  ;;  %v12339_v22 = vld [vmem:[#allocation49_spill] sm:$0xff] }
 0x194   : > { %7109 = vmatpush3.bf16.msra.mxu0 %v7106_v58  ;;  %6412 = vmatprep.mubr.f32.mxu0 %v12335_v29  ;;  %v618_v46 = vadd.f32 %v12339_v22, %v10012_v49  ;;  %v12340_v45 = vld [vmem:[#allocation145_spill] sm:$0xff]  ;;  %v5694_v58 = vpop.f32.mrb[59].mxu0  ;;  %v5315_v29 = vpop.f32.mrb[57].mxu1  ;;  %v12345_v22 = vld [vmem:[#allocation74_spill] sm:$0xff] }
 0x195   : > { %2666 = vmatmul.mubr.f32.gmra.mrb[160].mxu1 %v12336_v9  ;;  %7111 = vmatprep.subr.bf16.mxu0 %v7110_v35  ;;  %v10341_v2 = vadd.f32 %v5694_v58, %v5693_v43  ;;  %v12343_v9 = vld [vmem:[#allocation95_spill] sm:$0xff]  ;;  %v633_v40 = vadd.f32 %v12345_v22, %v10012_v49 }
 0x196   : > { %2671 = vmatprep.mubr.f32.mxu1 %v12340_v45  ;;  %v10339_v47 = vadd.f32 %v5313_v21, %v618_v46  ;;  %v5316_v45 = vadd.f32 %v5315_v29, %v5314_v20  ;;  %v5696_v21 = vpop.f32.mrb[60].mxu0  ;;  %v12347_v46 = vld [vmem:[#allocation27_spill] sm:$0xff]  ;;  %v5317_v58 = vpop.f32.mrb[58].mxu1  ;;  %v7122_v29 = vpack.c.bf16 %v10083_v52, %v10043_v54  ;;  %v12351_v20 = vld [vmem:[#allocation29_spill] sm:$0xff] }
 0x197   : > { %6413 = vmatmul.mubr.f32.gmra.mrb[148].mxu0 %v12341_v13  ;;  %12342 = vst [vmem:[#allocation84_spill] sm:$0xff] %v10341_v2  ;;  %v12346_v13 = vld [vmem:[#allocation147_spill] sm:$0xff]  ;;  %v648_v22 = vadd.f32 %v12351_v20, %v10012_v49 }
 0x198   : > { %7113 = vmatpush3.bf16.msra.mxu0 %v7110_v35  ;;  %6415 = vmatprep.mubr.f32.mxu0 %v12343_v9  ;;  %v5697_v35 = vpop.f32.mrb[61].mxu0  ;;  %v10351_v43 = vadd.f32 %v5316_v45, %v633_v40  ;;  %v5318_v9 = vpop.f32.mrb[59].mxu1  ;;  %v12353_v40 = vld [vmem:[#allocation39_spill] sm:$0xff] }
 0x199   : > { %2673 = vmatmul.mubr.f32.gmra.mrb[162].mxu1 %v12344_v14  ;;  %7115 = vmatprep.subr.bf16.mxu0 %v7114_v28  ;;  %v10353_v2 = vadd.f32 %v5697_v35, %v5696_v21  ;;  %v12349_v14 = vld [vmem:[#allocation115_spill] sm:$0xff]  ;;  %v5699_v45 = vpop.f32.mrb[62].mxu0 }
 0x19a   : > { %2678 = vmatprep.mubr.f32.mxu1 %v12346_v13  ;;  %v5319_v13 = vadd.f32 %v5318_v9, %v5317_v58  ;;  %v5320_v35 = vpop.f32.mrb[60].mxu1  ;;  %v7126_v9 = vpack.c.bf16 %v10127_v36, %v10104_v60  ;;  %v12356_v58 = vld [vmem:[#allocation42_spill] sm:$0xff] }
 0x19b   : > { %6416 = vmatmul.mubr.f32.gmra.mrb[150].mxu0 %v12347_v46  ;;  %12348 = vst [vmem:[#allocation88_spill] sm:$0xff] %v10353_v2  ;;  %v12352_v46 = vld [vmem:[#allocation150_spill] sm:$0xff]  ;;  %v663_v20 = vadd.f32 %v12356_v58, %v10012_v49 }
 0x19c   : > { %7117 = vmatpush3.bf16.msra.mxu0 %v7114_v28  ;;  %6418 = vmatprep.mubr.f32.mxu0 %v12349_v14  ;;  %v5700_v28 = vpop.f32.mrb[63].mxu0  ;;  %v10363_v21 = vadd.f32 %v5319_v13, %v648_v22  ;;  %v12355_v14 = vld [vmem:[#allocation151_spill] sm:$0xff]  ;;  %v12358_v22 = vld [vmem:[#allocation48_spill] sm:$0xff] }
 0x19d   : > { %2680 = vmatmul.mubr.f32.gmra.mrb[164].mxu1 %v12350_v57  ;;  %7119 = vmatprep.subr.bf16.mxu0 %v7118_v55  ;;  %v10365_v2 = vadd.f32 %v5700_v28, %v5699_v45  ;;  %v5321_v57 = vpop.f32.mrb[61].mxu1  ;;  %v5702_v13 = vpop.f32.mrb[64].mxu0 }
 0x19e   : > { %2685 = vmatprep.mubr.f32.mxu1 %v12352_v46  ;;  %v5322_v46 = vadd.f32 %v5321_v57, %v5320_v35  ;;  %v5323_v28 = vpop.f32.mrb[62].mxu1  ;;  %v7130_v57 = vpack.c.bf16 %v10177_v8, %v10172_v3  ;;  %v12361_v35 = vld [vmem:[#allocation45_spill] sm:$0xff] }
 0x19f   : > { %6419 = vmatmul.mubr.f32.gmra.mrb[152].mxu0 %v12353_v40  ;;  %12354 = vst [vmem:[#allocation91_spill] sm:$0xff] %v10365_v2  ;;  %v12357_v40 = vld [vmem:[#allocation152_spill] sm:$0xff]  ;;  %v678_v58 = vadd.f32 %v12361_v35, %v10012_v49 }
 0x1a0   : > { %7121 = vmatpush3.bf16.msra.mxu0 %v7118_v55  ;;  %6421 = vmatprep.mubr.f32.mxu0 %v10023_v16  ;;  %v5703_v55 = vpop.f32.mrb[65].mxu0  ;;  %v10375_v45 = vadd.f32 %v5322_v46, %v663_v20  ;;  %v12360_v16 = vld [vmem:[#allocation153_spill] sm:$0xff] }
 0x1a1   : > { %2687 = vmatmul.mubr.f32.gmra.mrb[166].mxu1 %v12355_v14  ;;  %7123 = vmatprep.subr.bf16.mxu0 %v7122_v29  ;;  %v10377_v2 = vadd.f32 %v5703_v55, %v5702_v13  ;;  %v5324_v14 = vpop.f32.mrb[63].mxu1  ;;  %v5705_v46 = vpop.f32.mrb[66].mxu0 }
 0x1a2   : > { %2692 = vmatprep.mubr.f32.mxu1 %v12357_v40  ;;  %v5325_v40 = vadd.f32 %v5324_v14, %v5323_v28  ;;  %v5382_v13 = vpop.f32.mrb[64].mxu1  ;;  %v12365_v14 = vld [vmem:[#allocation159_spill] sm:$0xff] }
 0x1a3   : > { %6422 = vmatmul.mubr.f32.gmra.mrb[154].mxu0 %v12358_v22  ;;  %12359 = vst [vmem:[#allocation92_spill] sm:$0xff] %v10377_v2  ;;  %v12362_v22 = vld [vmem:[#allocation154_spill] sm:$0xff]  ;;  %v5383_v2 = vpop.f32.mrb[65].mxu1 }
 0x1a4   : > { %7125 = vmatpush3.bf16.msra.mxu0 %v7122_v29  ;;  %6424 = vmatprep.mubr.f32.mxu0 %v10099_v34  ;;  %v5706_v29 = vpop.f32.mrb[67].mxu0  ;;  %v10387_v20 = vadd.f32 %v5325_v40, %v678_v58  ;;  %v5384_v49 = vadd.f32 %v5383_v2, %v5382_v13  ;;  %v12370_v13 = vld [vmem:[#allocation122_spill] sm:$0xff]  ;;  %v12383_v34 = vld [vmem:[#allocation12_spill] sm:$0xff] }
 0x1a5   : > { %2694 = vmatmul.mubr.f32.gmra.mrb[168].mxu1 %v12360_v16  ;;  %7127 = vmatprep.subr.bf16.mxu0 %v7126_v9  ;;  %v10389_v55 = vadd.f32 %v5706_v29, %v5705_v46  ;;  %v12364_v16 = vld [vmem:[#allocation156_spill] sm:$0xff]  ;;  %v5708_v28 = vpop.f32.mrb[68].mxu0  ;;  %v12367_v46 = vld [vmem:[#allocation59_spill] sm:$0xff] }
 0x1a6   : > { %2699 = vmatprep.mubr.f32.mxu1 %v12362_v22  ;;  %v5709_v35 = vpop.f32.mrb[69].mxu0  ;;  %v10396_v40 = vadd.f32 %v5384_v49, %v10297_v51  ;;  %v5385_v58 = vpop.f32.mrb[66].mxu1  ;;  %v12371_v22 = vld [vmem:[#allocation62_spill] sm:$0xff] }
 0x1a7   : > { %6425 = vmatmul.mubr.f32.gmra.mrb[156].mxu0 %v10113_v5  ;;  %12363 = vst [vmem:[#allocation94_spill] sm:$0xff] %v10389_v55  ;;  %v5386_v29 = vpop.f32.mrb[67].mxu1  ;;  %v12368_v55 = vld [vmem:[#allocation166_spill] sm:$0xff]  ;;  %v12379_v5 = vld [vmem:[#allocation68_spill] sm:$0xff] }
 0x1a8   : > { %7129 = vmatpush3.bf16.msra.mxu0 %v7126_v9  ;;  %6427 = vmatprep.mubr.f32.mxu0 %v10160_v25  ;;  %v10398_v9 = vadd.f32 %v5709_v35, %v5708_v28  ;;  %v5387_v2 = vadd.f32 %v5386_v29, %v5385_v58  ;;  %v12374_v28 = vld [vmem:[#allocation126_spill] sm:$0xff] }
 0x1a9   : > { %2701 = vmatmul.mubr.f32.gmra.mrb[170].mxu1 %v12364_v16  ;;  %7131 = vmatprep.subr.bf16.mxu0 %v7130_v57  ;;  %v12369_v16 = vld [vmem:[#allocation79_spill] sm:$0xff]  ;;  %v12376_v58 = vld [vmem:[#allocation86_spill] sm:$0xff] }
 0x1aa   : > { %2706 = vmatprep.mubr.f32.mxu1 %v12365_v14  ;;  %12366 = vst [vmem:[#allocation98_spill] sm:$0xff] %v10398_v9  ;;  %v5711_v14 = vpop.f32.mrb[70].mxu0  ;;  %v10406_v51 = vadd.f32 %v5387_v2, %v10312_v50  ;;  %v12375_v9 = vld [vmem:[#allocation107_spill] sm:$0xff] }
 0x1ab   : > { %6428 = vmatmul.mubr.f32.gmra.mrb[158].mxu0 %v10196_v17  ;;  %v5712_v17 = vpop.f32.mrb[71].mxu0 }
 0x1ac   : > { %7133 = vmatpush3.bf16.msra.mxu0 %v7130_v57  ;;  %6462 = vmatprep.mubr.f32.mxu0 %v12367_v46  ;;  %12372 = vst [vmem:[#allocation71_spill] sm:$0xff] %v10406_v51  ;;  %v5388_v57 = vpop.f32.mrb[68].mxu1  ;;  %v10409_v49 = vadd.f32 %v5712_v17, %v5711_v14 }
 0x1ad   : > { %2708 = vmatmul.mubr.f32.gmra.mrb[172].mxu1 %v12368_v55  ;;  %7135 = vmatprep.subr.bf16.mxu0 %v12369_v16  ;;  %v5389_v35 = vpop.f32.mrb[69].mxu1  ;;  %v5714_v25 = vpop.f32.mrb[72].mxu0 }
 0x1ae   : > { %2713 = vmatprep.mubr.f32.mxu1 %v12370_v13  ;;  %12373 = vst [vmem:[#allocation80_spill] sm:$0xff] %v10409_v49  ;;  %v5390_v29 = vadd.f32 %v5389_v35, %v5388_v57  ;;  %v12377_v13 = vld [vmem:[#allocation113_spill] sm:$0xff]  ;;  %v5715_v50 = vpop.f32.mrb[73].mxu0  ;;  %v12384_v57 = vand.u32 4294901760, %v12383_v34  ;;  %v12386_v35 = vld [vmem:[#allocation120_spill] sm:$0xff] }
 0x1af   : > { %6463 = vmatmul.mubr.f32.vlgmr.msra.gmra.mrb[144].mxu0 %v12371_v22  ;;  %v12378_v55 = vand.u32 4294901760, %v12377_v13  ;;  %v5391_v17 = vpop.f32.mrb[70].mxu1  ;;  %v10421_v14 = vadd.f32 %v5715_v50, %v5714_v25  ;;  %v12382_v49 = vld [vmem:[#allocation89_spill] sm:$0xff]  ;;  %v12385_v13 = vld [vmem:[#allocation15_spill] sm:$0xff]  ;;  %v12387_v51 = vand.u32 4294901760, %v12386_v35 }
 0x1b0   : > { %7137 = vmatpush3.bf16.msra.mxu0 %v12369_v16  ;;  %6465 = vmatprep.mubr.f32.mxu0 %v12374_v28  ;;  %v10418_v2 = vadd.f32 %v5390_v29, %v10327_v59  ;;  %v12388_v29 = vld [vmem:[#allocation129_spill] sm:$0xff]  ;;  %v12395_v35 = vld [vmem:[#allocation123_spill] sm:$0xff] }
 0x1b1   : > { %2715 = vmatmul.mubr.f32.gmra.mrb[174].mxu1 %v12375_v9  ;;  %7139 = vmatprep.subr.bf16.mxu0 %v12376_v58  ;;  %12381 = vst [vmem:[#allocation90_spill] sm:$0xff] %v10421_v14  ;;  %v5392_v9 = vpop.f32.mrb[71].mxu1  ;;  %v5717_v59 = vpop.f32.mrb[74].mxu0 }
 0x1b2   : > { %3092 = vmatprep.mubr.f32.mxu1 %v12378_v55  ;;  %12380 = vst [vmem:[#allocation83_spill] sm:$0xff] %v10418_v2  ;;  %v5393_v55 = vadd.f32 %v5392_v9, %v5391_v17  ;;  %v5718_v25 = vpop.f32.mrb[75].mxu0  ;;  %v12391_v9 = vld [vmem:[#allocation34_spill] sm:$0xff]  ;;  %v12392_v17 = vld [vmem:[#allocation13_spill] sm:$0xff]  ;;  %v12396_v2 = vand.u32 4294901760, %v12395_v35 }
 0x1b3   : > { %6466 = vmatmul.mubr.f32.gmra.mrb[146].mxu0 %v12379_v5  ;;  %v5394_v14 = vpop.f32.mrb[72].mxu1  ;;  %v10436_v34 = vadd.f32 %v5718_v25, %v5717_v59 }
 0x1b4   : > { %7141 = vmatpush3.bf16.msra.mxu0 %v12376_v58  ;;  %6468 = vmatprep.mubr.f32.mxu0 %v12382_v49  ;;  %v10433_v50 = vadd.f32 %v5393_v55, %v10339_v47  ;;  %v12397_v55 = vld [vmem:[#allocation36_spill] sm:$0xff] }
 0x1b5   : > { %3096 = vmatmul.mubr.f32.vlgmr.msra.gmra.mrb[176].mxu1 %v12384_v57  ;;  %7143 = vmatprep.subr.bf16.mxu0 %v12385_v13  ;;  %12390 = vst [vmem:[#allocation100_spill] sm:$0xff] %v10436_v34  ;;  %v12393_v57 = vand.u32 4294901760, %v12392_v17  ;;  %v5720_v47 = vpop.f32.mrb[76].mxu0  ;;  %v12403_v34 = vld [vmem:[#allocation133_spill] sm:$0xff] }
 0x1b6   : > { %7009 = vmatpush3.bf16.msra.mxu1 %v12273_v42  ;;  %3103 = vmatprep.mubr.f32.mxu1 %v12387_v51  ;;  %12389 = vst [vmem:[#allocation93_spill] sm:$0xff] %v10433_v50  ;;  %v5395_v42 = vpop.f32.mrb[73].mxu1  ;;  %v12394_v51 = vld [vmem:[#allocation18_spill] sm:$0xff]  ;;  %v5721_v50 = vpop.f32.mrb[77].mxu0 }
 0x1b7   : > { %7011 = vmatprep.subr.bf16.mxu1 %v12274_v37  ;;  %6469 = vmatmul.mubr.f32.gmra.mrb[148].mxu0 %v12388_v29  ;;  %v5396_v37 = vadd.f32 %v5395_v42, %v5394_v14  ;;  %v5397_v25 = vpop.f32.mrb[74].mxu1  ;;  %v10451_v17 = vadd.f32 %v5721_v50, %v5720_v47  ;;  %v12399_v14 = vld [vmem:[#allocation116_spill] sm:$0xff] }
 0x1b8   : > { %7145 = vmatpush3.bf16.msra.mxu0 %v12385_v13  ;;  %6471 = vmatprep.mubr.f32.mxu0 %v12391_v9  ;;  %v5398_v42 = vpop.f32.mrb[75].mxu1  ;;  %v12404_v13 = vand.u32 4294901760, %v12403_v34 }
 0x1b9   : > { %3107 = vmatmul.mubr.f32.gmra.mrb[178].mxu1 %v12393_v57  ;;  %7147 = vmatprep.subr.bf16.mxu0 %v12394_v51  ;;  %v10448_v59 = vadd.f32 %v5396_v37, %v10351_v43  ;;  %12398 = vst [vmem:[#allocation101_spill] sm:$0xff] %v10451_v17  ;;  %v5399_v35 = vadd.f32 %v5398_v42, %v5397_v25  ;;  %v12405_v43 = vld [vmem:[#allocation44_spill] sm:$0xff] }
 0x1ba   : > { %3114 = vmatprep.mubr.f32.mxu1 %v12396_v2  ;;  %7013 = vmatpush3.bf16.msra.mxu1 %v12281_v44  ;;  %v12400_v2 = vld [vmem:[#allocation20_spill] sm:$0xff]  ;;  %v12402_v44 = vld [vmem:[#allocation22_spill] sm:$0xff] }
 0x1bb   : > { %6472 = vmatmul.mubr.f32.gmra.mrb[150].mxu0 %v12397_v55  ;;  %7015 = vmatprep.subr.bf16.mxu1 %v12284_v7  ;;  %v12401_v57 = vand.u32 4294901760, %v12400_v2  ;;  %v5723_v7 = vpop.f32.mrb[78].mxu0  ;;  %v10463_v50 = vadd.f32 %v5399_v35, %v10363_v21  ;;  %v5400_v47 = vpop.f32.mrb[76].mxu1 }
 0x1bc   : > { %7149 = vmatpush3.bf16.msra.mxu0 %v12394_v51  ;;  %6474 = vmatprep.mubr.f32.mxu0 %v12399_v14  ;;  %v5724_v37 = vpop.f32.mrb[79].mxu0  ;;  %v5401_v34 = vpop.f32.mrb[77].mxu1 }
 0x1bd   : > { %3118 = vmatmul.mubr.f32.gmra.mrb[180].mxu1 %v12401_v57  ;;  %7151 = vmatprep.subr.bf16.mxu0 %v12402_v44  ;;  %v10466_v2 = vadd.f32 %v5724_v37, %v5723_v7  ;;  %v5402_v42 = vadd.f32 %v5401_v34, %v5400_v47  ;;  %v12410_v57 = vld [vmem:[#allocation135_spill] sm:$0xff] }
 0x1be   : > { %3125 = vmatprep.mubr.f32.mxu1 %v12404_v13  ;;  %7017 = vmatpush3.bf16.msra.mxu1 %v12288_v30  ;;  %v12407_v13 = vld [vmem:[#allocation134_spill] sm:$0xff]  ;;  %v12409_v30 = vld [vmem:[#allocation23_spill] sm:$0xff]  ;;  %v12411_v17 = vand.u32 4294901760, %v12410_v57 }
 0x1bf   : > { %6475 = vmatmul.mubr.f32.gmra.mrb[152].mxu0 %v12405_v43  ;;  %7019 = vmatprep.subr.bf16.mxu1 %v12290_v1  ;;  %12406 = vst [vmem:[#allocation102_spill] sm:$0xff] %v10466_v2  ;;  %v12408_v25 = vand.u32 4294901760, %v12407_v13  ;;  %v5838_v1 = vpop.f32.mrb[80].mxu0  ;;  %v10478_v35 = vadd.f32 %v5402_v42, %v10375_v45  ;;  %v5403_v7 = vpop.f32.mrb[78].mxu1 }
 0x1c0   : > { %7153 = vmatpush3.bf16.msra.mxu0 %v12402_v44  ;;  %6477 = vmatprep.mubr.f32.mxu0 %v10053_v63  ;;  %v5839_v21 = vpop.f32.mrb[81].mxu0  ;;  %v5404_v47 = vpop.f32.mrb[79].mxu1 }
 0x1c1   : > { %3129 = vmatmul.mubr.f32.gmra.mrb[182].mxu1 %v12408_v25  ;;  %7155 = vmatprep.subr.bf16.mxu0 %v12409_v30  ;;  %v10481_v37 = vadd.f32 %v5839_v21, %v5838_v1  ;;  %v5405_v13 = vadd.f32 %v5404_v47, %v5403_v7  ;;  %v12416_v25 = vld [vmem:[#allocation137_spill] sm:$0xff]  ;;  %v12419_v47 = vld [vmem:[#allocation24_spill] sm:$0xff] }
 0x1c2   : > { %3136 = vmatprep.mubr.f32.mxu1 %v12411_v17  ;;  %7021 = vmatpush3.bf16.msra.mxu1 %v12294_v41  ;;  %v12413_v17 = vld [vmem:[#allocation21_spill] sm:$0xff]  ;;  %v12415_v41 = vld [vmem:[#allocation99_spill] sm:$0xff]  ;;  %v12417_v57 = vand.u32 4294901760, %v12416_v25 }
 0x1c3   : > { %6478 = vmatmul.mubr.f32.gmra.mrb[154].mxu0 %v10056_v32  ;;  %7023 = vmatprep.subr.bf16.mxu1 %v12296_v61  ;;  %12412 = vst [vmem:[#allocation26_spill] sm:$0xff] %v10481_v37  ;;  %v12414_v34 = vand.u32 4294901760, %v12413_v17  ;;  %v5841_v61 = vpop.f32.mrb[82].mxu0  ;;  %v10493_v42 = vadd.f32 %v5405_v13, %v10387_v20  ;;  %v12420_v17 = vand.u32 4294901760, %v12419_v47  ;;  %v12426_v13 = vld [vmem:[#allocation138_spill] sm:$0xff] }
 0x1c4   : > { %7157 = vmatpush3.bf16.msra.mxu0 %v12409_v30  ;;  %6480 = vmatprep.mubr.f32.mxu0 %v10149_v6  ;;  %v5842_v45 = vpop.f32.mrb[83].mxu0  ;;  %v5438_v1 = vpop.f32.mrb[80].mxu1  ;;  %v12427_v2 = vand.u32 4294901760, %v12426_v13  ;;  %v12436_v13 = vand.u32 4294901760, %v12371_v22  ;;  %v12440_v22 = vand.u32 4294901760, %v12327_v19 }
 0x1c5   : > { %3140 = vmatmul.mubr.f32.gmra.mrb[184].mxu1 %v12414_v34  ;;  %7159 = vmatprep.subr.bf16.mxu0 %v12415_v41  ;;  %12418 = vst [vmem:[#allocation103_spill] sm:$0xff] %v10493_v42  ;;  %v10496_v21 = vadd.f32 %v5842_v45, %v5841_v61  ;;  %v5439_v7 = vpop.f32.mrb[81].mxu1  ;;  %v12422_v34 = vld [vmem:[#allocation11_spill] sm:$0xff] }
 0x1c6   : > { %3147 = vmatprep.mubr.f32.mxu1 %v12417_v57  ;;  %7025 = vmatpush3.bf16.msra.mxu1 %v12301_v12  ;;  %v12421_v12 = vld [vmem:[#allocation2_spill] sm:$0xff]  ;;  %v12423_v25 = vand.u32 4294901760, %v12422_v34  ;;  %v12424_v57 = vld [vmem:[#allocation85_spill] sm:$0xff]  ;;  %v5440_v20 = vadd.f32 %v5439_v7, %v5438_v1  ;;  %v5844_v42 = vpop.f32.mrb[84].mxu0  ;;  %v12428_v1 = vand.u32 4294901760, %v12367_v46 }
 0x1c7   : > { %6481 = vmatmul.mubr.f32.gmra.mrb[156].mxu0 %v10158_v48  ;;  %7027 = vmatprep.subr.bf16.mxu1 %v12304_v10  ;;  %v12425_v10 = vand.u32 4294901760, %v12424_v57  ;;  %v5845_v61 = vpop.f32.mrb[85].mxu0 }
 0x1c8   : > { %7161 = vmatpush3.bf16.msra.mxu0 %v12415_v41  ;;  %6483 = vmatprep.mubr.f32.mxu0 %v10205_v18  ;;  %v1396_v45 = vadd.f32 %v5440_v20, %v10093_v23  ;;  %v5441_v47 = vpop.f32.mrb[82].mxu1  ;;  %v12433_v23 = vld [vmem:[#allocation141_spill] sm:$0xff] }
 0x1c9   : > { %3151 = vmatmul.mubr.f32.gmra.mrb[186].mxu1 %v12420_v17  ;;  %7163 = vmatprep.subr.bf16.mxu0 %v12421_v12  ;;  %v7166_v37 = vpack.c.bf16 %v12425_v10, %v12423_v25  ;;  %v10513_v17 = vadd.f32 %v5845_v61, %v5844_v42  ;;  %v5442_v7 = vpop.f32.mrb[83].mxu1  ;;  %v12432_v25 = vand.u32 4294901760, %v12318_v38  ;;  %v12434_v10 = vand.u32 4294901760, %v12433_v23  ;;  %v12435_v42 = vld [vmem:[#allocation28_spill] sm:$0xff] }
 0x1ca   : > { %3158 = vmatprep.mubr.f32.mxu1 %v12427_v2  ;;  %7029 = vmatpush3.bf16.msra.mxu1 %v12309_v39  ;;  %v12429_v2 = vld [vmem:[#allocation140_spill] sm:$0xff]  ;;  %v12431_v39 = vand.u32 4294901760, %v12317_v24  ;;  %v5443_v57 = vadd.f32 %v5442_v7, %v5441_v47  ;;  %v5847_v20 = vpop.f32.mrb[86].mxu0  ;;  %v10527_v46 = vadd.f32 %v12435_v42, %v1396_v45  ;;  %v12441_v45 = vand.u32 4294901760, %v12328_v26 }
 0x1cb   : > { %6484 = vmatmul.mubr.f32.gmra.mrb[158].mxu0 %v10231_v31  ;;  %7031 = vmatprep.subr.bf16.mxu1 %v12312_v56  ;;  %v12430_v34 = vand.u32 4294901760, %v12429_v2  ;;  %v5848_v61 = vpop.f32.mrb[87].mxu0 }
 0x1cc   : > { %7165 = vmatpush3.bf16.msra.mxu0 %v12421_v12  ;;  %6518 = vmatprep.mubr.f32.mxu0 %v12428_v1  ;;  %v7170_v56 = vpack.c.bf16 %v12432_v25, %v12431_v39  ;;  %v1407_v24 = vadd.f32 %v5443_v57, %v10134_v4  ;;  %v5444_v38 = vpop.f32.mrb[84].mxu1  ;;  %v10533_v47 = vadd.f32 %v5848_v61, %v5847_v20  ;;  %v12437_v1 = vand.u32 4294901760, %v12374_v28  ;;  %v12442_v39 = vld [vmem:[#allocation143_spill] sm:$0xff]  ;;  %v12444_v25 = vld [vmem:[#allocation33_spill] sm:$0xff] }
 0x1cd   : > { %3162 = vmatmul.mubr.f32.gmra.mrb[188].mxu1 %v12430_v34  ;;  %7167 = vmatprep.subr.bf16.mxu0 %v7166_v37  ;;  %v5445_v7 = vpop.f32.mrb[85].mxu1  ;;  %v7174_v34 = vpack.c.bf16 %v12441_v45, %v12440_v22  ;;  %v12443_v4 = vand.u32 4294901760, %v12442_v39  ;;  %v12445_v57 = vand.u32 4294901760, %v12379_v5  ;;  %v12446_v20 = vand.u32 4294901760, %v12382_v49  ;;  %v12455_v22 = vld [vmem:[#allocation10_spill] sm:$0xff] }
 0x1ce   : > { %3169 = vmatprep.mubr.f32.mxu1 %v12434_v10  ;;  %7033 = vmatpush3.bf16.msra.mxu1 %v12321_v27  ;;  %v12438_v27 = vld [vmem:[#allocation32_spill] sm:$0xff]  ;;  %v10547_v28 = vadd.f32 %v12444_v25, %v1407_v24  ;;  %v12450_v5 = vand.u32 4294901760, %v12338_v11  ;;  %v12454_v49 = vand.u32 4294901760, %v12388_v29  ;;  %v12456_v11 = vand.u32 4294901760, %v12391_v9 }
 0x1cf   : > { %6519 = vmatmul.mubr.f32.vlgmr.msra.gmra.mrb[144].mxu0 %v12436_v13  ;;  %7035 = vmatprep.subr.bf16.mxu1 %v12323_v0  ;;  %v12439_v2 = vand.u32 4294901760, %v12438_v27  ;;  %v5446_v0 = vadd.f32 %v5445_v7, %v5444_v38  ;;  %v12447_v13 = vld [vmem:[#allocation144_spill] sm:$0xff]  ;;  %v12453_v7 = vld [vmem:[#allocation37_spill] sm:$0xff]  ;;  %v12459_v25 = vand.u32 4294901760, %v9993_v15  ;;  %v12465_v9 = vand.u32 4294901760, %v12397_v55 }
 0x1d0   : > { %7169 = vmatpush3.bf16.msra.mxu0 %v7166_v37  ;;  %6521 = vmatprep.mubr.f32.mxu0 %v12437_v1  ;;  %v5850_v37 = vpop.f32.mrb[88].mxu0  ;;  %v5447_v19 = vpop.f32.mrb[86].mxu1  ;;  %v12448_v61 = vand.u32 4294901760, %v12447_v13  ;;  %v12451_v1 = vld [vmem:[#allocation149_spill] sm:$0xff]  ;;  %v12471_v55 = vand.u32 4294901760, %v10083_v52  ;;  %v12477_v52 = vand.u32 4294901760, %v10053_v63 }
 0x1d1   : > { %3173 = vmatmul.mubr.f32.gmra.mrb[190].mxu1 %v12439_v2  ;;  %7171 = vmatprep.subr.bf16.mxu0 %v7170_v56  ;;  %v5851_v23 = vpop.f32.mrb[89].mxu0  ;;  %v1418_v10 = vadd.f32 %v5446_v0, %v10185_v62  ;;  %v5448_v42 = vpop.f32.mrb[87].mxu1  ;;  %v12452_v62 = vand.u32 4294901760, %v12451_v1  ;;  %v12467_v1 = vand.u32 4294901760, %v12399_v14  ;;  %v12475_v14 = vand.u32 4294901760, %v12405_v43 }
 0x1d2   : > { %3180 = vmatprep.mubr.f32.mxu1 %v12443_v4  ;;  %7037 = vmatpush3.bf16.msra.mxu1 %v12331_v33  ;;  %v10552_v26 = vadd.f32 %v5851_v23, %v5850_v37  ;;  %v12449_v33 = vand.u32 4294901760, %v12337_v53  ;;  %v5449_v38 = vadd.f32 %v5448_v42, %v5447_v19  ;;  %v12457_v4 = vld [vmem:[#allocation155_spill] sm:$0xff]  ;;  %v12462_v19 = vld [vmem:[#allocation157_spill] sm:$0xff]  ;;  %v12481_v43 = vand.u32 4294901760, %v10127_v36 }
 0x1d3   : > { %6522 = vmatmul.mubr.f32.gmra.mrb[146].mxu0 %v12445_v57  ;;  %v10565_v27 = vadd.f32 %v12453_v7, %v1418_v10  ;;  %v12458_v37 = vand.u32 4294901760, %v12457_v4  ;;  %v12460_v57 = vld [vmem:[#allocation117_spill] sm:$0xff]  ;;  %v12485_v63 = vand.u32 4294901760, %v10056_v32  ;;  %v12487_v36 = vand.u32 4294901760, %v10149_v6 }
 0x1d4   : > { %7173 = vmatpush3.bf16.msra.mxu0 %v7170_v56  ;;  %6524 = vmatprep.mubr.f32.mxu0 %v12446_v20  ;;  %v7178_v24 = vpack.c.bf16 %v12450_v5, %v12449_v33  ;;  %v5853_v56 = vpop.f32.mrb[90].mxu0  ;;  %v1429_v45 = vadd.f32 %v5449_v38, %v12455_v22  ;;  %v5450_v0 = vpop.f32.mrb[88].mxu1  ;;  %v12461_v29 = vand.u32 4294901760, %v12460_v57  ;;  %v12463_v20 = vand.u32 4294901760, %v12462_v19  ;;  %v12464_v42 = vld [vmem:[#allocation41_spill] sm:$0xff] }
 0x1d5   : > { %3184 = vmatmul.mubr.f32.gmra.mrb[192].mxu1 %v12448_v61  ;;  %7175 = vmatprep.subr.bf16.mxu0 %v7174_v34  ;;  %v5854_v2 = vpop.f32.mrb[91].mxu0  ;;  %v5451_v39 = vpop.f32.mrb[89].mxu1  ;;  %v12466_v33 = vld [vmem:[#allocation61_spill] sm:$0xff]  ;;  %v12491_v32 = vand.u32 4294901760, %v10177_v8  ;;  %v12495_v6 = vand.u32 4294901760, %v10158_v48  ;;  %v12497_v8 = vand.u32 4294901760, %v10205_v18 }
 0x1d6   : > { %3191 = vmatprep.mubr.f32.mxu1 %v12452_v62  ;;  %v10570_v53 = vadd.f32 %v5854_v2, %v5853_v56  ;;  %v7182_v23 = vpack.c.bf16 %v12461_v29, %v12459_v25  ;;  %v5452_v10 = vadd.f32 %v5451_v39, %v5450_v0  ;;  %v10583_v13 = vadd.f32 %v12464_v42, %v1429_v45  ;;  %v12468_v56 = vld [vmem:[#allocation158_spill] sm:$0xff]  ;;  %v12472_v45 = vld [vmem:[#allocation160_spill] sm:$0xff] }
 0x1d7   : > { %6525 = vmatmul.mubr.f32.gmra.mrb[148].mxu0 %v12454_v49  ;;  %v12469_v7 = vand.u32 4294901760, %v12468_v56  ;;  %v12470_v49 = vand.u32 4294901760, %v10043_v54  ;;  %v12473_v0 = vand.u32 4294901760, %v12472_v45 }
 0x1d8   : > { %7177 = vmatpush3.bf16.msra.mxu0 %v7174_v34  ;;  %6527 = vmatprep.mubr.f32.mxu0 %v12456_v11  ;;  %v5856_v34 = vpop.f32.mrb[92].mxu0  ;;  %v1440_v5 = vadd.f32 %v5452_v10, %v12466_v33  ;;  %v5453_v38 = vpop.f32.mrb[90].mxu1  ;;  %v12474_v11 = vld [vmem:[#allocation52_spill] sm:$0xff]  ;;  %v12478_v10 = vld [vmem:[#allocation161_spill] sm:$0xff] }
 0x1d9   : > { %3195 = vmatmul.mubr.f32.gmra.mrb[194].mxu1 %v12458_v37  ;;  %7179 = vmatprep.subr.bf16.mxu0 %v7178_v24  ;;  %v5857_v61 = vpop.f32.mrb[93].mxu0  ;;  %v5454_v62 = vpop.f32.mrb[91].mxu1  ;;  %v7186_v2 = vpack.c.bf16 %v12471_v55, %v12470_v49  ;;  %v12476_v37 = vld [vmem:[#allocation66_spill] sm:$0xff]  ;;  %v12479_v19 = vand.u32 4294901760, %v12478_v10  ;;  %v12484_v33 = vld [vmem:[#allocation65_spill] sm:$0xff]  ;;  %v12488_v49 = vld [vmem:[#allocation163_spill] sm:$0xff] }
 0x1da   : > { %3202 = vmatprep.mubr.f32.mxu1 %v12463_v20  ;;  %v10588_v15 = vadd.f32 %v5857_v61, %v5856_v34  ;;  %v5455_v22 = vadd.f32 %v5454_v62, %v5453_v38  ;;  %v10601_v39 = vadd.f32 %v12474_v11, %v1440_v5  ;;  %v12480_v20 = vand.u32 4294901760, %v10104_v60  ;;  %v12498_v10 = vld [vmem:[#allocation165_spill] sm:$0xff] }
 0x1db   : > { %6528 = vmatmul.mubr.f32.gmra.mrb[150].mxu0 %v12465_v9  ;;  %v12482_v9 = vld [vmem:[#allocation162_spill] sm:$0xff]  ;;  %v12489_v55 = vand.u32 4294901760, %v12488_v49 }
 0x1dc   : > { %7181 = vmatpush3.bf16.msra.mxu0 %v7178_v24  ;;  %6530 = vmatprep.mubr.f32.mxu0 %v12467_v1  ;;  %v5859_v24 = vpop.f32.mrb[94].mxu0  ;;  %v1451_v25 = vadd.f32 %v5455_v22, %v12476_v37  ;;  %v5456_v57 = vpop.f32.mrb[92].mxu1  ;;  %v7190_v34 = vpack.c.bf16 %v12481_v43, %v12480_v20  ;;  %v12483_v61 = vand.u32 4294901760, %v12482_v9  ;;  %v12486_v1 = vld [vmem:[#allocation72_spill] sm:$0xff]  ;;  %v12490_v22 = vand.u32 4294901760, %v10172_v3  ;;  %v12500_v43 = vld [vmem:[#allocation167_spill] sm:$0xff] }
 0x1dd   : > { %3206 = vmatmul.mubr.f32.gmra.mrb[196].mxu1 %v12469_v7  ;;  %7183 = vmatprep.subr.bf16.mxu0 %v7182_v23  ;;  %v5860_v4 = vpop.f32.mrb[95].mxu0  ;;  %v5457_v29 = vpop.f32.mrb[93].mxu1  ;;  %v12502_v9 = vld [vmem:[#allocation63_spill] sm:$0xff] }
 0x1de   : > { %3213 = vmatprep.mubr.f32.mxu1 %v12473_v0  ;;  %v10606_v54 = vadd.f32 %v5860_v4, %v5859_v24  ;;  %v5458_v42 = vadd.f32 %v5457_v29, %v5456_v57  ;;  %v10619_v5 = vadd.f32 %v12484_v33, %v1451_v25  ;;  %v7194_v45 = vpack.c.bf16 %v12491_v32, %v12490_v22  ;;  %v12492_v24 = vld [vmem:[#allocation164_spill] sm:$0xff] }
 0x1df   : > { %6531 = vmatmul.mubr.f32.gmra.mrb[152].mxu0 %v12475_v14  ;;  %v12493_v11 = vand.u32 4294901760, %v12492_v24  ;;  %v12494_v14 = vld [vmem:[#allocation97_spill] sm:$0xff]  ;;  %v12496_v25 = vld [vmem:[#allocation76_spill] sm:$0xff] }
 0x1e0   : > { %7185 = vmatpush3.bf16.msra.mxu0 %v7182_v23  ;;  %6533 = vmatprep.mubr.f32.mxu0 %v12477_v52  ;;  %v5862_v23 = vpop.f32.mrb[96].mxu0  ;;  %v1462_v62 = vadd.f32 %v5458_v42, %v12486_v1  ;;  %v5459_v56 = vpop.f32.mrb[94].mxu1  ;;  %v12501_v42 = vand.u32 4294901760, %v12500_v43 }
 0x1e1   : > { %3217 = vmatmul.mubr.f32.gmra.mrb[198].mxu1 %v12479_v19  ;;  %7187 = vmatprep.subr.bf16.mxu0 %v7186_v2  ;;  %v5863_v38 = vpop.f32.mrb[97].mxu0  ;;  %v5460_v7 = vpop.f32.mrb[95].mxu1  ;;  %v12499_v19 = vand.u32 4294901760, %v12498_v10  ;;  %v12517_v10 = vld [vmem:[#allocation53_spill] sm:$0xff] }
 0x1e2   : > { %3224 = vmatprep.mubr.f32.mxu1 %v12483_v61  ;;  %v10624_v60 = vadd.f32 %v5863_v38, %v5862_v23  ;;  %v5461_v0 = vadd.f32 %v5460_v7, %v5459_v56  ;;  %v10637_v4 = vadd.f32 %v12494_v14, %v1462_v62  ;;  %v12504_v38 = vld [vmem:[#allocation43_spill] sm:$0xff]  ;;  %v12505_v62 = vld [vmem:[#allocation168_spill] sm:$0xff]  ;;  %v12507_v7 = vld [vmem:[#allocation125_spill] sm:$0xff] }
 0x1e3   : > { %6534 = vmatmul.mubr.f32.gmra.mrb[154].mxu0 %v12485_v63  ;;  %v12506_v56 = vand.u32 4294901760, %v12505_v62  ;;  %v12508_v49 = vand.u32 4294901760, %v12507_v7  ;;  %v12523_v62 = vld [vmem:[#allocation5_spill] sm:$0xff] }
 0x1e4   : > { %7189 = vmatpush3.bf16.msra.mxu0 %v7186_v2  ;;  %6536 = vmatprep.mubr.f32.mxu0 %v12487_v36  ;;  %v5865_v2 = vpop.f32.mrb[98].mxu0  ;;  %v1473_v57 = vadd.f32 %v5461_v0, %v12496_v25  ;;  %v5462_v52 = vpop.f32.mrb[96].mxu1 }
 0x1e5   : > { %3228 = vmatmul.mubr.f32.gmra.mrb[200].mxu1 %v12489_v55  ;;  %7191 = vmatprep.subr.bf16.mxu0 %v7190_v34  ;;  %v5866_v37 = vpop.f32.mrb[99].mxu0  ;;  %v5463_v29 = vpop.f32.mrb[97].mxu1  ;;  %v12509_v55 = vld [vmem:[#allocation4_spill] sm:$0xff] }
 0x1e6   : > { %3235 = vmatprep.mubr.f32.mxu1 %v12493_v11  ;;  %v10642_v3 = vadd.f32 %v5866_v37, %v5865_v2  ;;  %v5464_v20 = vadd.f32 %v5463_v29, %v5462_v52  ;;  %v5868_v48 = vpop.f32.mrb[100].mxu0  ;;  %v10651_v61 = vadd.f32 %v12502_v9, %v1473_v57  ;;  %v12512_v2 = vld [vmem:[#allocation47_spill] sm:$0xff]  ;;  %v12515_v57 = vld [vmem:[#allocation110_spill] sm:$0xff] }
 0x1e7   : > { %6537 = vmatmul.mubr.f32.gmra.mrb[156].mxu0 %v12495_v6  ;;  %v5869_v23 = vpop.f32.mrb[101].mxu0  ;;  %v12513_v6 = vld [vmem:[#allocation108_spill] sm:$0xff] }
 0x1e8   : > { %7193 = vmatpush3.bf16.msra.mxu0 %v7190_v34  ;;  %6539 = vmatprep.mubr.f32.mxu0 %v12497_v8  ;;  %v12503_v34 = vand.u32 4294901760, %v10231_v31  ;;  %v1484_v18 = vadd.f32 %v5464_v20, %v10396_v40  ;;  %v5465_v33 = vpop.f32.mrb[98].mxu1  ;;  %v10656_v63 = vadd.f32 %v5869_v23, %v5868_v48  ;;  %v12510_v40 = vld [vmem:[#allocation46_spill] sm:$0xff]  ;;  %v12514_v37 = vand.u32 4294901760, %v12513_v6  ;;  %v12519_v48 = vld [vmem:[#allocation69_spill] sm:$0xff]  ;;  %v12521_v23 = vld [vmem:[#allocation15_spill] sm:$0xff] }
 0x1e9   : > { %3239 = vmatmul.mubr.f32.gmra.mrb[202].mxu1 %v12499_v19  ;;  %7195 = vmatprep.subr.bf16.mxu0 %v7194_v45  ;;  %v5466_v1 = vpop.f32.mrb[99].mxu1  ;;  %v12516_v8 = vld [vmem:[#allocation50_spill] sm:$0xff]  ;;  %v12518_v19 = vld [vmem:[#allocation83_spill] sm:$0xff] }
 0x1ea   : > { %3246 = vmatprep.mubr.f32.mxu1 %v12501_v42  ;;  %v5467_v36 = vadd.f32 %v5466_v1, %v5465_v33  ;;  %v5871_v31 = vpop.f32.mrb[102].mxu0  ;;  %v10665_v22 = vadd.f32 %v12509_v55, %v1484_v18  ;;  %v12522_v33 = vld [vmem:[#allocation114_spill] sm:$0xff] }
 0x1eb   : > { %6540 = vmatmul.mubr.f32.gmra.mrb[158].mxu0 %v12503_v34  ;;  %v5872_v32 = vpop.f32.mrb[103].mxu0  ;;  %v12520_v34 = vld [vmem:[#allocation8_spill] sm:$0xff] }
 0x1ec   : > { %7197 = vmatpush3.bf16.msra.mxu0 %v7194_v45  ;;  %6574 = vmatprep.mubr.f32.mxu0 %v12504_v38  ;;  %v12511_v45 = vld [vmem:[#allocation71_spill] sm:$0xff]  ;;  %v5468_v24 = vpop.f32.mrb[100].mxu1  ;;  %v10670_v11 = vadd.f32 %v5872_v32, %v5871_v31 }
 0x1ed   : > { %3250 = vmatmul.mubr.f32.gmra.mrb[204].mxu1 %v12506_v56  ;;  %7199 = vmatprep.subr.bf16.mxu0 %v12369_v16  ;;  %v1495_v0 = vadd.f32 %v5467_v36, %v12511_v45  ;;  %v5469_v14 = vpop.f32.mrb[101].mxu1  ;;  %v12524_v36 = vld [vmem:[#allocation75_spill] sm:$0xff] }
 0x1ee   : > { %3257 = vmatprep.mubr.f32.mxu1 %v12508_v49  ;;  %v5470_v25 = vadd.f32 %v5469_v14, %v5468_v24  ;;  %v5874_v52 = vpop.f32.mrb[104].mxu0  ;;  %v12526_v32 = vld [vmem:[#allocation95_spill] sm:$0xff]  ;;  %v12528_v14 = vld [vmem:[#allocation121_spill] sm:$0xff] }
 0x1ef   : > { %6575 = vmatmul.mubr.f32.vlgmr.msra.gmra.mrb[144].mxu0 %v12510_v40  ;;  %v10678_v29 = vadd.f32 %v12516_v8, %v1495_v0  ;;  %v12527_v0 = vld [vmem:[#allocation9_spill] sm:$0xff] }
 0x1f0   : > { %7201 = vmatpush3.bf16.msra.mxu0 %v12369_v16  ;;  %6577 = vmatprep.mubr.f32.mxu0 %v12512_v2  ;;  %v5875_v16 = vpop.f32.mrb[105].mxu0  ;;  %v1506_v20 = vadd.f32 %v5470_v25, %v12518_v19  ;;  %v5471_v43 = vpop.f32.mrb[102].mxu1 }
 0x1f1   : > { %3261 = vmatmul.mubr.f32.gmra.mrb[206].mxu1 %v12514_v37  ;;  %7203 = vmatprep.subr.bf16.mxu0 %v12376_v58  ;;  %v10683_v42 = vadd.f32 %v5875_v16, %v5874_v52  ;;  %v5472_v9 = vpop.f32.mrb[103].mxu1  ;;  %v12529_v37 = vld [vmem:[#allocation51_spill] sm:$0xff] }
 0x1f2   : > { %3636 = vmatprep.mubr.f32.mxu1 %v12515_v57  ;;  %v5473_v18 = vadd.f32 %v5472_v9, %v5471_v43  ;;  %v5877_v1 = vpop.f32.mrb[106].mxu0  ;;  %v10690_v56 = vadd.f32 %v12523_v62, %v1506_v20  ;;  %v12530_v57 = vld [vmem:[#allocation27_spill] sm:$0xff]  ;;  %v12532_v9 = vld [vmem:[#allocation16_spill] sm:$0xff] }
 0x1f3   : > { %6578 = vmatmul.mubr.f32.gmra.mrb[146].mxu0 %v12517_v10  ;;  %v5878_v7 = vpop.f32.mrb[107].mxu0  ;;  %v12531_v20 = vld [vmem:[#allocation115_spill] sm:$0xff] }
 0x1f4   : > { %7205 = vmatpush3.bf16.msra.mxu0 %v12376_v58  ;;  %6580 = vmatprep.mubr.f32.mxu0 %v12519_v48  ;;  %v12525_v58 = vld [vmem:[#allocation93_spill] sm:$0xff]  ;;  %v5474_v31 = vpop.f32.mrb[104].mxu1  ;;  %v10695_v55 = vadd.f32 %v5878_v7, %v5877_v1 }
 0x1f5   : > { %3638 = vmatmul.mubr.f32.vlgmr.msra.gmra.mrb[208].mxu1 %v12520_v34  ;;  %7207 = vmatprep.subr.bf16.mxu0 %v12521_v23  ;;  %v1517_v49 = vadd.f32 %v5473_v18, %v12525_v58  ;;  %v5475_v45 = vpop.f32.mrb[105].mxu1 }
 0x1f6   : > { %3643 = vmatprep.mubr.f32.mxu1 %v12522_v33  ;;  %v5476_v24 = vadd.f32 %v5475_v45, %v5474_v31  ;;  %v5880_v6 = vpop.f32.mrb[108].mxu0  ;;  %v12534_v33 = vld [vmem:[#allocation6_spill] sm:$0xff]  ;;  %v12537_v45 = vld [vmem:[#allocation127_spill] sm:$0xff] }
 0x1f7   : > { %6581 = vmatmul.mubr.f32.gmra.mrb[148].mxu0 %v12524_v36  ;;  %v10702_v25 = vadd.f32 %v12529_v37, %v1517_v49  ;;  %v5881_v52 = vpop.f32.mrb[109].mxu0  ;;  %v12536_v49 = vld [vmem:[#allocation118_spill] sm:$0xff] }
 0x1f8   : > { %7209 = vmatpush3.bf16.msra.mxu0 %v12521_v23  ;;  %6583 = vmatprep.mubr.f32.mxu0 %v12526_v32  ;;  %v1528_v8 = vadd.f32 %v5476_v24, %v10448_v59  ;;  %v5477_v16 = vpop.f32.mrb[106].mxu1  ;;  %v10707_v19 = vadd.f32 %v5881_v52, %v5880_v6  ;;  %v12533_v23 = vld [vmem:[#allocation124_spill] sm:$0xff]  ;;  %v12535_v59 = vld [vmem:[#allocation39_spill] sm:$0xff]  ;;  %v12539_v6 = vld [vmem:[#allocation58_spill] sm:$0xff] }
 0x1f9   : > { %3645 = vmatmul.mubr.f32.gmra.mrb[210].mxu1 %v12527_v0  ;;  %7211 = vmatprep.subr.bf16.mxu0 %v12394_v51  ;;  %v5478_v43 = vpop.f32.mrb[107].mxu1  ;;  %v12538_v24 = vld [vmem:[#allocation128_spill] sm:$0xff] }
 0x1fa   : > { %3650 = vmatprep.mubr.f32.mxu1 %v12528_v14  ;;  %v5479_v34 = vadd.f32 %v5478_v43, %v5477_v16  ;;  %v5883_v18 = vpop.f32.mrb[110].mxu0  ;;  %v10714_v1 = vadd.f32 %v12534_v33, %v1528_v8  ;;  %v12541_v43 = vld [vmem:[#allocation119_spill] sm:$0xff] }
 0x1fb   : > { %6584 = vmatmul.mubr.f32.gmra.mrb[150].mxu0 %v12530_v57  ;;  %v5884_v62 = vpop.f32.mrb[111].mxu0 }
 0x1fc   : > { %7213 = vmatpush3.bf16.msra.mxu0 %v12394_v51  ;;  %6586 = vmatprep.mubr.f32.mxu0 %v12531_v20  ;;  %v1539_v51 = vadd.f32 %v5479_v34, %v10463_v50  ;;  %v5480_v7 = vpop.f32.mrb[108].mxu1  ;;  %v10719_v58 = vadd.f32 %v5884_v62, %v5883_v18  ;;  %v12540_v50 = vld [vmem:[#allocation48_spill] sm:$0xff]  ;;  %v12542_v34 = vld [vmem:[#allocation17_spill] sm:$0xff]  ;;  %v12543_v18 = vld [vmem:[#allocation130_spill] sm:$0xff] }
 0x1fd   : > { %3652 = vmatmul.mubr.f32.gmra.mrb[212].mxu1 %v12532_v9  ;;  %7215 = vmatprep.subr.bf16.mxu0 %v12402_v44  ;;  %v5481_v31 = vpop.f32.mrb[109].mxu1  ;;  %v12544_v62 = vld [vmem:[#allocation60_spill] sm:$0xff] }
 0x1fe   : > { %3657 = vmatprep.mubr.f32.mxu1 %v12533_v23  ;;  %v5482_v0 = vadd.f32 %v5481_v31, %v5480_v7  ;;  %v5998_v14 = vpop.f32.mrb[112].mxu0  ;;  %v10726_v37 = vadd.f32 %v12539_v6, %v1539_v51  ;;  %v12548_v6 = vld [vmem:[#allocation131_spill] sm:$0xff] }
 0x1ff   : > { %6587 = vmatmul.mubr.f32.gmra.mrb[152].mxu0 %v12535_v59  ;;  %v5999_v52 = vpop.f32.mrb[113].mxu0 }
 0x200   : > { %7217 = vmatpush3.bf16.msra.mxu0 %v12402_v44  ;;  %6589 = vmatprep.mubr.f32.mxu0 %v12536_v49  ;;  %v1550_v44 = vadd.f32 %v5482_v0, %v10478_v35  ;;  %v5483_v8 = vpop.f32.mrb[110].mxu1  ;;  %v10731_v16 = vadd.f32 %v5999_v52, %v5998_v14  ;;  %v12545_v35 = vld [vmem:[#allocation54_spill] sm:$0xff] }
 0x201   : > { %3659 = vmatmul.mubr.f32.gmra.mrb[214].mxu1 %v12537_v45  ;;  %7219 = vmatprep.subr.bf16.mxu0 %v12409_v30  ;;  %v5484_v9 = vpop.f32.mrb[111].mxu1 }
 0x202   : > { %3664 = vmatprep.mubr.f32.mxu1 %v12538_v24  ;;  %v5485_v23 = vadd.f32 %v5484_v9, %v5483_v8  ;;  %v6001_v33 = vpop.f32.mrb[114].mxu0  ;;  %v10738_v51 = vadd.f32 %v12544_v62, %v1550_v44  ;;  %v12547_v24 = vld [vmem:[#allocation7_spill] sm:$0xff]  ;;  %v12549_v44 = vld [vmem:[#allocation132_spill] sm:$0xff] }
 0x203   : > { %6590 = vmatmul.mubr.f32.gmra.mrb[154].mxu0 %v12540_v50  ;;  %v6002_v7 = vpop.f32.mrb[115].mxu0  ;;  %v12550_v9 = vld [vmem:[#allocation64_spill] sm:$0xff] }
 0x204   : > { %7221 = vmatpush3.bf16.msra.mxu0 %v12409_v30  ;;  %6592 = vmatprep.mubr.f32.mxu0 %v12541_v43  ;;  %v12546_v30 = vld [vmem:[#allocation103_spill] sm:$0xff]  ;;  %v5598_v45 = vpop.f32.mrb[112].mxu1  ;;  %v10743_v0 = vadd.f32 %v6002_v7, %v6001_v33 }
 0x205   : > { %3666 = vmatmul.mubr.f32.gmra.mrb[216].mxu1 %v12542_v34  ;;  %7223 = vmatprep.subr.bf16.mxu0 %v12415_v41  ;;  %v1561_v31 = vadd.f32 %v5485_v23, %v12546_v30  ;;  %v5599_v14 = vpop.f32.mrb[113].mxu1  ;;  %v12551_v23 = vld [vmem:[#allocation55_spill] sm:$0xff]  ;;  %v12552_v30 = vld [vmem:[#allocation136_spill] sm:$0xff] }
 0x206   : > { %3671 = vmatprep.mubr.f32.mxu1 %v12543_v18  ;;  %v5600_v52 = vadd.f32 %v5599_v14, %v5598_v45  ;;  %v6004_v8 = vpop.f32.mrb[116].mxu0  ;;  %v12553_v14 = vld [vmem:[#allocation139_spill] sm:$0xff] }
 0x207   : > { %6593 = vmatmul.mubr.f32.gmra.mrb[156].mxu0 %v12545_v35  ;;  %v10750_v34 = vadd.f32 %v12550_v9, %v1561_v31  ;;  %v6005_v18 = vpop.f32.mrb[117].mxu0  ;;  %v12555_v9 = vld [vmem:[#allocation25_spill] sm:$0xff] }
 0x208   : > { %7225 = vmatpush3.bf16.msra.mxu0 %v12415_v41  ;;  %6595 = vmatprep.mubr.f32.mxu0 %v12547_v24  ;;  %v1938_v41 = vadd.f32 %v5600_v52, %v10527_v46  ;;  %v5601_v33 = vpop.f32.mrb[114].mxu1  ;;  %v10755_v62 = vadd.f32 %v6005_v18, %v6004_v8 }
 0x209   : > { %3673 = vmatmul.mubr.f32.gmra.mrb[218].mxu1 %v12548_v6  ;;  %7227 = vmatprep.subr.bf16.mxu0 %v12421_v12  ;;  %v5602_v7 = vpop.f32.mrb[115].mxu1  ;;  %v12554_v6 = vld [vmem:[#allocation67_spill] sm:$0xff] }
 0x20a   : > { %3678 = vmatprep.mubr.f32.mxu1 %v12549_v44  ;;  %v5603_v45 = vadd.f32 %v5602_v7, %v5601_v33  ;;  %v6007_v31 = vpop.f32.mrb[118].mxu0  ;;  %v10761_v44 = vadd.f32 %v12554_v6, %v1938_v41  ;;  %v12556_v33 = vld [vmem:[#allocation30_spill] sm:$0xff] }
 0x20b   : > { %6596 = vmatmul.mubr.f32.gmra.mrb[158].mxu0 %v12551_v23  ;;  %v6008_v46 = vpop.f32.mrb[119].mxu0 }
 0x20c   : > { %7229 = vmatpush3.bf16.msra.mxu0 %v12421_v12  ;;  %6630 = vmatprep.mubr.f32.mxu0 %v12504_v38  ;;  %v1945_v52 = vadd.f32 %v5603_v45, %v10547_v28  ;;  %v5604_v12 = vpop.f32.mrb[116].mxu1  ;;  %v10765_v8 = vadd.f32 %v6008_v46, %v6007_v31  ;;  %v12558_v31 = vld [vmem:[#allocation142_spill] sm:$0xff]  ;;  %v12559_v46 = vld [vmem:[#allocation145_spill] sm:$0xff] }
 0x20d   : > { %3680 = vmatmul.mubr.f32.gmra.mrb[220].mxu1 %v12552_v30  ;;  %v5605_v38 = vpop.f32.mrb[117].mxu1  ;;  %v12557_v30 = vld [vmem:[#allocation73_spill] sm:$0xff] }
 0x20e   : > { %3685 = vmatprep.mubr.f32.mxu1 %v12553_v14  ;;  %v5606_v18 = vadd.f32 %v5605_v38, %v5604_v12  ;;  %v6010_v7 = vpop.f32.mrb[120].mxu0  ;;  %v10771_v41 = vadd.f32 %v12557_v30, %v1945_v52  ;;  %v12560_v38 = vld [vmem:[#allocation77_spill] sm:$0xff]  ;;  %v12562_v30 = vld [vmem:[#allocation147_spill] sm:$0xff] }
 0x20f   : > { %6631 = vmatmul.mubr.f32.vlgmr.msra.gmra.mrb[144].mxu0 %v12510_v40  ;;  %v6011_v40 = vpop.f32.mrb[121].mxu0 }
 0x210   : > { %6633 = vmatprep.mubr.f32.mxu0 %v12512_v2  ;;  %v1952_v28 = vadd.f32 %v5606_v18, %v10565_v27  ;;  %v5607_v45 = vpop.f32.mrb[118].mxu1  ;;  %v10775_v14 = vadd.f32 %v6011_v40, %v6010_v7 }
 0x211   : > { %3687 = vmatmul.mubr.f32.gmra.mrb[222].mxu1 %v12555_v9  ;;  %v5608_v2 = vpop.f32.mrb[119].mxu1 }
 0x212   : > { %3692 = vmatprep.mubr.f32.mxu1 %v12556_v33  ;;  %v5609_v6 = vadd.f32 %v5608_v2, %v5607_v45  ;;  %v6013_v12 = vpop.f32.mrb[122].mxu0  ;;  %v10781_v52 = vadd.f32 %v12560_v38, %v1952_v28  ;;  %v12561_v33 = vld [vmem:[#allocation146_spill] sm:$0xff]  ;;  %v12563_v45 = vld [vmem:[#allocation81_spill] sm:$0xff] }
 0x213   : > { %6634 = vmatmul.mubr.f32.gmra.mrb[146].mxu0 %v12517_v10  ;;  %v6014_v10 = vpop.f32.mrb[123].mxu0 }
 0x214   : > { %6636 = vmatprep.mubr.f32.mxu0 %v12519_v48  ;;  %v1959_v27 = vadd.f32 %v5609_v6, %v10583_v13  ;;  %v5610_v9 = vpop.f32.mrb[120].mxu1  ;;  %v10785_v18 = vadd.f32 %v6014_v10, %v6013_v12  ;;  %v12564_v6 = vld [vmem:[#allocation148_spill] sm:$0xff]  ;;  %v12565_v12 = vld [vmem:[#allocation150_spill] sm:$0xff] }
 0x215   : > { %3694 = vmatmul.mubr.f32.gmra.mrb[224].mxu1 %v12558_v31  ;;  %v5611_v48 = vpop.f32.mrb[121].mxu1  ;;  %v12566_v10 = vld [vmem:[#allocation82_spill] sm:$0xff] }
 0x216   : > { %3699 = vmatprep.mubr.f32.mxu1 %v12559_v46  ;;  %v5612_v7 = vadd.f32 %v5611_v48, %v5610_v9  ;;  %v6016_v40 = vpop.f32.mrb[124].mxu0  ;;  %v10791_v28 = vadd.f32 %v12563_v45, %v1959_v27  ;;  %v12569_v45 = vld [vmem:[#allocation84_spill] sm:$0xff] }
 0x217   : > { %6637 = vmatmul.mubr.f32.gmra.mrb[148].mxu0 %v12524_v36  ;;  %v6017_v36 = vpop.f32.mrb[125].mxu0 }
 0x218   : > { %6639 = vmatprep.mubr.f32.mxu0 %v12526_v32  ;;  %v1966_v13 = vadd.f32 %v5612_v7, %v10601_v39  ;;  %v5613_v2 = vpop.f32.mrb[122].mxu1  ;;  %v10795_v31 = vadd.f32 %v6017_v36, %v6016_v40 }
 0x219   : > { %3701 = vmatmul.mubr.f32.gmra.mrb[226].mxu1 %v12561_v33  ;;  %v5614_v32 = vpop.f32.mrb[123].mxu1  ;;  %v12567_v33 = vld [vmem:[#allocation151_spill] sm:$0xff] }
 0x21a   : > { %3706 = vmatprep.mubr.f32.mxu1 %v12562_v30  ;;  %v5615_v46 = vadd.f32 %v5614_v32, %v5613_v2  ;;  %v6019_v38 = vpop.f32.mrb[126].mxu0  ;;  %v10801_v27 = vadd.f32 %v12566_v10, %v1966_v13  ;;  %v12568_v30 = vld [vmem:[#allocation152_spill] sm:$0xff]  ;;  %v12570_v32 = vld [vmem:[#allocation153_spill] sm:$0xff] }
 0x21b   : > { %6640 = vmatmul.mubr.f32.gmra.mrb[150].mxu0 %v12530_v57  ;;  %v6020_v57 = vpop.f32.mrb[127].mxu0 }
 0x21c   : > { %6642 = vmatprep.mubr.f32.mxu0 %v12531_v20  ;;  %v1973_v39 = vadd.f32 %v5615_v46, %v10619_v5  ;;  %v5616_v9 = vpop.f32.mrb[124].mxu1  ;;  %v10805_v48 = vadd.f32 %v6020_v57, %v6019_v38  ;;  %v12571_v46 = vld [vmem:[#allocation154_spill] sm:$0xff]  ;;  %v12572_v38 = vld [vmem:[#allocation88_spill] sm:$0xff] }
 0x21d   : > { %3708 = vmatmul.mubr.f32.gmra.mrb[228].mxu1 %v12564_v6  ;;  %v5617_v20 = vpop.f32.mrb[125].mxu1 }
 0x21e   : > { %3713 = vmatprep.mubr.f32.mxu1 %v12565_v12  ;;  %v5618_v7 = vadd.f32 %v5617_v20, %v5616_v9  ;;  %v6022_v40 = vpop.f32.mrb[128].mxu0  ;;  %v10811_v36 = vadd.f32 %v12569_v45, %v1973_v39  ;;  %v12573_v9 = vld [vmem:[#allocation156_spill] sm:$0xff] }
 0x21f   : > { %6643 = vmatmul.mubr.f32.gmra.mrb[152].mxu0 %v12535_v59  ;;  %v6023_v59 = vpop.f32.mrb[129].mxu0 }
 0x220   : > { %6645 = vmatprep.mubr.f32.mxu0 %v12536_v49  ;;  %v1980_v5 = vadd.f32 %v5618_v7, %v10637_v4  ;;  %v5619_v13 = vpop.f32.mrb[126].mxu1  ;;  %v10815_v2 = vadd.f32 %v6023_v59, %v6022_v40 }
 0x221   : > { %3715 = vmatmul.mubr.f32.gmra.mrb[230].mxu1 %v12567_v33  ;;  %v5620_v49 = vpop.f32.mrb[127].mxu1  ;;  %v12574_v33 = vld [vmem:[#allocation159_spill] sm:$0xff] }
 0x222   : > { %3720 = vmatprep.mubr.f32.mxu1 %v12568_v30  ;;  %v5621_v6 = vadd.f32 %v5620_v49, %v5619_v13  ;;  %v6025_v12 = vpop.f32.mrb[130].mxu0  ;;  %v10821_v10 = vadd.f32 %v12572_v38, %v1980_v5  ;;  %v12575_v30 = vld [vmem:[#allocation91_spill] sm:$0xff]  ;;  %v12577_v49 = vld [vmem:[#allocation122_spill] sm:$0xff] }
 0x223   : > { %6646 = vmatmul.mubr.f32.gmra.mrb[154].mxu0 %v12540_v50  ;;  %v6026_v50 = vpop.f32.mrb[131].mxu0 }
 0x224   : > { %6648 = vmatprep.mubr.f32.mxu0 %v12541_v43  ;;  %v1987_v4 = vadd.f32 %v5621_v6, %v10651_v61  ;;  %v5622_v57 = vpop.f32.mrb[128].mxu1  ;;  %v10825_v39 = vadd.f32 %v6026_v50, %v6025_v12  ;;  %v12578_v6 = vld [vmem:[#allocation92_spill] sm:$0xff] }
 0x225   : > { %3722 = vmatmul.mubr.f32.gmra.mrb[232].mxu1 %v12570_v32  ;;  %v5623_v43 = vpop.f32.mrb[129].mxu1 }
 0x226   : > { %3727 = vmatprep.mubr.f32.mxu1 %v12571_v46  ;;  %v5624_v20 = vadd.f32 %v5623_v43, %v5622_v57  ;;  %v6028_v7 = vpop.f32.mrb[132].mxu0  ;;  %v10831_v40 = vadd.f32 %v12575_v30, %v1987_v4  ;;  %v12579_v4 = vld [vmem:[#allocation107_spill] sm:$0xff] }
 0x227   : > { %6649 = vmatmul.mubr.f32.gmra.mrb[156].mxu0 %v12545_v35  ;;  %v6029_v35 = vpop.f32.mrb[133].mxu0 }
 0x228   : > { %6651 = vmatprep.mubr.f32.mxu0 %v12547_v24  ;;  %v1994_v61 = vadd.f32 %v5624_v20, %v10665_v22  ;;  %v5625_v45 = vpop.f32.mrb[130].mxu1  ;;  %v10835_v59 = vadd.f32 %v6029_v35, %v6028_v7  ;;  %v12576_v24 = vld [vmem:[#allocation166_spill] sm:$0xff] }
 0x229   : > { %3729 = vmatmul.mubr.f32.gmra.mrb[234].mxu1 %v12573_v9  ;;  %v5626_v5 = vpop.f32.mrb[131].mxu1  ;;  %v12580_v9 = vld [vmem:[#allocation94_spill] sm:$0xff] }
 0x22a   : > { %3734 = vmatprep.mubr.f32.mxu1 %v12574_v33  ;;  %v5627_v13 = vadd.f32 %v5626_v5, %v5625_v45  ;;  %v6031_v32 = vpop.f32.mrb[134].mxu0  ;;  %v10840_v46 = vadd.f32 %v12578_v6, %v1994_v61  ;;  %v12581_v5 = vld [vmem:[#allocation98_spill] sm:$0xff] }
 0x22b   : > { %6652 = vmatmul.mubr.f32.gmra.mrb[158].mxu0 %v12551_v23  ;;  %v6032_v12 = vpop.f32.mrb[135].mxu0 }
 0x22c   : > { %v2001_v38 = vadd.f32 %v5627_v13, %v10678_v29  ;;  %v5628_v23 = vpop.f32.mrb[132].mxu1  ;;  %v10843_v50 = vadd.f32 %v6032_v12, %v6031_v32 }
 0x22d   : > { %3736 = vmatmul.mubr.f32.gmra.mrb[236].mxu1 %v12576_v24  ;;  %v5629_v22 = vpop.f32.mrb[133].mxu1 }
 0x22e   : > { %3741 = vmatprep.mubr.f32.mxu1 %v12577_v49  ;;  %v5630_v57 = vadd.f32 %v5629_v22, %v5628_v23  ;;  %v6034_v43 = vpop.f32.mrb[136].mxu0  ;;  %v10847_v20 = vadd.f32 %v12580_v9, %v2001_v38  ;;  %v12582_v22 = vld [vmem:[#allocation80_spill] sm:$0xff] }
 0x22f   : > { %v6035_v33 = vpop.f32.mrb[137].mxu0 }
 0x230   : > { %v2008_v7 = vadd.f32 %v5630_v57, %v10690_v56  ;;  %v5631_v30 = vpop.f32.mrb[134].mxu1  ;;  %v10850_v35 = vadd.f32 %v6035_v33, %v6034_v43 }
 0x231   : > { %3743 = vmatmul.mubr.f32.gmra.mrb[238].mxu1 %v12579_v4  ;;  %v5632_v61 = vpop.f32.mrb[135].mxu1 }
 0x232   : > { %v5633_v45 = vadd.f32 %v5632_v61, %v5631_v30  ;;  %v6037_v29 = vpop.f32.mrb[138].mxu0  ;;  %v10853_v24 = vadd.f32 %v12581_v5, %v2008_v7  ;;  %v12583_v61 = vld [vmem:[#allocation90_spill] sm:$0xff] }
 0x233   : > { %v6038_v13 = vpop.f32.mrb[139].mxu0 }
 0x234   : > { %v2015_v49 = vadd.f32 %v5633_v45, %v10702_v25  ;;  %v5634_v32 = vpop.f32.mrb[136].mxu1  ;;  %v10856_v6 = vadd.f32 %v6038_v13, %v6037_v29 }
 0x235   : > { %v5635_v12 = vpop.f32.mrb[137].mxu1 }
 0x236   : > { %v5636_v38 = vadd.f32 %v5635_v12, %v5634_v32  ;;  %v10859_v56 = vadd.f32 %v12582_v22, %v2015_v49  ;;  %v12584_v12 = vld [vmem:[#allocation100_spill] sm:$0xff] }
 0x238   : > { %v6040_v23 = vpop.f32.mrb[140].mxu0  ;;  %v2022_v57 = vadd.f32 %v5636_v38, %v10714_v1  ;;  %v5637_v43 = vpop.f32.mrb[138].mxu1 }
 0x239   : > { %v6041_v4 = vpop.f32.mrb[141].mxu0  ;;  %v5638_v33 = vpop.f32.mrb[139].mxu1 }
 0x23a   : > { %v10862_v9 = vadd.f32 %v6041_v4, %v6040_v23  ;;  %v5639_v7 = vadd.f32 %v5638_v33, %v5637_v43  ;;  %v10865_v25 = vadd.f32 %v12583_v61, %v2022_v57  ;;  %v12585_v43 = vld [vmem:[#allocation101_spill] sm:$0xff] }
 0x23c   : > { %v6043_v30 = vpop.f32.mrb[142].mxu0  ;;  %v2029_v29 = vadd.f32 %v5639_v7, %v10726_v37  ;;  %v5640_v5 = vpop.f32.mrb[140].mxu1 }
 0x23d   : > { %v6044_v45 = vpop.f32.mrb[143].mxu0  ;;  %v5641_v49 = vpop.f32.mrb[141].mxu1 }
 0x23e   : > { %v10868_v13 = vadd.f32 %v6044_v45, %v6043_v30  ;;  %v5642_v32 = vadd.f32 %v5641_v49, %v5640_v5  ;;  %v10871_v22 = vadd.f32 %v12584_v12, %v2029_v29  ;;  %v12586_v30 = vld [vmem:[#allocation102_spill] sm:$0xff] }
 0x240   : > { %v2036_v1 = vadd.f32 %v5642_v32, %v10738_v51  ;;  %v5643_v38 = vpop.f32.mrb[142].mxu1  ;;  %v12587_v51 = vld [vmem:[#allocation26_spill] sm:$0xff] }
 0x241   : > { %v5644_v23 = vpop.f32.mrb[143].mxu1 }
 0x242   : > { %v5645_v4 = vadd.f32 %v5644_v23, %v5643_v38  ;;  %v10875_v33 = vadd.f32 %v12585_v43, %v2036_v1 }
 0x244   : > { %v2043_v57 = vadd.f32 %v5645_v4, %v10750_v34  ;;  %v5758_v61 = vpop.f32.mrb[144].mxu1 }
 0x245   : > { %v5759_v37 = vpop.f32.mrb[145].mxu1 }
 0x246   : > { %v5760_v7 = vadd.f32 %v5759_v37, %v5758_v61  ;;  %v10879_v45 = vadd.f32 %v12586_v30, %v2043_v57 }
 0x248   : > { %v2612_v5 = vadd.f32 %v5760_v7, %v10761_v44  ;;  %v5761_v29 = vpop.f32.mrb[146].mxu1 }
 0x249   : > { %v5762_v49 = vpop.f32.mrb[147].mxu1 }
 0x24a   : > { %v5763_v12 = vadd.f32 %v5762_v49, %v5761_v29  ;;  %v10883_v32 = vadd.f32 %v12587_v51, %v2612_v5 }
 0x24c   : > { %v2619_v38 = vadd.f32 %v5763_v12, %v10771_v41 }
 0x24d   : > { %v5764_v1 = vpop.f32.mrb[148].mxu1 }
 0x24e   : > { %v5765_v23 = vpop.f32.mrb[149].mxu1  ;;  %v10887_v34 = vadd.f32 %v10496_v21, %v2619_v38 }
 0x24f   : > { %v5766_v43 = vadd.f32 %v5765_v23, %v5764_v1 }
 0x251   : > { %v2626_v4 = vadd.f32 %v5766_v43, %v10781_v52 }
 0x252   : > { %v5767_v57 = vpop.f32.mrb[150].mxu1 }
 0x253   : > { %v5768_v61 = vpop.f32.mrb[151].mxu1  ;;  %v10891_v44 = vadd.f32 %v10513_v17, %v2626_v4 }
 0x254   : > { %v5769_v37 = vadd.f32 %v5768_v61, %v5767_v57 }
 0x256   : > { %v2633_v7 = vadd.f32 %v5769_v37, %v10791_v28  ;;  %v5770_v30 = vpop.f32.mrb[152].mxu1 }
 0x257   : > { %v5771_v5 = vpop.f32.mrb[153].mxu1 }
 0x258   : > { %v5772_v29 = vadd.f32 %v5771_v5, %v5770_v30  ;;  %v10895_v41 = vadd.f32 %v10533_v47, %v2633_v7 }
 0x25a   : > { %v2640_v49 = vadd.f32 %v5772_v29, %v10801_v27  ;;  %v5773_v21 = vpop.f32.mrb[154].mxu1 }
 0x25b   : > { %v5774_v12 = vpop.f32.mrb[155].mxu1 }
 0x25c   : > { %v5775_v51 = vadd.f32 %v5774_v12, %v5773_v21  ;;  %v10899_v52 = vadd.f32 %v10552_v26, %v2640_v49 }
 0x25e   : > { %v2647_v38 = vadd.f32 %v5775_v51, %v10811_v36  ;;  %v5776_v17 = vpop.f32.mrb[156].mxu1 }
 0x25f   : > { %v5777_v1 = vpop.f32.mrb[157].mxu1 }
 0x260   : > { %v5778_v23 = vadd.f32 %v5777_v1, %v5776_v17  ;;  %v10903_v28 = vadd.f32 %v10570_v53, %v2647_v38 }
 0x262   : > { %v2654_v43 = vadd.f32 %v5778_v23, %v10821_v10  ;;  %v5779_v47 = vpop.f32.mrb[158].mxu1 }
 0x263   : > { %v5780_v4 = vpop.f32.mrb[159].mxu1 }
 0x264   : > { %v5781_v57 = vadd.f32 %v5780_v4, %v5779_v47  ;;  %v10907_v27 = vadd.f32 %v10588_v15, %v2654_v43 }
 0x266   : > { %v2661_v61 = vadd.f32 %v5781_v57, %v10831_v40 }
 0x268   : > { %v5782_v26 = vpop.f32.mrb[160].mxu1  ;;  %v10911_v36 = vadd.f32 %v10606_v54, %v2661_v61 }
 0x269   : > { %v5783_v37 = vpop.f32.mrb[161].mxu1 }
 0x26a   : > { %v5784_v7 = vadd.f32 %v5783_v37, %v5782_v26 }
 0x26c   : > { %v2668_v30 = vadd.f32 %v5784_v7, %v10840_v46  ;;  %v5785_v53 = vpop.f32.mrb[162].mxu1 }
 0x26d   : > { %v5786_v5 = vpop.f32.mrb[163].mxu1 }
 0x26e   : > { %v5787_v29 = vadd.f32 %v5786_v5, %v5785_v53  ;;  %v10915_v10 = vadd.f32 %v10624_v60, %v2668_v30 }
 0x270   : > { %v2675_v49 = vadd.f32 %v5787_v29, %v10847_v20  ;;  %v5788_v15 = vpop.f32.mrb[164].mxu1 }
 0x271   : > { %v5789_v21 = vpop.f32.mrb[165].mxu1 }
 0x272   : > { %v5790_v12 = vadd.f32 %v5789_v21, %v5788_v15  ;;  %v10919_v40 = vadd.f32 %v10642_v3, %v2675_v49 }
 0x274   : > { %v2682_v51 = vadd.f32 %v5790_v12, %v10853_v24  ;;  %v5791_v54 = vpop.f32.mrb[166].mxu1 }
 0x275   : > { %v5792_v38 = vpop.f32.mrb[167].mxu1 }
 0x276   : > { %v5793_v17 = vadd.f32 %v5792_v38, %v5791_v54  ;;  %v10923_v46 = vadd.f32 %v10656_v63, %v2682_v51 }
 0x278   : > { %v2689_v1 = vadd.f32 %v5793_v17, %v10859_v56  ;;  %v5794_v60 = vpop.f32.mrb[168].mxu1 }
 0x279   : > { %v5795_v23 = vpop.f32.mrb[169].mxu1 }
 0x27a   : > { %v5796_v43 = vadd.f32 %v5795_v23, %v5794_v60  ;;  %v10927_v20 = vadd.f32 %v10670_v11, %v2689_v1 }
 0x27c   : > { %v2696_v47 = vadd.f32 %v5796_v43, %v10865_v25  ;;  %v5797_v3 = vpop.f32.mrb[170].mxu1 }
 0x27d   : > { %v5798_v4 = vpop.f32.mrb[171].mxu1 }
 0x27e   : > { %v5799_v57 = vadd.f32 %v5798_v4, %v5797_v3  ;;  %v10931_v24 = vadd.f32 %v10683_v42, %v2696_v47 }
 0x280   : > { %v2703_v61 = vadd.f32 %v5799_v57, %v10871_v22  ;;  %v5800_v63 = vpop.f32.mrb[172].mxu1 }
 0x281   : > { %v5801_v26 = vpop.f32.mrb[173].mxu1 }
 0x282   : > { %v5802_v37 = vadd.f32 %v5801_v26, %v5800_v63  ;;  %v10935_v56 = vadd.f32 %v10695_v55, %v2703_v61 }
 0x284   : > { %v2710_v7 = vadd.f32 %v5802_v37, %v10875_v33  ;;  %v5803_v11 = vpop.f32.mrb[174].mxu1 }
 0x285   : > { %v5804_v30 = vpop.f32.mrb[175].mxu1 }
 0x286   : > { %v5805_v53 = vadd.f32 %v5804_v30, %v5803_v11  ;;  %v10939_v25 = vadd.f32 %v10707_v19, %v2710_v7 }
 0x288   : > { %v2717_v5 = vadd.f32 %v5805_v53, %v10879_v45  ;;  %v5918_v42 = vpop.f32.mrb[176].mxu1 }
 0x289   : > { %v5919_v29 = vpop.f32.mrb[177].mxu1 }
 0x28a   : > { %v5920_v49 = vadd.f32 %v5919_v29, %v5918_v42  ;;  %v10943_v22 = vadd.f32 %v10719_v58, %v2717_v5 }
 0x28c   : > { %v3098_v15 = vadd.f32 %v5920_v49, %v10883_v32  ;;  %v5921_v55 = vpop.f32.mrb[178].mxu1 }
 0x28d   : > { %v5922_v21 = vpop.f32.mrb[179].mxu1 }
 0x28e   : > { %v5923_v12 = vadd.f32 %v5922_v21, %v5921_v55  ;;  %v10947_v33 = vadd.f32 %v10731_v16, %v3098_v15 }
 0x290   : > { %v3109_v51 = vadd.f32 %v5923_v12, %v10887_v34  ;;  %v5924_v19 = vpop.f32.mrb[180].mxu1 }
 0x291   : > { %v5925_v54 = vpop.f32.mrb[181].mxu1 }
 0x292   : > { %v5926_v38 = vadd.f32 %v5925_v54, %v5924_v19  ;;  %v10951_v45 = vadd.f32 %v10743_v0, %v3109_v51 }
 0x294   : > { %v3120_v17 = vadd.f32 %v5926_v38, %v10891_v44  ;;  %v5927_v58 = vpop.f32.mrb[182].mxu1 }
 0x295   : > { %v5928_v1 = vpop.f32.mrb[183].mxu1 }
 0x296   : > { %v5929_v60 = vadd.f32 %v5928_v1, %v5927_v58  ;;  %v10955_v32 = vadd.f32 %v10755_v62, %v3120_v17 }
 0x298   : > { %v3131_v23 = vadd.f32 %v5929_v60, %v10895_v41  ;;  %v5930_v16 = vpop.f32.mrb[184].mxu1 }
 0x299   : > { %v5931_v43 = vpop.f32.mrb[185].mxu1 }
 0x29a   : > { %v5932_v47 = vadd.f32 %v5931_v43, %v5930_v16  ;;  %v10959_v34 = vadd.f32 %v10765_v8, %v3131_v23 }
 0x29c   : > { %v3142_v3 = vadd.f32 %v5932_v47, %v10899_v52  ;;  %v5933_v0 = vpop.f32.mrb[186].mxu1 }
 0x29d   : > { %v5934_v4 = vpop.f32.mrb[187].mxu1 }
 0x29e   : > { %v5935_v57 = vadd.f32 %v5934_v4, %v5933_v0  ;;  %v10963_v44 = vadd.f32 %v10775_v14, %v3142_v3 }
 0x2a0   : > { %v3153_v61 = vadd.f32 %v5935_v57, %v10903_v28  ;;  %v5936_v62 = vpop.f32.mrb[188].mxu1 }
 0x2a1   : > { %v5937_v63 = vpop.f32.mrb[189].mxu1 }
 0x2a2   : > { %v5938_v26 = vadd.f32 %v5937_v63, %v5936_v62  ;;  %v10967_v41 = vadd.f32 %v10785_v18, %v3153_v61 }
 0x2a4   : > { %v3164_v37 = vadd.f32 %v5938_v26, %v10907_v27  ;;  %v5939_v8 = vpop.f32.mrb[190].mxu1 }
 0x2a5   : > { %v5940_v7 = vpop.f32.mrb[191].mxu1 }
 0x2a6   : > { %v5941_v11 = vadd.f32 %v5940_v7, %v5939_v8  ;;  %v10971_v52 = vadd.f32 %v10795_v31, %v3164_v37 }
 0x2a8   : > { %v3175_v30 = vadd.f32 %v5941_v11, %v10911_v36  ;;  %v5942_v14 = vpop.f32.mrb[192].mxu1 }
 0x2a9   : > { %v5943_v53 = vpop.f32.mrb[193].mxu1 }
 0x2aa   : > { %v5944_v5 = vadd.f32 %v5943_v53, %v5942_v14  ;;  %v10975_v28 = vadd.f32 %v10805_v48, %v3175_v30 }
 0x2ac   : > { %v3186_v42 = vadd.f32 %v5944_v5, %v10915_v10  ;;  %v5945_v18 = vpop.f32.mrb[194].mxu1 }
 0x2ad   : > { %v5946_v29 = vpop.f32.mrb[195].mxu1 }
 0x2ae   : > { %v5947_v49 = vadd.f32 %v5946_v29, %v5945_v18  ;;  %v10979_v27 = vadd.f32 %v10815_v2, %v3186_v42 }
 0x2b0   : > { %v3197_v15 = vadd.f32 %v5947_v49, %v10919_v40  ;;  %v5948_v31 = vpop.f32.mrb[196].mxu1 }
 0x2b1   : > { %v5949_v55 = vpop.f32.mrb[197].mxu1 }
 0x2b2   : > { %v5950_v21 = vadd.f32 %v5949_v55, %v5948_v31  ;;  %v10983_v36 = vadd.f32 %v10825_v39, %v3197_v15 }
 0x2b4   : > { %v3208_v12 = vadd.f32 %v5950_v21, %v10923_v46  ;;  %v5951_v48 = vpop.f32.mrb[198].mxu1 }
 0x2b5   : > { %v5952_v51 = vpop.f32.mrb[199].mxu1 }
 0x2b6   : > { %v5953_v19 = vadd.f32 %v5952_v51, %v5951_v48  ;;  %v10987_v10 = vadd.f32 %v10835_v59, %v3208_v12 }
 0x2b8   : > { %v3219_v54 = vadd.f32 %v5953_v19, %v10927_v20  ;;  %v5954_v2 = vpop.f32.mrb[200].mxu1 }
 0x2b9   : > { %v5955_v38 = vpop.f32.mrb[201].mxu1 }
 0x2ba   : > { %v5956_v17 = vadd.f32 %v5955_v38, %v5954_v2  ;;  %v10991_v40 = vadd.f32 %v10843_v50, %v3219_v54 }
 0x2bc   : > { %v3230_v58 = vadd.f32 %v5956_v17, %v10931_v24  ;;  %v5957_v39 = vpop.f32.mrb[202].mxu1 }
 0x2bd   : > { %v5958_v1 = vpop.f32.mrb[203].mxu1 }
 0x2be   : > { %v5959_v60 = vadd.f32 %v5958_v1, %v5957_v39  ;;  %v10995_v46 = vadd.f32 %v10850_v35, %v3230_v58 }
 0x2c0   : > { %v3241_v23 = vadd.f32 %v5959_v60, %v10935_v56  ;;  %v5960_v59 = vpop.f32.mrb[204].mxu1 }
 0x2c1   : > { %v5961_v16 = vpop.f32.mrb[205].mxu1 }
 0x2c2   : > { %v5962_v43 = vadd.f32 %v5961_v16, %v5960_v59  ;;  %v10999_v20 = vadd.f32 %v10856_v6, %v3241_v23 }
 0x2c4   : > { %v3252_v47 = vadd.f32 %v5962_v43, %v10939_v25  ;;  %v5963_v50 = vpop.f32.mrb[206].mxu1 }
 0x2c5   : > { %v5964_v3 = vpop.f32.mrb[207].mxu1 }
 0x2c6   : > { %v5965_v0 = vadd.f32 %v5964_v3, %v5963_v50  ;;  %v11003_v24 = vadd.f32 %v10862_v9, %v3252_v47 }
 0x2c8   : > { %v3263_v4 = vadd.f32 %v5965_v0, %v10943_v22  ;;  %v6078_v35 = vpop.f32.mrb[208].mxu1 }
 0x2c9   : > { %v6079_v57 = vpop.f32.mrb[209].mxu1 }
 0x2ca   : > { %v6080_v61 = vadd.f32 %v6079_v57, %v6078_v35  ;;  %v11007_v56 = vadd.f32 %v10868_v13, %v3263_v4 }
 0x2cc   : > { %v6081_v62 = vpop.f32.mrb[210].mxu1  ;;  %v3640_v6 = vadd.f32 %v6080_v61, %v10947_v33 }
 0x2cd   : > { %v6082_v63 = vpop.f32.mrb[211].mxu1 }
 0x2ce   : > { %v6083_v26 = vadd.f32 %v6082_v63, %v6081_v62 }
 0x2d0   : > { %v6084_v25 = vpop.f32.mrb[212].mxu1  ;;  %v3647_v37 = vadd.f32 %v6083_v26, %v10951_v45 }
 0x2d1   : > { %v6085_v8 = vpop.f32.mrb[213].mxu1 }
 0x2d2   : > { %v6086_v7 = vadd.f32 %v6085_v8, %v6084_v25 }
 0x2d4   : > { %v6087_v9 = vpop.f32.mrb[214].mxu1  ;;  %v3654_v22 = vadd.f32 %v6086_v7, %v10955_v32 }
 0x2d5   : > { %v6088_v11 = vpop.f32.mrb[215].mxu1 }
 0x2d6   : > { %v6089_v30 = vadd.f32 %v6088_v11, %v6087_v9 }
 0x2d8   : > { %v6090_v14 = vpop.f32.mrb[216].mxu1  ;;  %v3661_v13 = vadd.f32 %v6089_v30, %v10959_v34 }
 0x2d9   : > { %v6091_v53 = vpop.f32.mrb[217].mxu1 }
 0x2da   : > { %v6092_v5 = vadd.f32 %v6091_v53, %v6090_v14 }
 0x2dc   : > { %v6093_v42 = vpop.f32.mrb[218].mxu1  ;;  %v3668_v33 = vadd.f32 %v6092_v5, %v10963_v44 }
 0x2dd   : > { %v6094_v18 = vpop.f32.mrb[219].mxu1 }
 0x2de   : > { %v6095_v29 = vadd.f32 %v6094_v18, %v6093_v42 }
 0x2e0   : > { %v6096_v49 = vpop.f32.mrb[220].mxu1  ;;  %v3675_v45 = vadd.f32 %v6095_v29, %v10967_v41 }
 0x2e1   : > { %v6097_v15 = vpop.f32.mrb[221].mxu1 }
 0x2e2   : > { %v6098_v31 = vadd.f32 %v6097_v15, %v6096_v49  ;;  %v6632_v55 = vpop.f32.mrb[144].mxu0 }
 0x2e3   : > { %v7246_v32 = vadd.f32 %v6632_v55, %v3647_v37  ;;  %v4940_v21 = vpop.f32.mrb[145].mxu0 }
 0x2e4   : > { %v6099_v12 = vpop.f32.mrb[222].mxu1  ;;  %v7247_v48 = vadd.f32 %v4940_v21, %v3640_v6  ;;  %v3682_v34 = vadd.f32 %v6098_v31, %v10971_v52 }
 0x2e5   : > { %v6100_v51 = vpop.f32.mrb[223].mxu1  ;;  %vm5035_vm0 = vcmp.gt.f32.partialorder %v7246_v32, 0.0  ;;  %v5051_v44 = vmul.f32 1.9572, %v7246_v32 }
 0x2e6   : > { %v6101_v41 = vadd.f32 %v6100_v51, %v6099_v12  ;;  %vm5034_vm1 = vcmp.gt.f32.partialorder %v7247_v48, 0.0  ;;  %v5050_v19 = vmul.f32 1.9572, %v7247_v48  ;;  %v6635_v54 = vpop.f32.mrb[146].mxu0 }
 0x2e7   : > { %v5067_v2 = vsel %vm5035_vm0, %v7246_v32, %v5051_v44  ;;  %v7248_v38 = vadd.f32 %v6635_v54, %v3661_v13  ;;  %v4952_v17 = vpop.f32.mrb[147].mxu0 }
 0x2e8   : > { %v6102_v58 = vpop.f32.mrb[224].mxu1  ;;  %5083 = vst [vmem:[%s11020_s10 + $0x8] sm:$0xff] %v5067_v2  ;;  %v5066_v52 = vsel %vm5034_vm1, %v7247_v48, %v5050_v19  ;;  %v7249_v39 = vadd.f32 %v4952_v17, %v3654_v22  ;;  %v3689_v1 = vadd.f32 %v6101_v41, %v10975_v28 }
 0x2e9   : > { %v6103_v60 = vpop.f32.mrb[225].mxu1  ;;  %5082 = vst [vmem:[%s11020_s10] sm:$0xff] %v5066_v52  ;;  %vm5037_vm2 = vcmp.gt.f32.partialorder %v7248_v38, 0.0  ;;  %v5053_v23 = vmul.f32 1.9572, %v7248_v38 }
 0x2ea   : > { %v6104_v59 = vadd.f32 %v6103_v60, %v6102_v58  ;;  %vm5036_vm3 = vcmp.gt.f32.partialorder %v7249_v39, 0.0  ;;  %v5052_v16 = vmul.f32 1.9572, %v7249_v39  ;;  %v6638_v43 = vpop.f32.mrb[148].mxu0 }
 0x2eb   : > { %v5069_v47 = vsel %vm5037_vm2, %v7248_v38, %v5053_v23  ;;  %v7250_v50 = vadd.f32 %v6638_v43, %v3675_v45  ;;  %v4964_v3 = vpop.f32.mrb[149].mxu0 }
 0x2ec   : > { %v6105_v0 = vpop.f32.mrb[226].mxu1  ;;  %5085 = vst [vmem:[%s11020_s10 + $0x18] sm:$0xff] %v5069_v47  ;;  %v5068_v4 = vsel %vm5036_vm3, %v7249_v39, %v5052_v16  ;;  %v7251_v35 = vadd.f32 %v4964_v3, %v3668_v33  ;;  %v3696_v57 = vadd.f32 %v6104_v59, %v10979_v27 }
 0x2ed   : > { %v6106_v28 = vpop.f32.mrb[227].mxu1  ;;  %5084 = vst [vmem:[%s11020_s10 + $0x10] sm:$0xff] %v5068_v4  ;;  %vm5039_vm4 = vcmp.gt.f32.partialorder %v7250_v50, 0.0  ;;  %v5055_v61 = vmul.f32 1.9572, %v7250_v50 }
 0x2ee   : > { %v6107_v62 = vadd.f32 %v6106_v28, %v6105_v0  ;;  %vm5038_vm5 = vcmp.gt.f32.partialorder %v7251_v35, 0.0  ;;  %v5054_v6 = vmul.f32 1.9572, %v7251_v35  ;;  %v6641_v63 = vpop.f32.mrb[150].mxu0 }
 0x2ef   : > { %v5071_v26 = vsel %vm5039_vm4, %v7250_v50, %v5055_v61  ;;  %v7252_v25 = vadd.f32 %v6641_v63, %v3689_v1  ;;  %v4976_v37 = vpop.f32.mrb[151].mxu0 }
 0x2f0   : > { %v6108_v8 = vpop.f32.mrb[228].mxu1  ;;  %5087 = vst [vmem:[%s11020_s10 + $0x28] sm:$0xff] %v5071_v26  ;;  %v5070_v7 = vsel %vm5038_vm5, %v7251_v35, %v5054_v6  ;;  %v7253_v9 = vadd.f32 %v4976_v37, %v3682_v34  ;;  %v3703_v22 = vadd.f32 %v6107_v62, %v10983_v36 }
 0x2f1   : > { %v6109_v27 = vpop.f32.mrb[229].mxu1  ;;  %5086 = vst [vmem:[%s11020_s10 + $0x20] sm:$0xff] %v5070_v7  ;;  %vm5041_vm6 = vcmp.gt.f32.partialorder %v7252_v25, 0.0  ;;  %v5057_v11 = vmul.f32 1.9572, %v7252_v25 }
 0x2f2   : > { %v6110_v30 = vadd.f32 %v6109_v27, %v6108_v8  ;;  %vm5040_vm7 = vcmp.gt.f32.partialorder %v7253_v9, 0.0  ;;  %v5056_v14 = vmul.f32 1.9572, %v7253_v9  ;;  %v6644_v13 = vpop.f32.mrb[152].mxu0 }
 0x2f3   : > { %v5073_v53 = vsel %vm5041_vm6, %v7252_v25, %v5057_v11  ;;  %v7254_v5 = vadd.f32 %v6644_v13, %v3703_v22  ;;  %v4988_v42 = vpop.f32.mrb[153].mxu0 }
 0x2f4   : > { %v6111_v33 = vpop.f32.mrb[230].mxu1  ;;  %5089 = vst [vmem:[%s11020_s10 + $0x38] sm:$0xff] %v5073_v53  ;;  %v5072_v18 = vsel %vm5040_vm7, %v7253_v9, %v5056_v14  ;;  %v7255_v29 = vadd.f32 %v4988_v42, %v3696_v57  ;;  %v3710_v49 = vadd.f32 %v6110_v30, %v10987_v10 }
 0x2f5   : > { %v6112_v36 = vpop.f32.mrb[231].mxu1  ;;  %5088 = vst [vmem:[%s11020_s10 + $0x30] sm:$0xff] %v5072_v18  ;;  %vm5043_vm8 = vcmp.gt.f32.partialorder %v7254_v5, 0.0  ;;  %v5059_v45 = vmul.f32 1.9572, %v7254_v5 }
 0x2f6   : > { %v6113_v15 = vadd.f32 %v6112_v36, %v6111_v33  ;;  %vm5042_vm9 = vcmp.gt.f32.partialorder %v7255_v29, 0.0  ;;  %v5058_v31 = vmul.f32 1.9572, %v7255_v29  ;;  %v6647_v55 = vpop.f32.mrb[154].mxu0 }
 0x2f7   : > { %v5075_v32 = vsel %vm5043_vm8, %v7254_v5, %v5059_v45  ;;  %v5000_v21 = vpop.f32.mrb[155].mxu0 }
 0x2f8   : > { %v6114_v12 = vpop.f32.mrb[232].mxu1  ;;  %5091 = vst [vmem:[%s11020_s10 + $0x48] sm:$0xff] %v5075_v32  ;;  %v5074_v48 = vsel %vm5042_vm9, %v7255_v29, %v5058_v31  ;;  %v3717_v34 = vadd.f32 %v6113_v15, %v10991_v40  ;;  %v7257_v51 = vadd.f32 %v5000_v21, %v3710_v49 }
 0x2f9   : > { %v6115_v44 = vpop.f32.mrb[233].mxu1  ;;  %5090 = vst [vmem:[%s11020_s10 + $0x40] sm:$0xff] %v5074_v48 }
 0x2fa   : > { %v6116_v10 = vadd.f32 %v6115_v44, %v6114_v12  ;;  %v7256_v41 = vadd.f32 %v6647_v55, %v3717_v34  ;;  %vm5044_vm10 = vcmp.gt.f32.partialorder %v7257_v51, 0.0  ;;  %v5060_v19 = vmul.f32 1.9572, %v7257_v51  ;;  %v6650_v54 = vpop.f32.mrb[156].mxu0 }
 0x2fb   : > { %v5012_v2 = vpop.f32.mrb[157].mxu0 }
 0x2fc   : > { %v6117_v38 = vpop.f32.mrb[234].mxu1  ;;  %vm5045_vm11 = vcmp.gt.f32.partialorder %v7256_v41, 0.0  ;;  %v5061_v17 = vmul.f32 1.9572, %v7256_v41  ;;  %v5076_v58 = vsel %vm5044_vm10, %v7257_v51, %v5060_v19  ;;  %v3724_v52 = vadd.f32 %v6116_v10, %v10995_v46 }
 0x2fd   : > { %v6118_v39 = vpop.f32.mrb[235].mxu1  ;;  %5092 = vst [vmem:[%s11020_s10 + $0x50] sm:$0xff] %v5076_v58 }
 0x2fe   : > { %v6119_v40 = vadd.f32 %v6118_v39, %v6117_v38  ;;  %v5077_v1 = vsel %vm5045_vm11, %v7256_v41, %v5061_v17  ;;  %v7259_v60 = vadd.f32 %v5012_v2, %v3724_v52  ;;  %v6653_v23 = vpop.f32.mrb[158].mxu0 }
 0x2ff   : > { %5093 = vst [vmem:[%s11020_s10 + $0x58] sm:$0xff] %v5077_v1  ;;  %v5024_v59 = vpop.f32.mrb[159].mxu0 }
 0x300   : > { %v6120_v16 = vpop.f32.mrb[236].mxu1  ;;  %v3731_v43 = vadd.f32 %v6119_v40, %v10999_v20  ;;  %vm5046_vm12 = vcmp.gt.f32.partialorder %v7259_v60, 0.0  ;;  %v5062_v47 = vmul.f32 1.9572, %v7259_v60 }
 0x301   : > { %v6121_v50 = vpop.f32.mrb[237].mxu1 }
 0x302   : > { %v6122_v3 = vadd.f32 %v6121_v50, %v6120_v16  ;;  %v7258_v0 = vadd.f32 %v6650_v54, %v3731_v43  ;;  %v5078_v4 = vsel %vm5046_vm12, %v7259_v60, %v5062_v47 }
 0x303   : > { %5094 = vst [vmem:[%s11020_s10 + $0x60] sm:$0xff] %v5078_v4 }
 0x304   : > { %vm5047_vm13 = vcmp.gt.f32.partialorder %v7258_v0, 0.0  ;;  %v5063_v46 = vmul.f32 1.9572, %v7258_v0  ;;  %v6123_v35 = vpop.f32.mrb[238].mxu1  ;;  %v3738_v57 = vadd.f32 %v6122_v3, %v11003_v24 }
 0x305   : > { %v6124_v28 = vpop.f32.mrb[239].mxu1 }
 0x306   : > { %v5079_v61 = vsel %vm5047_vm13, %v7258_v0, %v5063_v46  ;;  %v6125_v62 = vadd.f32 %v6124_v28, %v6123_v35  ;;  %v7261_v6 = vadd.f32 %v5024_v59, %v3738_v57 }
 0x307   : > { %5095 = vst [vmem:[%s11020_s10 + $0x68] sm:$0xff] %v5079_v61 }
 0x308   : > { %v3745_v20 = vadd.f32 %v6125_v62, %v11007_v56  ;;  %vm5048_vm14 = vcmp.gt.f32.partialorder %v7261_v6, 0.0  ;;  %v5064_v63 = vmul.f32 1.9572, %v7261_v6 }
 0x30a   : > { %v7260_v26 = vadd.f32 %v6653_v23, %v3745_v20  ;;  %v5080_v25 = vsel %vm5048_vm14, %v7261_v6, %v5064_v63 }
 0x30b   : > { %5096 = vst [vmem:[%s11020_s10 + $0x70] sm:$0xff] %v5080_v25 }
 0x30c   : > { %vm5049_vm15 = vcmp.gt.f32.partialorder %v7260_v26, 0.0  ;;  %v5065_v37 = vmul.f32 1.9572, %v7260_v26 }
 0x30e   : > { %v5081_v8 = vsel %vm5049_vm15, %v7260_v26, %v5065_v37 }
 0x30f   : > { %5097 = vst [vmem:[%s11020_s10 + $0x78] sm:$0xff] %v5081_v8 }
 0x310 PF: > { %s13_s12 = sadd.s32 1, %s7357_s12  }
 0x311   : > { %p10_p4 = scmp.ge.s32.totalorder %s13_s12, 4  }
 0x313   :  { %12 = sbr.rel (!%p10_p4) target bundleno = 1 (0x1), region = 62 }

</bundles_post_ra>
